<compile_context>
chip_gen: v6e
topology: v6e:2x2x1
jax: 0.10.0
libtpu: 0.0.40
codegen_flags: <defaults>
</compile_context>

<pallas_src>
import jax
import jax.numpy as jnp
import numpy as np
from jax import lax
from jax.experimental import pallas as pl
from jax.experimental.pallas import tpu as pltpu


def _round_up(n, m):
    return ((n + m - 1) // m) * m


def _bilstm_kernel(m_ref, x_ref, wih_ref, whh_f_ref, whh_b_ref, b_ref,
                   fw_ref, bw_ref, hf_ref, hb_ref,
                   gx_ref, fw_acc, bw_acc):
    T, Bb, E = x_ref.shape
    H = hf_ref.shape[1]
    H3 = 3 * H
    H4 = 4 * H

    # ---- Hoisted input projection: one big matmul for both directions, ----
    # ---- bias folded in, stored once in VMEM scratch.                   ----
    x2d = x_ref[...].reshape(T * Bb, E).astype(jnp.bfloat16)
    gx = jnp.dot(x2d, wih_ref[...], preferred_element_type=jnp.float32)
    gx_ref[...] = (gx + b_ref[...]).reshape(T, Bb, 2 * H4)

    whh_f = whh_f_ref[...]
    whh_b = whh_b_ref[...]

    def cell(gx_t, h, c, whh):
        # Only the recurrent matmul remains inside the serial loop.
        gates = gx_t + jnp.dot(h.astype(jnp.bfloat16), whh,
                               preferred_element_type=jnp.float32)
        # Gate order (i, f, o, g): one contiguous sigmoid slice + one tanh.
        sig = jax.nn.sigmoid(gates[:, :H3])
        g_g = jnp.tanh(gates[:, H3:])
        i_g = sig[:, :H]
        f_g = sig[:, H:2 * H]
        o_g = sig[:, 2 * H:H3]
        c_new = f_g * c + i_g * g_g
        h_new = o_g * jnp.tanh(c_new)
        return h_new, c_new

    zeros = jnp.zeros((Bb, H), jnp.float32)

    # ---- Fused forward/backward recurrence (independent chains -> ILP). ----
    def step(t, carry):
        h_f, c_f, h_b, c_b = carry
        tb = T - 1 - t

        gx_f = gx_ref[t]            # [Bb, 8H]
        gx_b = gx_ref[tb]
        m_f = m_ref[t]              # [Bb, 1] float, 1.0 where t < len
        m_b = m_ref[tb]

        hf_new, cf_new = cell(gx_f[:, :H4], h_f, c_f, whh_f)
        hb_new, cb_new = cell(gx_b[:, H4:], h_b, c_b, whh_b)

        # Padded positions emit zeros (pad_packed_sequence semantics).
        fw_acc[t] = m_f * hf_new
        bw_acc[tb] = m_b * hb_new

        # Freeze state past the sequence length (pack_padded semantics).
        h_f = h_f + m_f * (hf_new - h_f)
        c_f = c_f + m_f * (cf_new - c_f)
        h_b = h_b + m_b * (hb_new - h_b)
        c_b = c_b + m_b * (cb_new - c_b)
        return (h_f, c_f, h_b, c_b)

    h_f, _, h_b, _ = lax.fori_loop(0, T, step, (zeros, zeros, zeros, zeros),
                                   unroll=True)

    hf_ref[...] = h_f               # last_hidden[-2] (forward final state)
    hb_ref[...] = h_b               # last_hidden[-1] (backward final state)

    # ---- Batch-first outputs written directly from the kernel (static   ----
    # ---- relayout of the time-major scratch; no wrapper HBM transpose). ----
    for t in range(T):
        fw_ref[:, t, :] = fw_acc[t]
        bw_ref[:, t, :] = bw_acc[t]


def bilstm_packed(x_tbe, valid_tb1, wih_cat, whh_f, whh_b, b_cat,
                  *, max_b_blk=128):
    """Bidirectional LSTM over packed (length-masked) sequences.

    x_tbe:     [T, B, E] float32 (time-major embedded input)
    valid_tb1: [T, B, 1] float32, 1.0 where t < length[b]
    wih_cat:   [E, 8H] bf16  (fw|bw input weights, gate order (i,f,o,g))
    whh_f/b:   [H, 4H] bf16
    b_cat:     [1, 8H] f32   (fused bias_ih + bias_hh, fw|bw)
    Returns fw [B,T,H], bw [B,T,H], h_fw [B,H], h_bw [B,H] (batch-first).
    """
    T, B, E = x_tbe.shape
    H = whh_f.shape[0]

    B_BLK = min(max_b_blk, _round_up(B, 8))
    B_pad = _round_up(B, B_BLK)
    if B_pad != B:
        pad = B_pad - B
        x_tbe = jnp.pad(x_tbe, ((0, 0), (0, pad), (0, 0)))
        valid_tb1 = jnp.pad(valid_tb1, ((0, 0), (0, pad), (0, 0)))

    out_shapes = (
        jax.ShapeDtypeStruct((B_pad, T, H), jnp.float32),   # fw (batch-first)
        jax.ShapeDtypeStruct((B_pad, T, H), jnp.float32),   # bw (batch-first)
        jax.ShapeDtypeStruct((B_pad, H), jnp.float32),      # last_hidden[-2]
        jax.ShapeDtypeStruct((B_pad, H), jnp.float32),      # last_hidden[-1]
    )

    fw, bw, hf, hb = pl.pallas_call(
        _bilstm_kernel,
        grid=(B_pad // B_BLK,),
        in_specs=[
            pl.BlockSpec((T, B_BLK, 1), lambda i: (0, i, 0)),     # valid mask
            pl.BlockSpec((T, B_BLK, E), lambda i: (0, i, 0)),     # x
            pl.BlockSpec((E, 8 * H), lambda i: (0, 0)),           # wih_cat
            pl.BlockSpec((H, 4 * H), lambda i: (0, 0)),           # whh_f
            pl.BlockSpec((H, 4 * H), lambda i: (0, 0)),           # whh_b
            pl.BlockSpec((1, 8 * H), lambda i: (0, 0)),           # bias
        ],
        out_specs=(
            pl.BlockSpec((B_BLK, T, H), lambda i: (i, 0, 0)),
            pl.BlockSpec((B_BLK, T, H), lambda i: (i, 0, 0)),
            pl.BlockSpec((B_BLK, H), lambda i: (i, 0)),
            pl.BlockSpec((B_BLK, H), lambda i: (i, 0)),
        ),
        out_shape=out_shapes,
        scratch_shapes=[
            pltpu.VMEM((T, B_BLK, 8 * H), jnp.float32),   # hoisted x-gates
            pltpu.VMEM((T, B_BLK, H), jnp.float32),       # fw accumulator
            pltpu.VMEM((T, B_BLK, H), jnp.float32),       # bw accumulator
        ],
        compiler_params=pltpu.CompilerParams(
            dimension_semantics=("parallel",)),           # batch grid: v7x 2-TC
    )(valid_tb1, x_tbe, wih_cat, whh_f, whh_b, b_cat)

    if B_pad != B:
        fw, bw, hf, hb = fw[:B], bw[:B], hf[:B], hb[:B]
    return fw, bw, hf, hb


def init_params(key, vocab_size, embedding_size, hidden_size):
    bound = 1.0 / float(hidden_size) ** 0.5
    keys = jax.random.split(key, 9)

    def u(k_, shape):
        return jax.random.uniform(k_, shape, jnp.float32, -bound, bound)

    emb = jax.random.normal(keys[0], (vocab_size, embedding_size), jnp.float32)
    emb = emb.at[0].set(0.0)                    # padding_idx=0

    wih_f = u(keys[1], (embedding_size, 4 * hidden_size))
    whh_f = u(keys[2], (hidden_size, 4 * hidden_size))
    b_f = u(keys[3], (1, 4 * hidden_size)) + u(keys[4], (1, 4 * hidden_size))
    wih_b = u(keys[5], (embedding_size, 4 * hidden_size))
    whh_b = u(keys[6], (hidden_size, 4 * hidden_size))
    b_b = u(keys[7], (1, 4 * hidden_size)) + u(keys[8], (1, 4 * hidden_size))

    return {
        "embedding": emb,
        # Kernel weight layout: pre-transposed to [in, 4H] and gate-reordered
        # to (i, f, o, g).  (PyTorch stores [4H, in] with gate order i,f,g,o;
        # converting an nn.LSTM would be transpose + permute the gate blocks.)
        # Matmul operands kept in bf16 (f32 accumulation on the MXU).
        "wih_cat": jnp.concatenate([wih_f, wih_b], axis=1).astype(jnp.bfloat16),
        "whh_f": whh_f.astype(jnp.bfloat16),
        "whh_b": whh_b.astype(jnp.bfloat16),
        "b_cat": jnp.concatenate([b_f, b_b], axis=1),      # fused ih+hh bias
    }


@jax.jit
def init_embed_forward(text, params):
    """Returns (mask, text_length, fw, bw, last_hidden_fw, last_hidden_bw)."""
    B, T = text.shape
    mask = (text != 0).astype(jnp.float32)                        # [B, T] (spec: != 0)
    text_length = jnp.sum((text > 0).astype(jnp.int32), axis=-1)  # [B]    (spec: > 0)

    # Gather directly time-major (transposed indices) -> no separate HBM
    # transpose of the embedded input.
    x_tbe = jnp.take(params["embedding"], text.T, axis=0)         # [T, B, E] f32
    # nn.Dropout at inference is identity.
    # TODO(synk): training-mode dropout (Bernoulli mask + 1/(1-p) scale) not applied.

    # Packed-sequence validity mask, time-major, consumed inside the kernel.
    valid_tb1 = (jnp.arange(T)[:, None] < text_length[None, :]
                 ).astype(jnp.float32)[:, :, None]                # [T, B, 1]

    fw, bw, h_fw, h_bw = bilstm_packed(
        x_tbe, valid_tb1,
        params["wih_cat"], params["whh_f"], params["whh_b"], params["b_cat"])

    return mask, text_length, fw, bw, h_fw, h_bw


if __name__ == "__main__":
    B, T = 8, 8
    vocab_size, embedding_size, hidden_size = 20, 32, 32

    key = jax.random.PRNGKey(0)
    k_params, k_tok = jax.random.split(key)
    params = init_params(k_params, vocab_size, embedding_size, hidden_size)

    # Sequences with end-padding (token id 0), every length >= 1.
    lengths = jnp.array([8, 5, 3, 8, 1, 6, 4, 7], jnp.int32)
    tokens = jax.random.randint(k_tok, (B, T), 1, vocab_size, jnp.int32)
    text = jnp.where(jnp.arange(T)[None, :] < lengths[:, None], tokens, 0)

    out = init_embed_forward(text, params)
    out = jax.block_until_ready(out)
    mask, text_length, fw, bw, h_fw, h_bw = out

    # pad_packed_sequence pads only to the batch max length — trim host-side.
    t_max = int(jnp.max(text_length))
    fw = fw[:, :t_max]
    bw = bw[:, :t_max]

    assert mask.shape == (B, T)
    assert text_length.shape == (B,)
    assert fw.shape == (B, t_max, hidden_size)
    assert bw.shape == (B, t_max, hidden_size)
    assert h_fw.shape == (B, hidden_size)
    assert h_bw.shape == (B, hidden_size)

    # Packed-sequence semantics sanity checks.
    fw_np, bw_np = np.asarray(fw), np.asarray(bw)
    hf_np, hb_np = np.asarray(h_fw), np.asarray(h_bw)
    lens_np = np.asarray(text_length)
    for b in range(B):
        L = int(lens_np[b])
        if L < t_max:
            assert np.allclose(fw_np[b, L:], 0.0)
            assert np.allclose(bw_np[b, L:], 0.0)
        assert np.allclose(hf_np[b], fw_np[b, L - 1], atol=1e-5)
        assert np.allclose(hb_np[b], bw_np[b, 0], atol=1e-5)

    print("KERNEL_OK")
</pallas_src>

<mosaic_0001>
module attributes {stable_mosaic.version = 11 : i64} {
  func.func @_bilstm_kernel(%arg0: i32, %arg1: memref<8x8x1xf32, #tpu.memory_space<vmem>>, %arg2: memref<8x8x32xf32, #tpu.memory_space<vmem>>, %arg3: memref<32x256xbf16, #tpu.memory_space<vmem>>, %arg4: memref<32x128xbf16, #tpu.memory_space<vmem>>, %arg5: memref<32x128xbf16, #tpu.memory_space<vmem>>, %arg6: memref<1x256xf32, #tpu.memory_space<vmem>>, %arg7: memref<8x8x32xf32, #tpu.memory_space<vmem>>, %arg8: memref<8x8x32xf32, #tpu.memory_space<vmem>>, %arg9: memref<8x32xf32, #tpu.memory_space<vmem>>, %arg10: memref<8x32xf32, #tpu.memory_space<vmem>>, %arg11: memref<8x8x256xf32, #tpu.memory_space<vmem>>, %arg12: memref<8x8x32xf32, #tpu.memory_space<vmem>>, %arg13: memref<8x8x32xf32, #tpu.memory_space<vmem>>) attributes {dimension_semantics = [#tpu.dimension_semantics<parallel>], iteration_bounds = array<i64: 1>, scalar_prefetch = 0 : i64, scratch_operands = 3 : i64, tpu.core_type = #tpu.core_type<tc>, window_params = [{transform_indices = @transform_0, window_bounds = array<i64: 8, 8, 1>}, {transform_indices = @transform_1, window_bounds = array<i64: 8, 8, 32>}, {pipeline_mode = #tpu.pipeline_mode<synchronous>, transform_indices = @transform_2, window_bounds = array<i64: 32, 256>}, {pipeline_mode = #tpu.pipeline_mode<synchronous>, transform_indices = @transform_3, window_bounds = array<i64: 32, 128>}, {pipeline_mode = #tpu.pipeline_mode<synchronous>, transform_indices = @transform_4, window_bounds = array<i64: 32, 128>}, {pipeline_mode = #tpu.pipeline_mode<synchronous>, transform_indices = @transform_5, window_bounds = array<i64: 1, 256>}, {transform_indices = @transform_6, window_bounds = array<i64: 8, 8, 32>}, {transform_indices = @transform_7, window_bounds = array<i64: 8, 8, 32>}, {transform_indices = @transform_8, window_bounds = array<i64: 8, 32>}, {transform_indices = @transform_9, window_bounds = array<i64: 8, 32>}]} {
    %c0 = arith.constant 0 : index
    %c0_0 = arith.constant 0 : index
    %c0_1 = arith.constant 0 : index
    %0 = vector.load %arg2[%c0, %c0_0, %c0_1] : memref<8x8x32xf32, #tpu.memory_space<vmem>>, vector<8x8x32xf32>
    %1 = vector.shape_cast %0 : vector<8x8x32xf32> to vector<64x32xf32>
    %2 = arith.truncf %1 : vector<64x32xf32> to vector<64x32xbf16>
    %c0_2 = arith.constant 0 : index
    %c0_3 = arith.constant 0 : index
    %3 = vector.load %arg3[%c0_2, %c0_3] : memref<32x256xbf16, #tpu.memory_space<vmem>>, vector<32x256xbf16>
    %cst = arith.constant dense<0.000000e+00> : vector<64x256xf32>
    %4 = tpu.matmul %2, %3, %cst {dimension_numbers = #tpu.dot_dimension_numbers<[1], [0], [0], [1], [0, 0, 1, 1], [], []>} : vector<64x32xbf16>, vector<32x256xbf16>, vector<64x256xf32> -> vector<64x256xf32>
    %c0_4 = arith.constant 0 : index
    %c0_5 = arith.constant 0 : index
    %5 = vector.load %arg6[%c0_4, %c0_5] : memref<1x256xf32, #tpu.memory_space<vmem>>, vector<1x256xf32>
    %6 = vector.broadcast %5 : vector<1x256xf32> to vector<64x256xf32>
    %7 = arith.addf %4, %6 : vector<64x256xf32>
    %8 = vector.shape_cast %7 : vector<64x256xf32> to vector<8x8x256xf32>
    %c0_6 = arith.constant 0 : index
    %c0_7 = arith.constant 0 : index
    %c0_8 = arith.constant 0 : index
    %9 = vector.load %arg11[%c0_6, %c0_7, %c0_8] : memref<8x8x256xf32, #tpu.memory_space<vmem>>, vector<8x8x256xf32>
    tpu.vector_store %arg11[%c0_6, %c0_7, %c0_8], %8 {strides = array<i32>} : memref<8x8x256xf32, #tpu.memory_space<vmem>>, vector<8x8x256xf32>,
    %c0_9 = arith.constant 0 : index
    %c0_10 = arith.constant 0 : index
    %10 = vector.load %arg4[%c0_9, %c0_10] : memref<32x128xbf16, #tpu.memory_space<vmem>>, vector<32x128xbf16>
    %c0_11 = arith.constant 0 : index
    %c0_12 = arith.constant 0 : index
    %11 = vector.load %arg5[%c0_11, %c0_12] : memref<32x128xbf16, #tpu.memory_space<vmem>>, vector<32x128xbf16>
    %cst_13 = arith.constant 0.000000e+00 : f32
    %12 = vector.broadcast %cst_13 : f32 to vector<8x32xf32>
    %c0_i32 = arith.constant 0 : i32
    %c7_i32 = arith.constant 7 : i32
    %13 = arith.subi %c7_i32, %c0_i32 : i32
    %14 = arith.index_cast %c0_i32 : i32 to index
    %c0_14 = arith.constant 0 : index
    %c0_15 = arith.constant 0 : index
    %15 = vector.load %arg11[%14, %c0_14, %c0_15] : memref<8x8x256xf32, #tpu.memory_space<vmem>>, vector<1x8x256xf32>
    %16 = vector.shape_cast %15 : vector<1x8x256xf32> to vector<8x256xf32>
    %17 = arith.index_cast %13 : i32 to index
    %c0_16 = arith.constant 0 : index
    %c0_17 = arith.constant 0 : index
    %18 = vector.load %arg11[%17, %c0_16, %c0_17] : memref<8x8x256xf32, #tpu.memory_space<vmem>>, vector<1x8x256xf32>
    %19 = vector.shape_cast %18 : vector<1x8x256xf32> to vector<8x256xf32>
    %20 = arith.index_cast %c0_i32 : i32 to index
    %c0_18 = arith.constant 0 : index
    %c0_19 = arith.constant 0 : index
    %21 = vector.load %arg1[%20, %c0_18, %c0_19] : memref<8x8x1xf32, #tpu.memory_space<vmem>>, vector<1x8x1xf32>
    %22 = vector.shape_cast %21 : vector<1x8x1xf32> to vector<8x1xf32>
    %23 = arith.index_cast %13 : i32 to index
    %c0_20 = arith.constant 0 : index
    %c0_21 = arith.constant 0 : index
    %24 = vector.load %arg1[%23, %c0_20, %c0_21] : memref<8x8x1xf32, #tpu.memory_space<vmem>>, vector<1x8x1xf32>
    %25 = vector.shape_cast %24 : vector<1x8x1xf32> to vector<8x1xf32>
    %26 = vector.extract_strided_slice %16 {offsets = [0, 0], sizes = [8, 128], strides = [1, 1]} : vector<8x256xf32> to vector<8x128xf32>
    %27 = arith.truncf %12 : vector<8x32xf32> to vector<8x32xbf16>
    %cst_22 = arith.constant dense<0.000000e+00> : vector<8x128xf32>
    %28 = tpu.matmul %27, %10, %cst_22 {dimension_numbers = #tpu.dot_dimension_numbers<[1], [0], [0], [1], [0, 0, 1, 1], [], []>} : vector<8x32xbf16>, vector<32x128xbf16>, vector<8x128xf32> -> vector<8x128xf32>
    %29 = arith.addf %26, %28 : vector<8x128xf32>
    %30 = vector.extract_strided_slice %29 {offsets = [0, 0], sizes = [8, 96], strides = [1, 1]} : vector<8x128xf32> to vector<8x96xf32>
    %31 = arith.negf %30 : vector<8x96xf32>
    %32 = math.exp %31 : vector<8x96xf32>
    %cst_23 = arith.constant 1.000000e+00 : f32
    %33 = vector.broadcast %cst_23 : f32 to vector<8x96xf32>
    %34 = arith.addf %33, %32 : vector<8x96xf32>
    %35 = arith.divf %33, %34 : vector<8x96xf32>
    %36 = vector.extract_strided_slice %29 {offsets = [0, 96], sizes = [8, 32], strides = [1, 1]} : vector<8x128xf32> to vector<8x32xf32>
    %37 = math.tanh %36 : vector<8x32xf32>
    %38 = vector.extract_strided_slice %35 {offsets = [0, 0], sizes = [8, 32], strides = [1, 1]} : vector<8x96xf32> to vector<8x32xf32>
    %39 = vector.extract_strided_slice %35 {offsets = [0, 32], sizes = [8, 32], strides = [1, 1]} : vector<8x96xf32> to vector<8x32xf32>
    %40 = vector.extract_strided_slice %35 {offsets = [0, 64], sizes = [8, 32], strides = [1, 1]} : vector<8x96xf32> to vector<8x32xf32>
    %41 = arith.mulf %39, %12 : vector<8x32xf32>
    %42 = arith.mulf %38, %37 : vector<8x32xf32>
    %43 = arith.addf %41, %42 : vector<8x32xf32>
    %44 = math.tanh %43 : vector<8x32xf32>
    %45 = arith.mulf %40, %44 : vector<8x32xf32>
    %46 = vector.extract_strided_slice %19 {offsets = [0, 128], sizes = [8, 128], strides = [1, 1]} : vector<8x256xf32> to vector<8x128xf32>
    %47 = arith.truncf %12 : vector<8x32xf32> to vector<8x32xbf16>
    %cst_24 = arith.constant dense<0.000000e+00> : vector<8x128xf32>
    %48 = tpu.matmul %47, %11, %cst_24 {dimension_numbers = #tpu.dot_dimension_numbers<[1], [0], [0], [1], [0, 0, 1, 1], [], []>} : vector<8x32xbf16>, vector<32x128xbf16>, vector<8x128xf32> -> vector<8x128xf32>
    %49 = arith.addf %46, %48 : vector<8x128xf32>
    %50 = vector.extract_strided_slice %49 {offsets = [0, 0], sizes = [8, 96], strides = [1, 1]} : vector<8x128xf32> to vector<8x96xf32>
    %51 = arith.negf %50 : vector<8x96xf32>
    %52 = math.exp %51 : vector<8x96xf32>
    %cst_25 = arith.constant 1.000000e+00 : f32
    %53 = vector.broadcast %cst_25 : f32 to vector<8x96xf32>
    %54 = arith.addf %53, %52 : vector<8x96xf32>
    %55 = arith.divf %53, %54 : vector<8x96xf32>
    %56 = vector.extract_strided_slice %49 {offsets = [0, 96], sizes = [8, 32], strides = [1, 1]} : vector<8x128xf32> to vector<8x32xf32>
    %57 = math.tanh %56 : vector<8x32xf32>
    %58 = vector.extract_strided_slice %55 {offsets = [0, 0], sizes = [8, 32], strides = [1, 1]} : vector<8x96xf32> to vector<8x32xf32>
    %59 = vector.extract_strided_slice %55 {offsets = [0, 32], sizes = [8, 32], strides = [1, 1]} : vector<8x96xf32> to vector<8x32xf32>
    %60 = vector.extract_strided_slice %55 {offsets = [0, 64], sizes = [8, 32], strides = [1, 1]} : vector<8x96xf32> to vector<8x32xf32>
    %61 = arith.mulf %59, %12 : vector<8x32xf32>
    %62 = arith.mulf %58, %57 : vector<8x32xf32>
    %63 = arith.addf %61, %62 : vector<8x32xf32>
    %64 = math.tanh %63 : vector<8x32xf32>
    %65 = arith.mulf %60, %64 : vector<8x32xf32>
    %66 = vector.broadcast %22 : vector<8x1xf32> to vector<8x32xf32>
    %67 = arith.mulf %66, %45 : vector<8x32xf32>
    %68 = arith.index_cast %c0_i32 : i32 to index
    %c0_26 = arith.constant 0 : index
    %c0_27 = arith.constant 0 : index
    %69 = vector.load %arg12[%68, %c0_26, %c0_27] : memref<8x8x32xf32, #tpu.memory_space<vmem>>, vector<1x8x32xf32>
    %70 = vector.shape_cast %69 : vector<1x8x32xf32> to vector<8x32xf32>
    %71 = vector.shape_cast %67 : vector<8x32xf32> to vector<1x8x32xf32>
    tpu.vector_store %arg12[%68, %c0_26, %c0_27], %71 {strides = array<i32>} : memref<8x8x32xf32, #tpu.memory_space<vmem>>, vector<1x8x32xf32>,
    %72 = vector.broadcast %25 : vector<8x1xf32> to vector<8x32xf32>
    %73 = arith.mulf %72, %65 : vector<8x32xf32>
    %74 = arith.index_cast %13 : i32 to index
    %c0_28 = arith.constant 0 : index
    %c0_29 = arith.constant 0 : index
    %75 = vector.load %arg13[%74, %c0_28, %c0_29] : memref<8x8x32xf32, #tpu.memory_space<vmem>>, vector<1x8x32xf32>
    %76 = vector.shape_cast %75 : vector<1x8x32xf32> to vector<8x32xf32>
    %77 = vector.shape_cast %73 : vector<8x32xf32> to vector<1x8x32xf32>
    tpu.vector_store %arg13[%74, %c0_28, %c0_29], %77 {strides = array<i32>} : memref<8x8x32xf32, #tpu.memory_space<vmem>>, vector<1x8x32xf32>,
    %78 = arith.subf %45, %12 : vector<8x32xf32>
    %79 = vector.broadcast %22 : vector<8x1xf32> to vector<8x32xf32>
    %80 = arith.mulf %79, %78 : vector<8x32xf32>
    %81 = arith.addf %12, %80 : vector<8x32xf32>
    %82 = arith.subf %43, %12 : vector<8x32xf32>
    %83 = vector.broadcast %22 : vector<8x1xf32> to vector<8x32xf32>
    %84 = arith.mulf %83, %82 : vector<8x32xf32>
    %85 = arith.addf %12, %84 : vector<8x32xf32>
    %86 = arith.subf %65, %12 : vector<8x32xf32>
    %87 = vector.broadcast %25 : vector<8x1xf32> to vector<8x32xf32>
    %88 = arith.mulf %87, %86 : vector<8x32xf32>
    %89 = arith.addf %12, %88 : vector<8x32xf32>
    %90 = arith.subf %63, %12 : vector<8x32xf32>
    %91 = vector.broadcast %25 : vector<8x1xf32> to vector<8x32xf32>
    %92 = arith.mulf %91, %90 : vector<8x32xf32>
    %93 = arith.addf %12, %92 : vector<8x32xf32>
    %c1_i32 = arith.constant 1 : i32
    %c7_i32_30 = arith.constant 7 : i32
    %94 = arith.subi %c7_i32_30, %c1_i32 : i32
    %95 = arith.index_cast %c1_i32 : i32 to index
    %c0_31 = arith.constant 0 : index
    %c0_32 = arith.constant 0 : index
    %96 = vector.load %arg11[%95, %c0_31, %c0_32] : memref<8x8x256xf32, #tpu.memory_space<vmem>>, vector<1x8x256xf32>
    %97 = vector.shape_cast %96 : vector<1x8x256xf32> to vector<8x256xf32>
    %98 = arith.index_cast %94 : i32 to index
    %c0_33 = arith.constant 0 : index
    %c0_34 = arith.constant 0 : index
    %99 = vector.load %arg11[%98, %c0_33, %c0_34] : memref<8x8x256xf32, #tpu.memory_space<vmem>>, vector<1x8x256xf32>
    %100 = vector.shape_cast %99 : vector<1x8x256xf32> to vector<8x256xf32>
    %101 = arith.index_cast %c1_i32 : i32 to index
    %c0_35 = arith.constant 0 : index
    %c0_36 = arith.constant 0 : index
    %102 = vector.load %arg1[%101, %c0_35, %c0_36] : memref<8x8x1xf32, #tpu.memory_space<vmem>>, vector<1x8x1xf32>
    %103 = vector.shape_cast %102 : vector<1x8x1xf32> to vector<8x1xf32>
    %104 = arith.index_cast %94 : i32 to index
    %c0_37 = arith.constant 0 : index
    %c0_38 = arith.constant 0 : index
    %105 = vector.load %arg1[%104, %c0_37, %c0_38] : memref<8x8x1xf32, #tpu.memory_space<vmem>>, vector<1x8x1xf32>
    %106 = vector.shape_cast %105 : vector<1x8x1xf32> to vector<8x1xf32>
    %107 = vector.extract_strided_slice %97 {offsets = [0, 0], sizes = [8, 128], strides = [1, 1]} : vector<8x256xf32> to vector<8x128xf32>
    %108 = arith.truncf %81 : vector<8x32xf32> to vector<8x32xbf16>
    %cst_39 = arith.constant dense<0.000000e+00> : vector<8x128xf32>
    %109 = tpu.matmul %108, %10, %cst_39 {dimension_numbers = #tpu.dot_dimension_numbers<[1], [0], [0], [1], [0, 0, 1, 1], [], []>} : vector<8x32xbf16>, vector<32x128xbf16>, vector<8x128xf32> -> vector<8x128xf32>
    %110 = arith.addf %107, %109 : vector<8x128xf32>
    %111 = vector.extract_strided_slice %110 {offsets = [0, 0], sizes = [8, 96], strides = [1, 1]} : vector<8x128xf32> to vector<8x96xf32>
    %112 = arith.negf %111 : vector<8x96xf32>
    %113 = math.exp %112 : vector<8x96xf32>
    %cst_40 = arith.constant 1.000000e+00 : f32
    %114 = vector.broadcast %cst_40 : f32 to vector<8x96xf32>
    %115 = arith.addf %114, %113 : vector<8x96xf32>
    %116 = arith.divf %114, %115 : vector<8x96xf32>
    %117 = vector.extract_strided_slice %110 {offsets = [0, 96], sizes = [8, 32], strides = [1, 1]} : vector<8x128xf32> to vector<8x32xf32>
    %118 = math.tanh %117 : vector<8x32xf32>
    %119 = vector.extract_strided_slice %116 {offsets = [0, 0], sizes = [8, 32], strides = [1, 1]} : vector<8x96xf32> to vector<8x32xf32>
    %120 = vector.extract_strided_slice %116 {offsets = [0, 32], sizes = [8, 32], strides = [1, 1]} : vector<8x96xf32> to vector<8x32xf32>
    %121 = vector.extract_strided_slice %116 {offsets = [0, 64], sizes = [8, 32], strides = [1, 1]} : vector<8x96xf32> to vector<8x32xf32>
    %122 = arith.mulf %120, %85 : vector<8x32xf32>
    %123 = arith.mulf %119, %118 : vector<8x32xf32>
    %124 = arith.addf %122, %123 : vector<8x32xf32>
    %125 = math.tanh %124 : vector<8x32xf32>
    %126 = arith.mulf %121, %125 : vector<8x32xf32>
    %127 = vector.extract_strided_slice %100 {offsets = [0, 128], sizes = [8, 128], strides = [1, 1]} : vector<8x256xf32> to vector<8x128xf32>
    %128 = arith.truncf %89 : vector<8x32xf32> to vector<8x32xbf16>
    %cst_41 = arith.constant dense<0.000000e+00> : vector<8x128xf32>
    %129 = tpu.matmul %128, %11, %cst_41 {dimension_numbers = #tpu.dot_dimension_numbers<[1], [0], [0], [1], [0, 0, 1, 1], [], []>} : vector<8x32xbf16>, vector<32x128xbf16>, vector<8x128xf32> -> vector<8x128xf32>
    %130 = arith.addf %127, %129 : vector<8x128xf32>
    %131 = vector.extract_strided_slice %130 {offsets = [0, 0], sizes = [8, 96], strides = [1, 1]} : vector<8x128xf32> to vector<8x96xf32>
    %132 = arith.negf %131 : vector<8x96xf32>
    %133 = math.exp %132 : vector<8x96xf32>
    %cst_42 = arith.constant 1.000000e+00 : f32
    %134 = vector.broadcast %cst_42 : f32 to vector<8x96xf32>
    %135 = arith.addf %134, %133 : vector<8x96xf32>
    %136 = arith.divf %134, %135 : vector<8x96xf32>
    %137 = vector.extract_strided_slice %130 {offsets = [0, 96], sizes = [8, 32], strides = [1, 1]} : vector<8x128xf32> to vector<8x32xf32>
    %138 = math.tanh %137 : vector<8x32xf32>
    %139 = vector.extract_strided_slice %136 {offsets = [0, 0], sizes = [8, 32], strides = [1, 1]} : vector<8x96xf32> to vector<8x32xf32>
    %140 = vector.extract_strided_slice %136 {offsets = [0, 32], sizes = [8, 32], strides = [1, 1]} : vector<8x96xf32> to vector<8x32xf32>
    %141 = vector.extract_strided_slice %136 {offsets = [0, 64], sizes = [8, 32], strides = [1, 1]} : vector<8x96xf32> to vector<8x32xf32>
    %142 = arith.mulf %140, %93 : vector<8x32xf32>
    %143 = arith.mulf %139, %138 : vector<8x32xf32>
    %144 = arith.addf %142, %143 : vector<8x32xf32>
    %145 = math.tanh %144 : vector<8x32xf32>
    %146 = arith.mulf %141, %145 : vector<8x32xf32>
    %147 = vector.broadcast %103 : vector<8x1xf32> to vector<8x32xf32>
    %148 = arith.mulf %147, %126 : vector<8x32xf32>
    %149 = arith.index_cast %c1_i32 : i32 to index
    %c0_43 = arith.constant 0 : index
    %c0_44 = arith.constant 0 : index
    %150 = vector.load %arg12[%149, %c0_43, %c0_44] : memref<8x8x32xf32, #tpu.memory_space<vmem>>, vector<1x8x32xf32>
    %151 = vector.shape_cast %150 : vector<1x8x32xf32> to vector<8x32xf32>
    %152 = vector.shape_cast %148 : vector<8x32xf32> to vector<1x8x32xf32>
    tpu.vector_store %arg12[%149, %c0_43, %c0_44], %152 {strides = array<i32>} : memref<8x8x32xf32, #tpu.memory_space<vmem>>, vector<1x8x32xf32>,
    %153 = vector.broadcast %106 : vector<8x1xf32> to vector<8x32xf32>
    %154 = arith.mulf %153, %146 : vector<8x32xf32>
    %155 = arith.index_cast %94 : i32 to index
    %c0_45 = arith.constant 0 : index
    %c0_46 = arith.constant 0 : index
    %156 = vector.load %arg13[%155, %c0_45, %c0_46] : memref<8x8x32xf32, #tpu.memory_space<vmem>>, vector<1x8x32xf32>
    %157 = vector.shape_cast %156 : vector<1x8x32xf32> to vector<8x32xf32>
    %158 = vector.shape_cast %154 : vector<8x32xf32> to vector<1x8x32xf32>
    tpu.vector_store %arg13[%155, %c0_45, %c0_46], %158 {strides = array<i32>} : memref<8x8x32xf32, #tpu.memory_space<vmem>>, vector<1x8x32xf32>,
    %159 = arith.subf %126, %81 : vector<8x32xf32>
    %160 = vector.broadcast %103 : vector<8x1xf32> to vector<8x32xf32>
    %161 = arith.mulf %160, %159 : vector<8x32xf32>
    %162 = arith.addf %81, %161 : vector<8x32xf32>
    %163 = arith.subf %124, %85 : vector<8x32xf32>
    %164 = vector.broadcast %103 : vector<8x1xf32> to vector<8x32xf32>
    %165 = arith.mulf %164, %163 : vector<8x32xf32>
    %166 = arith.addf %85, %165 : vector<8x32xf32>
    %167 = arith.subf %146, %89 : vector<8x32xf32>
    %168 = vector.broadcast %106 : vector<8x1xf32> to vector<8x32xf32>
    %169 = arith.mulf %168, %167 : vector<8x32xf32>
    %170 = arith.addf %89, %169 : vector<8x32xf32>
    %171 = arith.subf %144, %93 : vector<8x32xf32>
    %172 = vector.broadcast %106 : vector<8x1xf32> to vector<8x32xf32>
    %173 = arith.mulf %172, %171 : vector<8x32xf32>
    %174 = arith.addf %93, %173 : vector<8x32xf32>
    %c2_i32 = arith.constant 2 : i32
    %c7_i32_47 = arith.constant 7 : i32
    %175 = arith.subi %c7_i32_47, %c2_i32 : i32
    %176 = arith.index_cast %c2_i32 : i32 to index
    %c0_48 = arith.constant 0 : index
    %c0_49 = arith.constant 0 : index
    %177 = vector.load %arg11[%176, %c0_48, %c0_49] : memref<8x8x256xf32, #tpu.memory_space<vmem>>, vector<1x8x256xf32>
    %178 = vector.shape_cast %177 : vector<1x8x256xf32> to vector<8x256xf32>
    %179 = arith.index_cast %175 : i32 to index
    %c0_50 = arith.constant 0 : index
    %c0_51 = arith.constant 0 : index
    %180 = vector.load %arg11[%179, %c0_50, %c0_51] : memref<8x8x256xf32, #tpu.memory_space<vmem>>, vector<1x8x256xf32>
    %181 = vector.shape_cast %180 : vector<1x8x256xf32> to vector<8x256xf32>
    %182 = arith.index_cast %c2_i32 : i32 to index
    %c0_52 = arith.constant 0 : index
    %c0_53 = arith.constant 0 : index
    %183 = vector.load %arg1[%182, %c0_52, %c0_53] : memref<8x8x1xf32, #tpu.memory_space<vmem>>, vector<1x8x1xf32>
    %184 = vector.shape_cast %183 : vector<1x8x1xf32> to vector<8x1xf32>
    %185 = arith.index_cast %175 : i32 to index
    %c0_54 = arith.constant 0 : index
    %c0_55 = arith.constant 0 : index
    %186 = vector.load %arg1[%185, %c0_54, %c0_55] : memref<8x8x1xf32, #tpu.memory_space<vmem>>, vector<1x8x1xf32>
    %187 = vector.shape_cast %186 : vector<1x8x1xf32> to vector<8x1xf32>
    %188 = vector.extract_strided_slice %178 {offsets = [0, 0], sizes = [8, 128], strides = [1, 1]} : vector<8x256xf32> to vector<8x128xf32>
    %189 = arith.truncf %162 : vector<8x32xf32> to vector<8x32xbf16>
    %cst_56 = arith.constant dense<0.000000e+00> : vector<8x128xf32>
    %190 = tpu.matmul %189, %10, %cst_56 {dimension_numbers = #tpu.dot_dimension_numbers<[1], [0], [0], [1], [0, 0, 1, 1], [], []>} : vector<8x32xbf16>, vector<32x128xbf16>, vector<8x128xf32> -> vector<8x128xf32>
    %191 = arith.addf %188, %190 : vector<8x128xf32>
    %192 = vector.extract_strided_slice %191 {offsets = [0, 0], sizes = [8, 96], strides = [1, 1]} : vector<8x128xf32> to vector<8x96xf32>
    %193 = arith.negf %192 : vector<8x96xf32>
    %194 = math.exp %193 : vector<8x96xf32>
    %cst_57 = arith.constant 1.000000e+00 : f32
    %195 = vector.broadcast %cst_57 : f32 to vector<8x96xf32>
    %196 = arith.addf %195, %194 : vector<8x96xf32>
    %197 = arith.divf %195, %196 : vector<8x96xf32>
    %198 = vector.extract_strided_slice %191 {offsets = [0, 96], sizes = [8, 32], strides = [1, 1]} : vector<8x128xf32> to vector<8x32xf32>
    %199 = math.tanh %198 : vector<8x32xf32>
    %200 = vector.extract_strided_slice %197 {offsets = [0, 0], sizes = [8, 32], strides = [1, 1]} : vector<8x96xf32> to vector<8x32xf32>
    %201 = vector.extract_strided_slice %197 {offsets = [0, 32], sizes = [8, 32], strides = [1, 1]} : vector<8x96xf32> to vector<8x32xf32>
    %202 = vector.extract_strided_slice %197 {offsets = [0, 64], sizes = [8, 32], strides = [1, 1]} : vector<8x96xf32> to vector<8x32xf32>
    %203 = arith.mulf %201, %166 : vector<8x32xf32>
    %204 = arith.mulf %200, %199 : vector<8x32xf32>
    %205 = arith.addf %203, %204 : vector<8x32xf32>
    %206 = math.tanh %205 : vector<8x32xf32>
    %207 = arith.mulf %202, %206 : vector<8x32xf32>
    %208 = vector.extract_strided_slice %181 {offsets = [0, 128], sizes = [8, 128], strides = [1, 1]} : vector<8x256xf32> to vector<8x128xf32>
    %209 = arith.truncf %170 : vector<8x32xf32> to vector<8x32xbf16>
    %cst_58 = arith.constant dense<0.000000e+00> : vector<8x128xf32>
    %210 = tpu.matmul %209, %11, %cst_58 {dimension_numbers = #tpu.dot_dimension_numbers<[1], [0], [0], [1], [0, 0, 1, 1], [], []>} : vector<8x32xbf16>, vector<32x128xbf16>, vector<8x128xf32> -> vector<8x128xf32>
    %211 = arith.addf %208, %210 : vector<8x128xf32>
    %212 = vector.extract_strided_slice %211 {offsets = [0, 0], sizes = [8, 96], strides = [1, 1]} : vector<8x128xf32> to vector<8x96xf32>
    %213 = arith.negf %212 : vector<8x96xf32>
    %214 = math.exp %213 : vector<8x96xf32>
    %cst_59 = arith.constant 1.000000e+00 : f32
    %215 = vector.broadcast %cst_59 : f32 to vector<8x96xf32>
    %216 = arith.addf %215, %214 : vector<8x96xf32>
    %217 = arith.divf %215, %216 : vector<8x96xf32>
    %218 = vector.extract_strided_slice %211 {offsets = [0, 96], sizes = [8, 32], strides = [1, 1]} : vector<8x128xf32> to vector<8x32xf32>
    %219 = math.tanh %218 : vector<8x32xf32>
    %220 = vector.extract_strided_slice %217 {offsets = [0, 0], sizes = [8, 32], strides = [1, 1]} : vector<8x96xf32> to vector<8x32xf32>
    %221 = vector.extract_strided_slice %217 {offsets = [0, 32], sizes = [8, 32], strides = [1, 1]} : vector<8x96xf32> to vector<8x32xf32>
    %222 = vector.extract_strided_slice %217 {offsets = [0, 64], sizes = [8, 32], strides = [1, 1]} : vector<8x96xf32> to vector<8x32xf32>
    %223 = arith.mulf %221, %174 : vector<8x32xf32>
    %224 = arith.mulf %220, %219 : vector<8x32xf32>
    %225 = arith.addf %223, %224 : vector<8x32xf32>
    %226 = math.tanh %225 : vector<8x32xf32>
    %227 = arith.mulf %222, %226 : vector<8x32xf32>
    %228 = vector.broadcast %184 : vector<8x1xf32> to vector<8x32xf32>
    %229 = arith.mulf %228, %207 : vector<8x32xf32>
    %230 = arith.index_cast %c2_i32 : i32 to index
    %c0_60 = arith.constant 0 : index
    %c0_61 = arith.constant 0 : index
    %231 = vector.load %arg12[%230, %c0_60, %c0_61] : memref<8x8x32xf32, #tpu.memory_space<vmem>>, vector<1x8x32xf32>
    %232 = vector.shape_cast %231 : vector<1x8x32xf32> to vector<8x32xf32>
    %233 = vector.shape_cast %229 : vector<8x32xf32> to vector<1x8x32xf32>
    tpu.vector_store %arg12[%230, %c0_60, %c0_61], %233 {strides = array<i32>} : memref<8x8x32xf32, #tpu.memory_space<vmem>>, vector<1x8x32xf32>,
    %234 = vector.broadcast %187 : vector<8x1xf32> to vector<8x32xf32>
    %235 = arith.mulf %234, %227 : vector<8x32xf32>
    %236 = arith.index_cast %175 : i32 to index
    %c0_62 = arith.constant 0 : index
    %c0_63 = arith.constant 0 : index
    %237 = vector.load %arg13[%236, %c0_62, %c0_63] : memref<8x8x32xf32, #tpu.memory_space<vmem>>, vector<1x8x32xf32>
    %238 = vector.shape_cast %237 : vector<1x8x32xf32> to vector<8x32xf32>
    %239 = vector.shape_cast %235 : vector<8x32xf32> to vector<1x8x32xf32>
    tpu.vector_store %arg13[%236, %c0_62, %c0_63], %239 {strides = array<i32>} : memref<8x8x32xf32, #tpu.memory_space<vmem>>, vector<1x8x32xf32>,
    %240 = arith.subf %207, %162 : vector<8x32xf32>
    %241 = vector.broadcast %184 : vector<8x1xf32> to vector<8x32xf32>
    %242 = arith.mulf %241, %240 : vector<8x32xf32>
    %243 = arith.addf %162, %242 : vector<8x32xf32>
    %244 = arith.subf %205, %166 : vector<8x32xf32>
    %245 = vector.broadcast %184 : vector<8x1xf32> to vector<8x32xf32>
    %246 = arith.mulf %245, %244 : vector<8x32xf32>
    %247 = arith.addf %166, %246 : vector<8x32xf32>
    %248 = arith.subf %227, %170 : vector<8x32xf32>
    %249 = vector.broadcast %187 : vector<8x1xf32> to vector<8x32xf32>
    %250 = arith.mulf %249, %248 : vector<8x32xf32>
    %251 = arith.addf %170, %250 : vector<8x32xf32>
    %252 = arith.subf %225, %174 : vector<8x32xf32>
    %253 = vector.broadcast %187 : vector<8x1xf32> to vector<8x32xf32>
    %254 = arith.mulf %253, %252 : vector<8x32xf32>
    %255 = arith.addf %174, %254 : vector<8x32xf32>
    %c3_i32 = arith.constant 3 : i32
    %c7_i32_64 = arith.constant 7 : i32
    %256 = arith.subi %c7_i32_64, %c3_i32 : i32
    %257 = arith.index_cast %c3_i32 : i32 to index
    %c0_65 = arith.constant 0 : index
    %c0_66 = arith.constant 0 : index
    %258 = vector.load %arg11[%257, %c0_65, %c0_66] : memref<8x8x256xf32, #tpu.memory_space<vmem>>, vector<1x8x256xf32>
    %259 = vector.shape_cast %258 : vector<1x8x256xf32> to vector<8x256xf32>
    %260 = arith.index_cast %256 : i32 to index
    %c0_67 = arith.constant 0 : index
    %c0_68 = arith.constant 0 : index
    %261 = vector.load %arg11[%260, %c0_67, %c0_68] : memref<8x8x256xf32, #tpu.memory_space<vmem>>, vector<1x8x256xf32>
    %262 = vector.shape_cast %261 : vector<1x8x256xf32> to vector<8x256xf32>
    %263 = arith.index_cast %c3_i32 : i32 to index
    %c0_69 = arith.constant 0 : index
    %c0_70 = arith.constant 0 : index
    %264 = vector.load %arg1[%263, %c0_69, %c0_70] : memref<8x8x1xf32, #tpu.memory_space<vmem>>, vector<1x8x1xf32>
    %265 = vector.shape_cast %264 : vector<1x8x1xf32> to vector<8x1xf32>
    %266 = arith.index_cast %256 : i32 to index
    %c0_71 = arith.constant 0 : index
    %c0_72 = arith.constant 0 : index
    %267 = vector.load %arg1[%266, %c0_71, %c0_72] : memref<8x8x1xf32, #tpu.memory_space<vmem>>, vector<1x8x1xf32>
    %268 = vector.shape_cast %267 : vector<1x8x1xf32> to vector<8x1xf32>
    %269 = vector.extract_strided_slice %259 {offsets = [0, 0], sizes = [8, 128], strides = [1, 1]} : vector<8x256xf32> to vector<8x128xf32>
    %270 = arith.truncf %243 : vector<8x32xf32> to vector<8x32xbf16>
    %cst_73 = arith.constant dense<0.000000e+00> : vector<8x128xf32>
    %271 = tpu.matmul %270, %10, %cst_73 {dimension_numbers = #tpu.dot_dimension_numbers<[1], [0], [0], [1], [0, 0, 1, 1], [], []>} : vector<8x32xbf16>, vector<32x128xbf16>, vector<8x128xf32> -> vector<8x128xf32>
    %272 = arith.addf %269, %271 : vector<8x128xf32>
    %273 = vector.extract_strided_slice %272 {offsets = [0, 0], sizes = [8, 96], strides = [1, 1]} : vector<8x128xf32> to vector<8x96xf32>
    %274 = arith.negf %273 : vector<8x96xf32>
    %275 = math.exp %274 : vector<8x96xf32>
    %cst_74 = arith.constant 1.000000e+00 : f32
    %276 = vector.broadcast %cst_74 : f32 to vector<8x96xf32>
    %277 = arith.addf %276, %275 : vector<8x96xf32>
    %278 = arith.divf %276, %277 : vector<8x96xf32>
    %279 = vector.extract_strided_slice %272 {offsets = [0, 96], sizes = [8, 32], strides = [1, 1]} : vector<8x128xf32> to vector<8x32xf32>
    %280 = math.tanh %279 : vector<8x32xf32>
    %281 = vector.extract_strided_slice %278 {offsets = [0, 0], sizes = [8, 32], strides = [1, 1]} : vector<8x96xf32> to vector<8x32xf32>
    %282 = vector.extract_strided_slice %278 {offsets = [0, 32], sizes = [8, 32], strides = [1, 1]} : vector<8x96xf32> to vector<8x32xf32>
    %283 = vector.extract_strided_slice %278 {offsets = [0, 64], sizes = [8, 32], strides = [1, 1]} : vector<8x96xf32> to vector<8x32xf32>
    %284 = arith.mulf %282, %247 : vector<8x32xf32>
    %285 = arith.mulf %281, %280 : vector<8x32xf32>
    %286 = arith.addf %284, %285 : vector<8x32xf32>
    %287 = math.tanh %286 : vector<8x32xf32>
    %288 = arith.mulf %283, %287 : vector<8x32xf32>
    %289 = vector.extract_strided_slice %262 {offsets = [0, 128], sizes = [8, 128], strides = [1, 1]} : vector<8x256xf32> to vector<8x128xf32>
    %290 = arith.truncf %251 : vector<8x32xf32> to vector<8x32xbf16>
    %cst_75 = arith.constant dense<0.000000e+00> : vector<8x128xf32>
    %291 = tpu.matmul %290, %11, %cst_75 {dimension_numbers = #tpu.dot_dimension_numbers<[1], [0], [0], [1], [0, 0, 1, 1], [], []>} : vector<8x32xbf16>, vector<32x128xbf16>, vector<8x128xf32> -> vector<8x128xf32>
    %292 = arith.addf %289, %291 : vector<8x128xf32>
    %293 = vector.extract_strided_slice %292 {offsets = [0, 0], sizes = [8, 96], strides = [1, 1]} : vector<8x128xf32> to vector<8x96xf32>
    %294 = arith.negf %293 : vector<8x96xf32>
    %295 = math.exp %294 : vector<8x96xf32>
    %cst_76 = arith.constant 1.000000e+00 : f32
    %296 = vector.broadcast %cst_76 : f32 to vector<8x96xf32>
    %297 = arith.addf %296, %295 : vector<8x96xf32>
    %298 = arith.divf %296, %297 : vector<8x96xf32>
    %299 = vector.extract_strided_slice %292 {offsets = [0, 96], sizes = [8, 32], strides = [1, 1]} : vector<8x128xf32> to vector<8x32xf32>
    %300 = math.tanh %299 : vector<8x32xf32>
    %301 = vector.extract_strided_slice %298 {offsets = [0, 0], sizes = [8, 32], strides = [1, 1]} : vector<8x96xf32> to vector<8x32xf32>
    %302 = vector.extract_strided_slice %298 {offsets = [0, 32], sizes = [8, 32], strides = [1, 1]} : vector<8x96xf32> to vector<8x32xf32>
    %303 = vector.extract_strided_slice %298 {offsets = [0, 64], sizes = [8, 32], strides = [1, 1]} : vector<8x96xf32> to vector<8x32xf32>
    %304 = arith.mulf %302, %255 : vector<8x32xf32>
    %305 = arith.mulf %301, %300 : vector<8x32xf32>
    %306 = arith.addf %304, %305 : vector<8x32xf32>
    %307 = math.tanh %306 : vector<8x32xf32>
    %308 = arith.mulf %303, %307 : vector<8x32xf32>
    %309 = vector.broadcast %265 : vector<8x1xf32> to vector<8x32xf32>
    %310 = arith.mulf %309, %288 : vector<8x32xf32>
    %311 = arith.index_cast %c3_i32 : i32 to index
    %c0_77 = arith.constant 0 : index
    %c0_78 = arith.constant 0 : index
    %312 = vector.load %arg12[%311, %c0_77, %c0_78] : memref<8x8x32xf32, #tpu.memory_space<vmem>>, vector<1x8x32xf32>
    %313 = vector.shape_cast %312 : vector<1x8x32xf32> to vector<8x32xf32>
    %314 = vector.shape_cast %310 : vector<8x32xf32> to vector<1x8x32xf32>
    tpu.vector_store %arg12[%311, %c0_77, %c0_78], %314 {strides = array<i32>} : memref<8x8x32xf32, #tpu.memory_space<vmem>>, vector<1x8x32xf32>,
    %315 = vector.broadcast %268 : vector<8x1xf32> to vector<8x32xf32>
    %316 = arith.mulf %315, %308 : vector<8x32xf32>
    %317 = arith.index_cast %256 : i32 to index
    %c0_79 = arith.constant 0 : index
    %c0_80 = arith.constant 0 : index
    %318 = vector.load %arg13[%317, %c0_79, %c0_80] : memref<8x8x32xf32, #tpu.memory_space<vmem>>, vector<1x8x32xf32>
    %319 = vector.shape_cast %318 : vector<1x8x32xf32> to vector<8x32xf32>
    %320 = vector.shape_cast %316 : vector<8x32xf32> to vector<1x8x32xf32>
    tpu.vector_store %arg13[%317, %c0_79, %c0_80], %320 {strides = array<i32>} : memref<8x8x32xf32, #tpu.memory_space<vmem>>, vector<1x8x32xf32>,
    %321 = arith.subf %288, %243 : vector<8x32xf32>
    %322 = vector.broadcast %265 : vector<8x1xf32> to vector<8x32xf32>
    %323 = arith.mulf %322, %321 : vector<8x32xf32>
    %324 = arith.addf %243, %323 : vector<8x32xf32>
    %325 = arith.subf %286, %247 : vector<8x32xf32>
    %326 = vector.broadcast %265 : vector<8x1xf32> to vector<8x32xf32>
    %327 = arith.mulf %326, %325 : vector<8x32xf32>
    %328 = arith.addf %247, %327 : vector<8x32xf32>
    %329 = arith.subf %308, %251 : vector<8x32xf32>
    %330 = vector.broadcast %268 : vector<8x1xf32> to vector<8x32xf32>
    %331 = arith.mulf %330, %329 : vector<8x32xf32>
    %332 = arith.addf %251, %331 : vector<8x32xf32>
    %333 = arith.subf %306, %255 : vector<8x32xf32>
    %334 = vector.broadcast %268 : vector<8x1xf32> to vector<8x32xf32>
    %335 = arith.mulf %334, %333 : vector<8x32xf32>
    %336 = arith.addf %255, %335 : vector<8x32xf32>
    %c4_i32 = arith.constant 4 : i32
    %c7_i32_81 = arith.constant 7 : i32
    %337 = arith.subi %c7_i32_81, %c4_i32 : i32
    %338 = arith.index_cast %c4_i32 : i32 to index
    %c0_82 = arith.constant 0 : index
    %c0_83 = arith.constant 0 : index
    %339 = vector.load %arg11[%338, %c0_82, %c0_83] : memref<8x8x256xf32, #tpu.memory_space<vmem>>, vector<1x8x256xf32>
    %340 = vector.shape_cast %339 : vector<1x8x256xf32> to vector<8x256xf32>
    %341 = arith.index_cast %337 : i32 to index
    %c0_84 = arith.constant 0 : index
    %c0_85 = arith.constant 0 : index
    %342 = vector.load %arg11[%341, %c0_84, %c0_85] : memref<8x8x256xf32, #tpu.memory_space<vmem>>, vector<1x8x256xf32>
    %343 = vector.shape_cast %342 : vector<1x8x256xf32> to vector<8x256xf32>
    %344 = arith.index_cast %c4_i32 : i32 to index
    %c0_86 = arith.constant 0 : index
    %c0_87 = arith.constant 0 : index
    %345 = vector.load %arg1[%344, %c0_86, %c0_87] : memref<8x8x1xf32, #tpu.memory_space<vmem>>, vector<1x8x1xf32>
    %346 = vector.shape_cast %345 : vector<1x8x1xf32> to vector<8x1xf32>
    %347 = arith.index_cast %337 : i32 to index
    %c0_88 = arith.constant 0 : index
    %c0_89 = arith.constant 0 : index
    %348 = vector.load %arg1[%347, %c0_88, %c0_89] : memref<8x8x1xf32, #tpu.memory_space<vmem>>, vector<1x8x1xf32>
    %349 = vector.shape_cast %348 : vector<1x8x1xf32> to vector<8x1xf32>
    %350 = vector.extract_strided_slice %340 {offsets = [0, 0], sizes = [8, 128], strides = [1, 1]} : vector<8x256xf32> to vector<8x128xf32>
    %351 = arith.truncf %324 : vector<8x32xf32> to vector<8x32xbf16>
    %cst_90 = arith.constant dense<0.000000e+00> : vector<8x128xf32>
    %352 = tpu.matmul %351, %10, %cst_90 {dimension_numbers = #tpu.dot_dimension_numbers<[1], [0], [0], [1], [0, 0, 1, 1], [], []>} : vector<8x32xbf16>, vector<32x128xbf16>, vector<8x128xf32> -> vector<8x128xf32>
    %353 = arith.addf %350, %352 : vector<8x128xf32>
    %354 = vector.extract_strided_slice %353 {offsets = [0, 0], sizes = [8, 96], strides = [1, 1]} : vector<8x128xf32> to vector<8x96xf32>
    %355 = arith.negf %354 : vector<8x96xf32>
    %356 = math.exp %355 : vector<8x96xf32>
    %cst_91 = arith.constant 1.000000e+00 : f32
    %357 = vector.broadcast %cst_91 : f32 to vector<8x96xf32>
    %358 = arith.addf %357, %356 : vector<8x96xf32>
    %359 = arith.divf %357, %358 : vector<8x96xf32>
    %360 = vector.extract_strided_slice %353 {offsets = [0, 96], sizes = [8, 32], strides = [1, 1]} : vector<8x128xf32> to vector<8x32xf32>
    %361 = math.tanh %360 : vector<8x32xf32>
    %362 = vector.extract_strided_slice %359 {offsets = [0, 0], sizes = [8, 32], strides = [1, 1]} : vector<8x96xf32> to vector<8x32xf32>
    %363 = vector.extract_strided_slice %359 {offsets = [0, 32], sizes = [8, 32], strides = [1, 1]} : vector<8x96xf32> to vector<8x32xf32>
    %364 = vector.extract_strided_slice %359 {offsets = [0, 64], sizes = [8, 32], strides = [1, 1]} : vector<8x96xf32> to vector<8x32xf32>
    %365 = arith.mulf %363, %328 : vector<8x32xf32>
    %366 = arith.mulf %362, %361 : vector<8x32xf32>
    %367 = arith.addf %365, %366 : vector<8x32xf32>
    %368 = math.tanh %367 : vector<8x32xf32>
    %369 = arith.mulf %364, %368 : vector<8x32xf32>
    %370 = vector.extract_strided_slice %343 {offsets = [0, 128], sizes = [8, 128], strides = [1, 1]} : vector<8x256xf32> to vector<8x128xf32>
    %371 = arith.truncf %332 : vector<8x32xf32> to vector<8x32xbf16>
    %cst_92 = arith.constant dense<0.000000e+00> : vector<8x128xf32>
    %372 = tpu.matmul %371, %11, %cst_92 {dimension_numbers = #tpu.dot_dimension_numbers<[1], [0], [0], [1], [0, 0, 1, 1], [], []>} : vector<8x32xbf16>, vector<32x128xbf16>, vector<8x128xf32> -> vector<8x128xf32>
    %373 = arith.addf %370, %372 : vector<8x128xf32>
    %374 = vector.extract_strided_slice %373 {offsets = [0, 0], sizes = [8, 96], strides = [1, 1]} : vector<8x128xf32> to vector<8x96xf32>
    %375 = arith.negf %374 : vector<8x96xf32>
    %376 = math.exp %375 : vector<8x96xf32>
    %cst_93 = arith.constant 1.000000e+00 : f32
    %377 = vector.broadcast %cst_93 : f32 to vector<8x96xf32>
    %378 = arith.addf %377, %376 : vector<8x96xf32>
    %379 = arith.divf %377, %378 : vector<8x96xf32>
    %380 = vector.extract_strided_slice %373 {offsets = [0, 96], sizes = [8, 32], strides = [1, 1]} : vector<8x128xf32> to vector<8x32xf32>
    %381 = math.tanh %380 : vector<8x32xf32>
    %382 = vector.extract_strided_slice %379 {offsets = [0, 0], sizes = [8, 32], strides = [1, 1]} : vector<8x96xf32> to vector<8x32xf32>
    %383 = vector.extract_strided_slice %379 {offsets = [0, 32], sizes = [8, 32], strides = [1, 1]} : vector<8x96xf32> to vector<8x32xf32>
    %384 = vector.extract_strided_slice %379 {offsets = [0, 64], sizes = [8, 32], strides = [1, 1]} : vector<8x96xf32> to vector<8x32xf32>
    %385 = arith.mulf %383, %336 : vector<8x32xf32>
    %386 = arith.mulf %382, %381 : vector<8x32xf32>
    %387 = arith.addf %385, %386 : vector<8x32xf32>
    %388 = math.tanh %387 : vector<8x32xf32>
    %389 = arith.mulf %384, %388 : vector<8x32xf32>
    %390 = vector.broadcast %346 : vector<8x1xf32> to vector<8x32xf32>
    %391 = arith.mulf %390, %369 : vector<8x32xf32>
    %392 = arith.index_cast %c4_i32 : i32 to index
    %c0_94 = arith.constant 0 : index
    %c0_95 = arith.constant 0 : index
    %393 = vector.load %arg12[%392, %c0_94, %c0_95] : memref<8x8x32xf32, #tpu.memory_space<vmem>>, vector<1x8x32xf32>
    %394 = vector.shape_cast %393 : vector<1x8x32xf32> to vector<8x32xf32>
    %395 = vector.shape_cast %391 : vector<8x32xf32> to vector<1x8x32xf32>
    tpu.vector_store %arg12[%392, %c0_94, %c0_95], %395 {strides = array<i32>} : memref<8x8x32xf32, #tpu.memory_space<vmem>>, vector<1x8x32xf32>,
    %396 = vector.broadcast %349 : vector<8x1xf32> to vector<8x32xf32>
    %397 = arith.mulf %396, %389 : vector<8x32xf32>
    %398 = arith.index_cast %337 : i32 to index
    %c0_96 = arith.constant 0 : index
    %c0_97 = arith.constant 0 : index
    %399 = vector.load %arg13[%398, %c0_96, %c0_97] : memref<8x8x32xf32, #tpu.memory_space<vmem>>, vector<1x8x32xf32>
    %400 = vector.shape_cast %399 : vector<1x8x32xf32> to vector<8x32xf32>
    %401 = vector.shape_cast %397 : vector<8x32xf32> to vector<1x8x32xf32>
    tpu.vector_store %arg13[%398, %c0_96, %c0_97], %401 {strides = array<i32>} : memref<8x8x32xf32, #tpu.memory_space<vmem>>, vector<1x8x32xf32>,
    %402 = arith.subf %369, %324 : vector<8x32xf32>
    %403 = vector.broadcast %346 : vector<8x1xf32> to vector<8x32xf32>
    %404 = arith.mulf %403, %402 : vector<8x32xf32>
    %405 = arith.addf %324, %404 : vector<8x32xf32>
    %406 = arith.subf %367, %328 : vector<8x32xf32>
    %407 = vector.broadcast %346 : vector<8x1xf32> to vector<8x32xf32>
    %408 = arith.mulf %407, %406 : vector<8x32xf32>
    %409 = arith.addf %328, %408 : vector<8x32xf32>
    %410 = arith.subf %389, %332 : vector<8x32xf32>
    %411 = vector.broadcast %349 : vector<8x1xf32> to vector<8x32xf32>
    %412 = arith.mulf %411, %410 : vector<8x32xf32>
    %413 = arith.addf %332, %412 : vector<8x32xf32>
    %414 = arith.subf %387, %336 : vector<8x32xf32>
    %415 = vector.broadcast %349 : vector<8x1xf32> to vector<8x32xf32>
    %416 = arith.mulf %415, %414 : vector<8x32xf32>
    %417 = arith.addf %336, %416 : vector<8x32xf32>
    %c5_i32 = arith.constant 5 : i32
    %c7_i32_98 = arith.constant 7 : i32
    %418 = arith.subi %c7_i32_98, %c5_i32 : i32
    %419 = arith.index_cast %c5_i32 : i32 to index
    %c0_99 = arith.constant 0 : index
    %c0_100 = arith.constant 0 : index
    %420 = vector.load %arg11[%419, %c0_99, %c0_100] : memref<8x8x256xf32, #tpu.memory_space<vmem>>, vector<1x8x256xf32>
    %421 = vector.shape_cast %420 : vector<1x8x256xf32> to vector<8x256xf32>
    %422 = arith.index_cast %418 : i32 to index
    %c0_101 = arith.constant 0 : index
    %c0_102 = arith.constant 0 : index
    %423 = vector.load %arg11[%422, %c0_101, %c0_102] : memref<8x8x256xf32, #tpu.memory_space<vmem>>, vector<1x8x256xf32>
    %424 = vector.shape_cast %423 : vector<1x8x256xf32> to vector<8x256xf32>
    %425 = arith.index_cast %c5_i32 : i32 to index
    %c0_103 = arith.constant 0 : index
    %c0_104 = arith.constant 0 : index
    %426 = vector.load %arg1[%425, %c0_103, %c0_104] : memref<8x8x1xf32, #tpu.memory_space<vmem>>, vector<1x8x1xf32>
    %427 = vector.shape_cast %426 : vector<1x8x1xf32> to vector<8x1xf32>
    %428 = arith.index_cast %418 : i32 to index
    %c0_105 = arith.constant 0 : index
    %c0_106 = arith.constant 0 : index
    %429 = vector.load %arg1[%428, %c0_105, %c0_106] : memref<8x8x1xf32, #tpu.memory_space<vmem>>, vector<1x8x1xf32>
    %430 = vector.shape_cast %429 : vector<1x8x1xf32> to vector<8x1xf32>
    %431 = vector.extract_strided_slice %421 {offsets = [0, 0], sizes = [8, 128], strides = [1, 1]} : vector<8x256xf32> to vector<8x128xf32>
    %432 = arith.truncf %405 : vector<8x32xf32> to vector<8x32xbf16>
    %cst_107 = arith.constant dense<0.000000e+00> : vector<8x128xf32>
    %433 = tpu.matmul %432, %10, %cst_107 {dimension_numbers = #tpu.dot_dimension_numbers<[1], [0], [0], [1], [0, 0, 1, 1], [], []>} : vector<8x32xbf16>, vector<32x128xbf16>, vector<8x128xf32> -> vector<8x128xf32>
    %434 = arith.addf %431, %433 : vector<8x128xf32>
    %435 = vector.extract_strided_slice %434 {offsets = [0, 0], sizes = [8, 96], strides = [1, 1]} : vector<8x128xf32> to vector<8x96xf32>
    %436 = arith.negf %435 : vector<8x96xf32>
    %437 = math.exp %436 : vector<8x96xf32>
    %cst_108 = arith.constant 1.000000e+00 : f32
    %438 = vector.broadcast %cst_108 : f32 to vector<8x96xf32>
    %439 = arith.addf %438, %437 : vector<8x96xf32>
    %440 = arith.divf %438, %439 : vector<8x96xf32>
    %441 = vector.extract_strided_slice %434 {offsets = [0, 96], sizes = [8, 32], strides = [1, 1]} : vector<8x128xf32> to vector<8x32xf32>
    %442 = math.tanh %441 : vector<8x32xf32>
    %443 = vector.extract_strided_slice %440 {offsets = [0, 0], sizes = [8, 32], strides = [1, 1]} : vector<8x96xf32> to vector<8x32xf32>
    %444 = vector.extract_strided_slice %440 {offsets = [0, 32], sizes = [8, 32], strides = [1, 1]} : vector<8x96xf32> to vector<8x32xf32>
    %445 = vector.extract_strided_slice %440 {offsets = [0, 64], sizes = [8, 32], strides = [1, 1]} : vector<8x96xf32> to vector<8x32xf32>
    %446 = arith.mulf %444, %409 : vector<8x32xf32>
    %447 = arith.mulf %443, %442 : vector<8x32xf32>
    %448 = arith.addf %446, %447 : vector<8x32xf32>
    %449 = math.tanh %448 : vector<8x32xf32>
    %450 = arith.mulf %445, %449 : vector<8x32xf32>
    %451 = vector.extract_strided_slice %424 {offsets = [0, 128], sizes = [8, 128], strides = [1, 1]} : vector<8x256xf32> to vector<8x128xf32>
    %452 = arith.truncf %413 : vector<8x32xf32> to vector<8x32xbf16>
    %cst_109 = arith.constant dense<0.000000e+00> : vector<8x128xf32>
    %453 = tpu.matmul %452, %11, %cst_109 {dimension_numbers = #tpu.dot_dimension_numbers<[1], [0], [0], [1], [0, 0, 1, 1], [], []>} : vector<8x32xbf16>, vector<32x128xbf16>, vector<8x128xf32> -> vector<8x128xf32>
    %454 = arith.addf %451, %453 : vector<8x128xf32>
    %455 = vector.extract_strided_slice %454 {offsets = [0, 0], sizes = [8, 96], strides = [1, 1]} : vector<8x128xf32> to vector<8x96xf32>
    %456 = arith.negf %455 : vector<8x96xf32>
    %457 = math.exp %456 : vector<8x96xf32>
    %cst_110 = arith.constant 1.000000e+00 : f32
    %458 = vector.broadcast %cst_110 : f32 to vector<8x96xf32>
    %459 = arith.addf %458, %457 : vector<8x96xf32>
    %460 = arith.divf %458, %459 : vector<8x96xf32>
    %461 = vector.extract_strided_slice %454 {offsets = [0, 96], sizes = [8, 32], strides = [1, 1]} : vector<8x128xf32> to vector<8x32xf32>
    %462 = math.tanh %461 : vector<8x32xf32>
    %463 = vector.extract_strided_slice %460 {offsets = [0, 0], sizes = [8, 32], strides = [1, 1]} : vector<8x96xf32> to vector<8x32xf32>
    %464 = vector.extract_strided_slice %460 {offsets = [0, 32], sizes = [8, 32], strides = [1, 1]} : vector<8x96xf32> to vector<8x32xf32>
    %465 = vector.extract_strided_slice %460 {offsets = [0, 64], sizes = [8, 32], strides = [1, 1]} : vector<8x96xf32> to vector<8x32xf32>
    %466 = arith.mulf %464, %417 : vector<8x32xf32>
    %467 = arith.mulf %463, %462 : vector<8x32xf32>
    %468 = arith.addf %466, %467 : vector<8x32xf32>
    %469 = math.tanh %468 : vector<8x32xf32>
    %470 = arith.mulf %465, %469 : vector<8x32xf32>
    %471 = vector.broadcast %427 : vector<8x1xf32> to vector<8x32xf32>
    %472 = arith.mulf %471, %450 : vector<8x32xf32>
    %473 = arith.index_cast %c5_i32 : i32 to index
    %c0_111 = arith.constant 0 : index
    %c0_112 = arith.constant 0 : index
    %474 = vector.load %arg12[%473, %c0_111, %c0_112] : memref<8x8x32xf32, #tpu.memory_space<vmem>>, vector<1x8x32xf32>
    %475 = vector.shape_cast %474 : vector<1x8x32xf32> to vector<8x32xf32>
    %476 = vector.shape_cast %472 : vector<8x32xf32> to vector<1x8x32xf32>
    tpu.vector_store %arg12[%473, %c0_111, %c0_112], %476 {strides = array<i32>} : memref<8x8x32xf32, #tpu.memory_space<vmem>>, vector<1x8x32xf32>,
    %477 = vector.broadcast %430 : vector<8x1xf32> to vector<8x32xf32>
    %478 = arith.mulf %477, %470 : vector<8x32xf32>
    %479 = arith.index_cast %418 : i32 to index
    %c0_113 = arith.constant 0 : index
    %c0_114 = arith.constant 0 : index
    %480 = vector.load %arg13[%479, %c0_113, %c0_114] : memref<8x8x32xf32, #tpu.memory_space<vmem>>, vector<1x8x32xf32>
    %481 = vector.shape_cast %480 : vector<1x8x32xf32> to vector<8x32xf32>
    %482 = vector.shape_cast %478 : vector<8x32xf32> to vector<1x8x32xf32>
    tpu.vector_store %arg13[%479, %c0_113, %c0_114], %482 {strides = array<i32>} : memref<8x8x32xf32, #tpu.memory_space<vmem>>, vector<1x8x32xf32>,
    %483 = arith.subf %450, %405 : vector<8x32xf32>
    %484 = vector.broadcast %427 : vector<8x1xf32> to vector<8x32xf32>
    %485 = arith.mulf %484, %483 : vector<8x32xf32>
    %486 = arith.addf %405, %485 : vector<8x32xf32>
    %487 = arith.subf %448, %409 : vector<8x32xf32>
    %488 = vector.broadcast %427 : vector<8x1xf32> to vector<8x32xf32>
    %489 = arith.mulf %488, %487 : vector<8x32xf32>
    %490 = arith.addf %409, %489 : vector<8x32xf32>
    %491 = arith.subf %470, %413 : vector<8x32xf32>
    %492 = vector.broadcast %430 : vector<8x1xf32> to vector<8x32xf32>
    %493 = arith.mulf %492, %491 : vector<8x32xf32>
    %494 = arith.addf %413, %493 : vector<8x32xf32>
    %495 = arith.subf %468, %417 : vector<8x32xf32>
    %496 = vector.broadcast %430 : vector<8x1xf32> to vector<8x32xf32>
    %497 = arith.mulf %496, %495 : vector<8x32xf32>
    %498 = arith.addf %417, %497 : vector<8x32xf32>
    %c6_i32 = arith.constant 6 : i32
    %c7_i32_115 = arith.constant 7 : i32
    %499 = arith.subi %c7_i32_115, %c6_i32 : i32
    %500 = arith.index_cast %c6_i32 : i32 to index
    %c0_116 = arith.constant 0 : index
    %c0_117 = arith.constant 0 : index
    %501 = vector.load %arg11[%500, %c0_116, %c0_117] : memref<8x8x256xf32, #tpu.memory_space<vmem>>, vector<1x8x256xf32>
    %502 = vector.shape_cast %501 : vector<1x8x256xf32> to vector<8x256xf32>
    %503 = arith.index_cast %499 : i32 to index
    %c0_118 = arith.constant 0 : index
    %c0_119 = arith.constant 0 : index
    %504 = vector.load %arg11[%503, %c0_118, %c0_119] : memref<8x8x256xf32, #tpu.memory_space<vmem>>, vector<1x8x256xf32>
    %505 = vector.shape_cast %504 : vector<1x8x256xf32> to vector<8x256xf32>
    %506 = arith.index_cast %c6_i32 : i32 to index
    %c0_120 = arith.constant 0 : index
    %c0_121 = arith.constant 0 : index
    %507 = vector.load %arg1[%506, %c0_120, %c0_121] : memref<8x8x1xf32, #tpu.memory_space<vmem>>, vector<1x8x1xf32>
    %508 = vector.shape_cast %507 : vector<1x8x1xf32> to vector<8x1xf32>
    %509 = arith.index_cast %499 : i32 to index
    %c0_122 = arith.constant 0 : index
    %c0_123 = arith.constant 0 : index
    %510 = vector.load %arg1[%509, %c0_122, %c0_123] : memref<8x8x1xf32, #tpu.memory_space<vmem>>, vector<1x8x1xf32>
    %511 = vector.shape_cast %510 : vector<1x8x1xf32> to vector<8x1xf32>
    %512 = vector.extract_strided_slice %502 {offsets = [0, 0], sizes = [8, 128], strides = [1, 1]} : vector<8x256xf32> to vector<8x128xf32>
    %513 = arith.truncf %486 : vector<8x32xf32> to vector<8x32xbf16>
    %cst_124 = arith.constant dense<0.000000e+00> : vector<8x128xf32>
    %514 = tpu.matmul %513, %10, %cst_124 {dimension_numbers = #tpu.dot_dimension_numbers<[1], [0], [0], [1], [0, 0, 1, 1], [], []>} : vector<8x32xbf16>, vector<32x128xbf16>, vector<8x128xf32> -> vector<8x128xf32>
    %515 = arith.addf %512, %514 : vector<8x128xf32>
    %516 = vector.extract_strided_slice %515 {offsets = [0, 0], sizes = [8, 96], strides = [1, 1]} : vector<8x128xf32> to vector<8x96xf32>
    %517 = arith.negf %516 : vector<8x96xf32>
    %518 = math.exp %517 : vector<8x96xf32>
    %cst_125 = arith.constant 1.000000e+00 : f32
    %519 = vector.broadcast %cst_125 : f32 to vector<8x96xf32>
    %520 = arith.addf %519, %518 : vector<8x96xf32>
    %521 = arith.divf %519, %520 : vector<8x96xf32>
    %522 = vector.extract_strided_slice %515 {offsets = [0, 96], sizes = [8, 32], strides = [1, 1]} : vector<8x128xf32> to vector<8x32xf32>
    %523 = math.tanh %522 : vector<8x32xf32>
    %524 = vector.extract_strided_slice %521 {offsets = [0, 0], sizes = [8, 32], strides = [1, 1]} : vector<8x96xf32> to vector<8x32xf32>
    %525 = vector.extract_strided_slice %521 {offsets = [0, 32], sizes = [8, 32], strides = [1, 1]} : vector<8x96xf32> to vector<8x32xf32>
    %526 = vector.extract_strided_slice %521 {offsets = [0, 64], sizes = [8, 32], strides = [1, 1]} : vector<8x96xf32> to vector<8x32xf32>
    %527 = arith.mulf %525, %490 : vector<8x32xf32>
    %528 = arith.mulf %524, %523 : vector<8x32xf32>
    %529 = arith.addf %527, %528 : vector<8x32xf32>
    %530 = math.tanh %529 : vector<8x32xf32>
    %531 = arith.mulf %526, %530 : vector<8x32xf32>
    %532 = vector.extract_strided_slice %505 {offsets = [0, 128], sizes = [8, 128], strides = [1, 1]} : vector<8x256xf32> to vector<8x128xf32>
    %533 = arith.truncf %494 : vector<8x32xf32> to vector<8x32xbf16>
    %cst_126 = arith.constant dense<0.000000e+00> : vector<8x128xf32>
    %534 = tpu.matmul %533, %11, %cst_126 {dimension_numbers = #tpu.dot_dimension_numbers<[1], [0], [0], [1], [0, 0, 1, 1], [], []>} : vector<8x32xbf16>, vector<32x128xbf16>, vector<8x128xf32> -> vector<8x128xf32>
    %535 = arith.addf %532, %534 : vector<8x128xf32>
    %536 = vector.extract_strided_slice %535 {offsets = [0, 0], sizes = [8, 96], strides = [1, 1]} : vector<8x128xf32> to vector<8x96xf32>
    %537 = arith.negf %536 : vector<8x96xf32>
    %538 = math.exp %537 : vector<8x96xf32>
    %cst_127 = arith.constant 1.000000e+00 : f32
    %539 = vector.broadcast %cst_127 : f32 to vector<8x96xf32>
    %540 = arith.addf %539, %538 : vector<8x96xf32>
    %541 = arith.divf %539, %540 : vector<8x96xf32>
    %542 = vector.extract_strided_slice %535 {offsets = [0, 96], sizes = [8, 32], strides = [1, 1]} : vector<8x128xf32> to vector<8x32xf32>
    %543 = math.tanh %542 : vector<8x32xf32>
    %544 = vector.extract_strided_slice %541 {offsets = [0, 0], sizes = [8, 32], strides = [1, 1]} : vector<8x96xf32> to vector<8x32xf32>
    %545 = vector.extract_strided_slice %541 {offsets = [0, 32], sizes = [8, 32], strides = [1, 1]} : vector<8x96xf32> to vector<8x32xf32>
    %546 = vector.extract_strided_slice %541 {offsets = [0, 64], sizes = [8, 32], strides = [1, 1]} : vector<8x96xf32> to vector<8x32xf32>
    %547 = arith.mulf %545, %498 : vector<8x32xf32>
    %548 = arith.mulf %544, %543 : vector<8x32xf32>
    %549 = arith.addf %547, %548 : vector<8x32xf32>
    %550 = math.tanh %549 : vector<8x32xf32>
    %551 = arith.mulf %546, %550 : vector<8x32xf32>
    %552 = vector.broadcast %508 : vector<8x1xf32> to vector<8x32xf32>
    %553 = arith.mulf %552, %531 : vector<8x32xf32>
    %554 = arith.index_cast %c6_i32 : i32 to index
    %c0_128 = arith.constant 0 : index
    %c0_129 = arith.constant 0 : index
    %555 = vector.load %arg12[%554, %c0_128, %c0_129] : memref<8x8x32xf32, #tpu.memory_space<vmem>>, vector<1x8x32xf32>
    %556 = vector.shape_cast %555 : vector<1x8x32xf32> to vector<8x32xf32>
    %557 = vector.shape_cast %553 : vector<8x32xf32> to vector<1x8x32xf32>
    tpu.vector_store %arg12[%554, %c0_128, %c0_129], %557 {strides = array<i32>} : memref<8x8x32xf32, #tpu.memory_space<vmem>>, vector<1x8x32xf32>,
    %558 = vector.broadcast %511 : vector<8x1xf32> to vector<8x32xf32>
    %559 = arith.mulf %558, %551 : vector<8x32xf32>
    %560 = arith.index_cast %499 : i32 to index
    %c0_130 = arith.constant 0 : index
    %c0_131 = arith.constant 0 : index
    %561 = vector.load %arg13[%560, %c0_130, %c0_131] : memref<8x8x32xf32, #tpu.memory_space<vmem>>, vector<1x8x32xf32>
    %562 = vector.shape_cast %561 : vector<1x8x32xf32> to vector<8x32xf32>
    %563 = vector.shape_cast %559 : vector<8x32xf32> to vector<1x8x32xf32>
    tpu.vector_store %arg13[%560, %c0_130, %c0_131], %563 {strides = array<i32>} : memref<8x8x32xf32, #tpu.memory_space<vmem>>, vector<1x8x32xf32>,
    %564 = arith.subf %531, %486 : vector<8x32xf32>
    %565 = vector.broadcast %508 : vector<8x1xf32> to vector<8x32xf32>
    %566 = arith.mulf %565, %564 : vector<8x32xf32>
    %567 = arith.addf %486, %566 : vector<8x32xf32>
    %568 = arith.subf %529, %490 : vector<8x32xf32>
    %569 = vector.broadcast %508 : vector<8x1xf32> to vector<8x32xf32>
    %570 = arith.mulf %569, %568 : vector<8x32xf32>
    %571 = arith.addf %490, %570 : vector<8x32xf32>
    %572 = arith.subf %551, %494 : vector<8x32xf32>
    %573 = vector.broadcast %511 : vector<8x1xf32> to vector<8x32xf32>
    %574 = arith.mulf %573, %572 : vector<8x32xf32>
    %575 = arith.addf %494, %574 : vector<8x32xf32>
    %576 = arith.subf %549, %498 : vector<8x32xf32>
    %577 = vector.broadcast %511 : vector<8x1xf32> to vector<8x32xf32>
    %578 = arith.mulf %577, %576 : vector<8x32xf32>
    %579 = arith.addf %498, %578 : vector<8x32xf32>
    %c7_i32_132 = arith.constant 7 : i32
    %c7_i32_133 = arith.constant 7 : i32
    %580 = arith.subi %c7_i32_133, %c7_i32_132 : i32
    %581 = arith.index_cast %c7_i32_132 : i32 to index
    %c0_134 = arith.constant 0 : index
    %c0_135 = arith.constant 0 : index
    %582 = vector.load %arg11[%581, %c0_134, %c0_135] : memref<8x8x256xf32, #tpu.memory_space<vmem>>, vector<1x8x256xf32>
    %583 = vector.shape_cast %582 : vector<1x8x256xf32> to vector<8x256xf32>
    %584 = arith.index_cast %580 : i32 to index
    %c0_136 = arith.constant 0 : index
    %c0_137 = arith.constant 0 : index
    %585 = vector.load %arg11[%584, %c0_136, %c0_137] : memref<8x8x256xf32, #tpu.memory_space<vmem>>, vector<1x8x256xf32>
    %586 = vector.shape_cast %585 : vector<1x8x256xf32> to vector<8x256xf32>
    %587 = arith.index_cast %c7_i32_132 : i32 to index
    %c0_138 = arith.constant 0 : index
    %c0_139 = arith.constant 0 : index
    %588 = vector.load %arg1[%587, %c0_138, %c0_139] : memref<8x8x1xf32, #tpu.memory_space<vmem>>, vector<1x8x1xf32>
    %589 = vector.shape_cast %588 : vector<1x8x1xf32> to vector<8x1xf32>
    %590 = arith.index_cast %580 : i32 to index
    %c0_140 = arith.constant 0 : index
    %c0_141 = arith.constant 0 : index
    %591 = vector.load %arg1[%590, %c0_140, %c0_141] : memref<8x8x1xf32, #tpu.memory_space<vmem>>, vector<1x8x1xf32>
    %592 = vector.shape_cast %591 : vector<1x8x1xf32> to vector<8x1xf32>
    %593 = vector.extract_strided_slice %583 {offsets = [0, 0], sizes = [8, 128], strides = [1, 1]} : vector<8x256xf32> to vector<8x128xf32>
    %594 = arith.truncf %567 : vector<8x32xf32> to vector<8x32xbf16>
    %cst_142 = arith.constant dense<0.000000e+00> : vector<8x128xf32>
    %595 = tpu.matmul %594, %10, %cst_142 {dimension_numbers = #tpu.dot_dimension_numbers<[1], [0], [0], [1], [0, 0, 1, 1], [], []>} : vector<8x32xbf16>, vector<32x128xbf16>, vector<8x128xf32> -> vector<8x128xf32>
    %596 = arith.addf %593, %595 : vector<8x128xf32>
    %597 = vector.extract_strided_slice %596 {offsets = [0, 0], sizes = [8, 96], strides = [1, 1]} : vector<8x128xf32> to vector<8x96xf32>
    %598 = arith.negf %597 : vector<8x96xf32>
    %599 = math.exp %598 : vector<8x96xf32>
    %cst_143 = arith.constant 1.000000e+00 : f32
    %600 = vector.broadcast %cst_143 : f32 to vector<8x96xf32>
    %601 = arith.addf %600, %599 : vector<8x96xf32>
    %602 = arith.divf %600, %601 : vector<8x96xf32>
    %603 = vector.extract_strided_slice %596 {offsets = [0, 96], sizes = [8, 32], strides = [1, 1]} : vector<8x128xf32> to vector<8x32xf32>
    %604 = math.tanh %603 : vector<8x32xf32>
    %605 = vector.extract_strided_slice %602 {offsets = [0, 0], sizes = [8, 32], strides = [1, 1]} : vector<8x96xf32> to vector<8x32xf32>
    %606 = vector.extract_strided_slice %602 {offsets = [0, 32], sizes = [8, 32], strides = [1, 1]} : vector<8x96xf32> to vector<8x32xf32>
    %607 = vector.extract_strided_slice %602 {offsets = [0, 64], sizes = [8, 32], strides = [1, 1]} : vector<8x96xf32> to vector<8x32xf32>
    %608 = arith.mulf %606, %571 : vector<8x32xf32>
    %609 = arith.mulf %605, %604 : vector<8x32xf32>
    %610 = arith.addf %608, %609 : vector<8x32xf32>
    %611 = math.tanh %610 : vector<8x32xf32>
    %612 = arith.mulf %607, %611 : vector<8x32xf32>
    %613 = vector.extract_strided_slice %586 {offsets = [0, 128], sizes = [8, 128], strides = [1, 1]} : vector<8x256xf32> to vector<8x128xf32>
    %614 = arith.truncf %575 : vector<8x32xf32> to vector<8x32xbf16>
    %cst_144 = arith.constant dense<0.000000e+00> : vector<8x128xf32>
    %615 = tpu.matmul %614, %11, %cst_144 {dimension_numbers = #tpu.dot_dimension_numbers<[1], [0], [0], [1], [0, 0, 1, 1], [], []>} : vector<8x32xbf16>, vector<32x128xbf16>, vector<8x128xf32> -> vector<8x128xf32>
    %616 = arith.addf %613, %615 : vector<8x128xf32>
    %617 = vector.extract_strided_slice %616 {offsets = [0, 0], sizes = [8, 96], strides = [1, 1]} : vector<8x128xf32> to vector<8x96xf32>
    %618 = arith.negf %617 : vector<8x96xf32>
    %619 = math.exp %618 : vector<8x96xf32>
    %cst_145 = arith.constant 1.000000e+00 : f32
    %620 = vector.broadcast %cst_145 : f32 to vector<8x96xf32>
    %621 = arith.addf %620, %619 : vector<8x96xf32>
    %622 = arith.divf %620, %621 : vector<8x96xf32>
    %623 = vector.extract_strided_slice %616 {offsets = [0, 96], sizes = [8, 32], strides = [1, 1]} : vector<8x128xf32> to vector<8x32xf32>
    %624 = math.tanh %623 : vector<8x32xf32>
    %625 = vector.extract_strided_slice %622 {offsets = [0, 0], sizes = [8, 32], strides = [1, 1]} : vector<8x96xf32> to vector<8x32xf32>
    %626 = vector.extract_strided_slice %622 {offsets = [0, 32], sizes = [8, 32], strides = [1, 1]} : vector<8x96xf32> to vector<8x32xf32>
    %627 = vector.extract_strided_slice %622 {offsets = [0, 64], sizes = [8, 32], strides = [1, 1]} : vector<8x96xf32> to vector<8x32xf32>
    %628 = arith.mulf %626, %579 : vector<8x32xf32>
    %629 = arith.mulf %625, %624 : vector<8x32xf32>
    %630 = arith.addf %628, %629 : vector<8x32xf32>
    %631 = math.tanh %630 : vector<8x32xf32>
    %632 = arith.mulf %627, %631 : vector<8x32xf32>
    %633 = vector.broadcast %589 : vector<8x1xf32> to vector<8x32xf32>
    %634 = arith.mulf %633, %612 : vector<8x32xf32>
    %635 = arith.index_cast %c7_i32_132 : i32 to index
    %c0_146 = arith.constant 0 : index
    %c0_147 = arith.constant 0 : index
    %636 = vector.load %arg12[%635, %c0_146, %c0_147] : memref<8x8x32xf32, #tpu.memory_space<vmem>>, vector<1x8x32xf32>
    %637 = vector.shape_cast %636 : vector<1x8x32xf32> to vector<8x32xf32>
    %638 = vector.shape_cast %634 : vector<8x32xf32> to vector<1x8x32xf32>
    tpu.vector_store %arg12[%635, %c0_146, %c0_147], %638 {strides = array<i32>} : memref<8x8x32xf32, #tpu.memory_space<vmem>>, vector<1x8x32xf32>,
    %639 = vector.broadcast %592 : vector<8x1xf32> to vector<8x32xf32>
    %640 = arith.mulf %639, %632 : vector<8x32xf32>
    %641 = arith.index_cast %580 : i32 to index
    %c0_148 = arith.constant 0 : index
    %c0_149 = arith.constant 0 : index
    %642 = vector.load %arg13[%641, %c0_148, %c0_149] : memref<8x8x32xf32, #tpu.memory_space<vmem>>, vector<1x8x32xf32>
    %643 = vector.shape_cast %642 : vector<1x8x32xf32> to vector<8x32xf32>
    %644 = vector.shape_cast %640 : vector<8x32xf32> to vector<1x8x32xf32>
    tpu.vector_store %arg13[%641, %c0_148, %c0_149], %644 {strides = array<i32>} : memref<8x8x32xf32, #tpu.memory_space<vmem>>, vector<1x8x32xf32>,
    %645 = arith.subf %612, %567 : vector<8x32xf32>
    %646 = vector.broadcast %589 : vector<8x1xf32> to vector<8x32xf32>
    %647 = arith.mulf %646, %645 : vector<8x32xf32>
    %648 = arith.addf %567, %647 : vector<8x32xf32>
    %649 = arith.subf %610, %571 : vector<8x32xf32>
    %650 = vector.broadcast %589 : vector<8x1xf32> to vector<8x32xf32>
    %651 = arith.mulf %650, %649 : vector<8x32xf32>
    %652 = arith.addf %571, %651 : vector<8x32xf32>
    %653 = arith.subf %632, %575 : vector<8x32xf32>
    %654 = vector.broadcast %592 : vector<8x1xf32> to vector<8x32xf32>
    %655 = arith.mulf %654, %653 : vector<8x32xf32>
    %656 = arith.addf %575, %655 : vector<8x32xf32>
    %657 = arith.subf %630, %579 : vector<8x32xf32>
    %658 = vector.broadcast %592 : vector<8x1xf32> to vector<8x32xf32>
    %659 = arith.mulf %658, %657 : vector<8x32xf32>
    %660 = arith.addf %579, %659 : vector<8x32xf32>
    %c8_i32 = arith.constant 8 : i32
    %c0_150 = arith.constant 0 : index
    %c0_151 = arith.constant 0 : index
    %661 = vector.load %arg9[%c0_150, %c0_151] : memref<8x32xf32, #tpu.memory_space<vmem>>, vector<8x32xf32>
    tpu.vector_store %arg9[%c0_150, %c0_151], %648 {strides = array<i32>} : memref<8x32xf32, #tpu.memory_space<vmem>>, vector<8x32xf32>,
    %c0_152 = arith.constant 0 : index
    %c0_153 = arith.constant 0 : index
    %662 = vector.load %arg10[%c0_152, %c0_153] : memref<8x32xf32, #tpu.memory_space<vmem>>, vector<8x32xf32>
    tpu.vector_store %arg10[%c0_152, %c0_153], %656 {strides = array<i32>} : memref<8x32xf32, #tpu.memory_space<vmem>>, vector<8x32xf32>,
    %c0_154 = arith.constant 0 : index
    %c0_155 = arith.constant 0 : index
    %c0_156 = arith.constant 0 : index
    %663 = vector.load %arg12[%c0_154, %c0_155, %c0_156] : memref<8x8x32xf32, #tpu.memory_space<vmem>>, vector<1x8x32xf32>
    %664 = vector.shape_cast %663 : vector<1x8x32xf32> to vector<8x32xf32>
    %c0_157 = arith.constant 0 : index
    %c0_158 = arith.constant 0 : index
    %c0_159 = arith.constant 0 : index
    %665 = vector.load %arg7[%c0_157, %c0_158, %c0_159] : memref<8x8x32xf32, #tpu.memory_space<vmem>>, vector<8x1x32xf32>
    %666 = vector.shape_cast %665 : vector<8x1x32xf32> to vector<8x32xf32>
    %667 = vector.shape_cast %664 : vector<8x32xf32> to vector<8x1x32xf32>
    tpu.vector_store %arg7[%c0_157, %c0_158, %c0_159], %667 {strides = array<i32>} : memref<8x8x32xf32, #tpu.memory_space<vmem>>, vector<8x1x32xf32>,
    %c0_160 = arith.constant 0 : index
    %c0_161 = arith.constant 0 : index
    %c0_162 = arith.constant 0 : index
    %668 = vector.load %arg13[%c0_160, %c0_161, %c0_162] : memref<8x8x32xf32, #tpu.memory_space<vmem>>, vector<1x8x32xf32>
    %669 = vector.shape_cast %668 : vector<1x8x32xf32> to vector<8x32xf32>
    %c0_163 = arith.constant 0 : index
    %c0_164 = arith.constant 0 : index
    %c0_165 = arith.constant 0 : index
    %670 = vector.load %arg8[%c0_163, %c0_164, %c0_165] : memref<8x8x32xf32, #tpu.memory_space<vmem>>, vector<8x1x32xf32>
    %671 = vector.shape_cast %670 : vector<8x1x32xf32> to vector<8x32xf32>
    %672 = vector.shape_cast %669 : vector<8x32xf32> to vector<8x1x32xf32>
    tpu.vector_store %arg8[%c0_163, %c0_164, %c0_165], %672 {strides = array<i32>} : memref<8x8x32xf32, #tpu.memory_space<vmem>>, vector<8x1x32xf32>,
    %c1 = arith.constant 1 : index
    %c0_166 = arith.constant 0 : index
    %c0_167 = arith.constant 0 : index
    %673 = vector.load %arg12[%c1, %c0_166, %c0_167] : memref<8x8x32xf32, #tpu.memory_space<vmem>>, vector<1x8x32xf32>
    %674 = vector.shape_cast %673 : vector<1x8x32xf32> to vector<8x32xf32>
    %c0_168 = arith.constant 0 : index
    %c1_169 = arith.constant 1 : index
    %c0_170 = arith.constant 0 : index
    %675 = vector.load %arg7[%c0_168, %c1_169, %c0_170] : memref<8x8x32xf32, #tpu.memory_space<vmem>>, vector<8x1x32xf32>
    %676 = vector.shape_cast %675 : vector<8x1x32xf32> to vector<8x32xf32>
    %677 = vector.shape_cast %674 : vector<8x32xf32> to vector<8x1x32xf32>
    tpu.vector_store %arg7[%c0_168, %c1_169, %c0_170], %677 {strides = array<i32>} : memref<8x8x32xf32, #tpu.memory_space<vmem>>, vector<8x1x32xf32>,
    %c1_171 = arith.constant 1 : index
    %c0_172 = arith.constant 0 : index
    %c0_173 = arith.constant 0 : index
    %678 = vector.load %arg13[%c1_171, %c0_172, %c0_173] : memref<8x8x32xf32, #tpu.memory_space<vmem>>, vector<1x8x32xf32>
    %679 = vector.shape_cast %678 : vector<1x8x32xf32> to vector<8x32xf32>
    %c0_174 = arith.constant 0 : index
    %c1_175 = arith.constant 1 : index
    %c0_176 = arith.constant 0 : index
    %680 = vector.load %arg8[%c0_174, %c1_175, %c0_176] : memref<8x8x32xf32, #tpu.memory_space<vmem>>, vector<8x1x32xf32>
    %681 = vector.shape_cast %680 : vector<8x1x32xf32> to vector<8x32xf32>
    %682 = vector.shape_cast %679 : vector<8x32xf32> to vector<8x1x32xf32>
    tpu.vector_store %arg8[%c0_174, %c1_175, %c0_176], %682 {strides = array<i32>} : memref<8x8x32xf32, #tpu.memory_space<vmem>>, vector<8x1x32xf32>,
    %c2 = arith.constant 2 : index
    %c0_177 = arith.constant 0 : index
    %c0_178 = arith.constant 0 : index
    %683 = vector.load %arg12[%c2, %c0_177, %c0_178] : memref<8x8x32xf32, #tpu.memory_space<vmem>>, vector<1x8x32xf32>
    %684 = vector.shape_cast %683 : vector<1x8x32xf32> to vector<8x32xf32>
    %c0_179 = arith.constant 0 : index
    %c2_180 = arith.constant 2 : index
    %c0_181 = arith.constant 0 : index
    %685 = vector.load %arg7[%c0_179, %c2_180, %c0_181] : memref<8x8x32xf32, #tpu.memory_space<vmem>>, vector<8x1x32xf32>
    %686 = vector.shape_cast %685 : vector<8x1x32xf32> to vector<8x32xf32>
    %687 = vector.shape_cast %684 : vector<8x32xf32> to vector<8x1x32xf32>
    tpu.vector_store %arg7[%c0_179, %c2_180, %c0_181], %687 {strides = array<i32>} : memref<8x8x32xf32, #tpu.memory_space<vmem>>, vector<8x1x32xf32>,
    %c2_182 = arith.constant 2 : index
    %c0_183 = arith.constant 0 : index
    %c0_184 = arith.constant 0 : index
    %688 = vector.load %arg13[%c2_182, %c0_183, %c0_184] : memref<8x8x32xf32, #tpu.memory_space<vmem>>, vector<1x8x32xf32>
    %689 = vector.shape_cast %688 : vector<1x8x32xf32> to vector<8x32xf32>
    %c0_185 = arith.constant 0 : index
    %c2_186 = arith.constant 2 : index
    %c0_187 = arith.constant 0 : index
    %690 = vector.load %arg8[%c0_185, %c2_186, %c0_187] : memref<8x8x32xf32, #tpu.memory_space<vmem>>, vector<8x1x32xf32>
    %691 = vector.shape_cast %690 : vector<8x1x32xf32> to vector<8x32xf32>
    %692 = vector.shape_cast %689 : vector<8x32xf32> to vector<8x1x32xf32>
    tpu.vector_store %arg8[%c0_185, %c2_186, %c0_187], %692 {strides = array<i32>} : memref<8x8x32xf32, #tpu.memory_space<vmem>>, vector<8x1x32xf32>,
    %c3 = arith.constant 3 : index
    %c0_188 = arith.constant 0 : index
    %c0_189 = arith.constant 0 : index
    %693 = vector.load %arg12[%c3, %c0_188, %c0_189] : memref<8x8x32xf32, #tpu.memory_space<vmem>>, vector<1x8x32xf32>
    %694 = vector.shape_cast %693 : vector<1x8x32xf32> to vector<8x32xf32>
    %c0_190 = arith.constant 0 : index
    %c3_191 = arith.constant 3 : index
    %c0_192 = arith.constant 0 : index
    %695 = vector.load %arg7[%c0_190, %c3_191, %c0_192] : memref<8x8x32xf32, #tpu.memory_space<vmem>>, vector<8x1x32xf32>
    %696 = vector.shape_cast %695 : vector<8x1x32xf32> to vector<8x32xf32>
    %697 = vector.shape_cast %694 : vector<8x32xf32> to vector<8x1x32xf32>
    tpu.vector_store %arg7[%c0_190, %c3_191, %c0_192], %697 {strides = array<i32>} : memref<8x8x32xf32, #tpu.memory_space<vmem>>, vector<8x1x32xf32>,
    %c3_193 = arith.constant 3 : index
    %c0_194 = arith.constant 0 : index
    %c0_195 = arith.constant 0 : index
    %698 = vector.load %arg13[%c3_193, %c0_194, %c0_195] : memref<8x8x32xf32, #tpu.memory_space<vmem>>, vector<1x8x32xf32>
    %699 = vector.shape_cast %698 : vector<1x8x32xf32> to vector<8x32xf32>
    %c0_196 = arith.constant 0 : index
    %c3_197 = arith.constant 3 : index
    %c0_198 = arith.constant 0 : index
    %700 = vector.load %arg8[%c0_196, %c3_197, %c0_198] : memref<8x8x32xf32, #tpu.memory_space<vmem>>, vector<8x1x32xf32>
    %701 = vector.shape_cast %700 : vector<8x1x32xf32> to vector<8x32xf32>
    %702 = vector.shape_cast %699 : vector<8x32xf32> to vector<8x1x32xf32>
    tpu.vector_store %arg8[%c0_196, %c3_197, %c0_198], %702 {strides = array<i32>} : memref<8x8x32xf32, #tpu.memory_space<vmem>>, vector<8x1x32xf32>,
    %c4 = arith.constant 4 : index
    %c0_199 = arith.constant 0 : index
    %c0_200 = arith.constant 0 : index
    %703 = vector.load %arg12[%c4, %c0_199, %c0_200] : memref<8x8x32xf32, #tpu.memory_space<vmem>>, vector<1x8x32xf32>
    %704 = vector.shape_cast %703 : vector<1x8x32xf32> to vector<8x32xf32>
    %c0_201 = arith.constant 0 : index
    %c4_202 = arith.constant 4 : index
    %c0_203 = arith.constant 0 : index
    %705 = vector.load %arg7[%c0_201, %c4_202, %c0_203] : memref<8x8x32xf32, #tpu.memory_space<vmem>>, vector<8x1x32xf32>
    %706 = vector.shape_cast %705 : vector<8x1x32xf32> to vector<8x32xf32>
    %707 = vector.shape_cast %704 : vector<8x32xf32> to vector<8x1x32xf32>
    tpu.vector_store %arg7[%c0_201, %c4_202, %c0_203], %707 {strides = array<i32>} : memref<8x8x32xf32, #tpu.memory_space<vmem>>, vector<8x1x32xf32>,
    %c4_204 = arith.constant 4 : index
    %c0_205 = arith.constant 0 : index
    %c0_206 = arith.constant 0 : index
    %708 = vector.load %arg13[%c4_204, %c0_205, %c0_206] : memref<8x8x32xf32, #tpu.memory_space<vmem>>, vector<1x8x32xf32>
    %709 = vector.shape_cast %708 : vector<1x8x32xf32> to vector<8x32xf32>
    %c0_207 = arith.constant 0 : index
    %c4_208 = arith.constant 4 : index
    %c0_209 = arith.constant 0 : index
    %710 = vector.load %arg8[%c0_207, %c4_208, %c0_209] : memref<8x8x32xf32, #tpu.memory_space<vmem>>, vector<8x1x32xf32>
    %711 = vector.shape_cast %710 : vector<8x1x32xf32> to vector<8x32xf32>
    %712 = vector.shape_cast %709 : vector<8x32xf32> to vector<8x1x32xf32>
    tpu.vector_store %arg8[%c0_207, %c4_208, %c0_209], %712 {strides = array<i32>} : memref<8x8x32xf32, #tpu.memory_space<vmem>>, vector<8x1x32xf32>,
    %c5 = arith.constant 5 : index
    %c0_210 = arith.constant 0 : index
    %c0_211 = arith.constant 0 : index
    %713 = vector.load %arg12[%c5, %c0_210, %c0_211] : memref<8x8x32xf32, #tpu.memory_space<vmem>>, vector<1x8x32xf32>
    %714 = vector.shape_cast %713 : vector<1x8x32xf32> to vector<8x32xf32>
    %c0_212 = arith.constant 0 : index
    %c5_213 = arith.constant 5 : index
    %c0_214 = arith.constant 0 : index
    %715 = vector.load %arg7[%c0_212, %c5_213, %c0_214] : memref<8x8x32xf32, #tpu.memory_space<vmem>>, vector<8x1x32xf32>
    %716 = vector.shape_cast %715 : vector<8x1x32xf32> to vector<8x32xf32>
    %717 = vector.shape_cast %714 : vector<8x32xf32> to vector<8x1x32xf32>
    tpu.vector_store %arg7[%c0_212, %c5_213, %c0_214], %717 {strides = array<i32>} : memref<8x8x32xf32, #tpu.memory_space<vmem>>, vector<8x1x32xf32>,
    %c5_215 = arith.constant 5 : index
    %c0_216 = arith.constant 0 : index
    %c0_217 = arith.constant 0 : index
    %718 = vector.load %arg13[%c5_215, %c0_216, %c0_217] : memref<8x8x32xf32, #tpu.memory_space<vmem>>, vector<1x8x32xf32>
    %719 = vector.shape_cast %718 : vector<1x8x32xf32> to vector<8x32xf32>
    %c0_218 = arith.constant 0 : index
    %c5_219 = arith.constant 5 : index
    %c0_220 = arith.constant 0 : index
    %720 = vector.load %arg8[%c0_218, %c5_219, %c0_220] : memref<8x8x32xf32, #tpu.memory_space<vmem>>, vector<8x1x32xf32>
    %721 = vector.shape_cast %720 : vector<8x1x32xf32> to vector<8x32xf32>
    %722 = vector.shape_cast %719 : vector<8x32xf32> to vector<8x1x32xf32>
    tpu.vector_store %arg8[%c0_218, %c5_219, %c0_220], %722 {strides = array<i32>} : memref<8x8x32xf32, #tpu.memory_space<vmem>>, vector<8x1x32xf32>,
    %c6 = arith.constant 6 : index
    %c0_221 = arith.constant 0 : index
    %c0_222 = arith.constant 0 : index
    %723 = vector.load %arg12[%c6, %c0_221, %c0_222] : memref<8x8x32xf32, #tpu.memory_space<vmem>>, vector<1x8x32xf32>
    %724 = vector.shape_cast %723 : vector<1x8x32xf32> to vector<8x32xf32>
    %c0_223 = arith.constant 0 : index
    %c6_224 = arith.constant 6 : index
    %c0_225 = arith.constant 0 : index
    %725 = vector.load %arg7[%c0_223, %c6_224, %c0_225] : memref<8x8x32xf32, #tpu.memory_space<vmem>>, vector<8x1x32xf32>
    %726 = vector.shape_cast %725 : vector<8x1x32xf32> to vector<8x32xf32>
    %727 = vector.shape_cast %724 : vector<8x32xf32> to vector<8x1x32xf32>
    tpu.vector_store %arg7[%c0_223, %c6_224, %c0_225], %727 {strides = array<i32>} : memref<8x8x32xf32, #tpu.memory_space<vmem>>, vector<8x1x32xf32>,
    %c6_226 = arith.constant 6 : index
    %c0_227 = arith.constant 0 : index
    %c0_228 = arith.constant 0 : index
    %728 = vector.load %arg13[%c6_226, %c0_227, %c0_228] : memref<8x8x32xf32, #tpu.memory_space<vmem>>, vector<1x8x32xf32>
    %729 = vector.shape_cast %728 : vector<1x8x32xf32> to vector<8x32xf32>
    %c0_229 = arith.constant 0 : index
    %c6_230 = arith.constant 6 : index
    %c0_231 = arith.constant 0 : index
    %730 = vector.load %arg8[%c0_229, %c6_230, %c0_231] : memref<8x8x32xf32, #tpu.memory_space<vmem>>, vector<8x1x32xf32>
    %731 = vector.shape_cast %730 : vector<8x1x32xf32> to vector<8x32xf32>
    %732 = vector.shape_cast %729 : vector<8x32xf32> to vector<8x1x32xf32>
    tpu.vector_store %arg8[%c0_229, %c6_230, %c0_231], %732 {strides = array<i32>} : memref<8x8x32xf32, #tpu.memory_space<vmem>>, vector<8x1x32xf32>,
    %c7 = arith.constant 7 : index
    %c0_232 = arith.constant 0 : index
    %c0_233 = arith.constant 0 : index
    %733 = vector.load %arg12[%c7, %c0_232, %c0_233] : memref<8x8x32xf32, #tpu.memory_space<vmem>>, vector<1x8x32xf32>
    %734 = vector.shape_cast %733 : vector<1x8x32xf32> to vector<8x32xf32>
    %c0_234 = arith.constant 0 : index
    %c7_235 = arith.constant 7 : index
    %c0_236 = arith.constant 0 : index
    %735 = vector.load %arg7[%c0_234, %c7_235, %c0_236] : memref<8x8x32xf32, #tpu.memory_space<vmem>>, vector<8x1x32xf32>
    %736 = vector.shape_cast %735 : vector<8x1x32xf32> to vector<8x32xf32>
    %737 = vector.shape_cast %734 : vector<8x32xf32> to vector<8x1x32xf32>
    tpu.vector_store %arg7[%c0_234, %c7_235, %c0_236], %737 {strides = array<i32>} : memref<8x8x32xf32, #tpu.memory_space<vmem>>, vector<8x1x32xf32>,
    %c7_237 = arith.constant 7 : index
    %c0_238 = arith.constant 0 : index
    %c0_239 = arith.constant 0 : index
    %738 = vector.load %arg13[%c7_237, %c0_238, %c0_239] : memref<8x8x32xf32, #tpu.memory_space<vmem>>, vector<1x8x32xf32>
    %739 = vector.shape_cast %738 : vector<1x8x32xf32> to vector<8x32xf32>
    %c0_240 = arith.constant 0 : index
    %c7_241 = arith.constant 7 : index
    %c0_242 = arith.constant 0 : index
    %740 = vector.load %arg8[%c0_240, %c7_241, %c0_242] : memref<8x8x32xf32, #tpu.memory_space<vmem>>, vector<8x1x32xf32>
    %741 = vector.shape_cast %740 : vector<8x1x32xf32> to vector<8x32xf32>
    %742 = vector.shape_cast %739 : vector<8x32xf32> to vector<8x1x32xf32>
    tpu.vector_store %arg8[%c0_240, %c7_241, %c0_242], %742 {strides = array<i32>} : memref<8x8x32xf32, #tpu.memory_space<vmem>>, vector<8x1x32xf32>,
    return
  }
  func.func @transform_0(%arg0: i32) -> (i32, i32, i32) {
    %c0_i32 = arith.constant 0 : i32
    %c0_i32_0 = arith.constant 0 : i32
    %c0_i32_1 = arith.constant 0 : i32
    return %c0_i32, %arg0, %c0_i32_0 : i32, i32, i32
  }
  func.func @transform_1(%arg0: i32) -> (i32, i32, i32) {
    %c0_i32 = arith.constant 0 : i32
    %c0_i32_0 = arith.constant 0 : i32
    %c0_i32_1 = arith.constant 0 : i32
    return %c0_i32, %arg0, %c0_i32_0 : i32, i32, i32
  }
  func.func @transform_2(%arg0: i32) -> (i32, i32) {
    %c0_i32 = arith.constant 0 : i32
    %c0_i32_0 = arith.constant 0 : i32
    %c0_i32_1 = arith.constant 0 : i32
    return %c0_i32, %c0_i32_0 : i32, i32
  }
  func.func @transform_3(%arg0: i32) -> (i32, i32) {
    %c0_i32 = arith.constant 0 : i32
    %c0_i32_0 = arith.constant 0 : i32
    %c0_i32_1 = arith.constant 0 : i32
    return %c0_i32, %c0_i32_0 : i32, i32
  }
  func.func @transform_4(%arg0: i32) -> (i32, i32) {
    %c0_i32 = arith.constant 0 : i32
    %c0_i32_0 = arith.constant 0 : i32
    %c0_i32_1 = arith.constant 0 : i32
    return %c0_i32, %c0_i32_0 : i32, i32
  }
  func.func @transform_5(%arg0: i32) -> (i32, i32) {
    %c0_i32 = arith.constant 0 : i32
    %c0_i32_0 = arith.constant 0 : i32
    %c0_i32_1 = arith.constant 0 : i32
    return %c0_i32, %c0_i32_0 : i32, i32
  }
  func.func @transform_6(%arg0: i32) -> (i32, i32, i32) {
    %c0_i32 = arith.constant 0 : i32
    %c0_i32_0 = arith.constant 0 : i32
    %c0_i32_1 = arith.constant 0 : i32
    return %arg0, %c0_i32, %c0_i32_0 : i32, i32, i32
  }
  func.func @transform_7(%arg0: i32) -> (i32, i32, i32) {
    %c0_i32 = arith.constant 0 : i32
    %c0_i32_0 = arith.constant 0 : i32
    %c0_i32_1 = arith.constant 0 : i32
    return %arg0, %c0_i32, %c0_i32_0 : i32, i32, i32
  }
  func.func @transform_8(%arg0: i32) -> (i32, i32) {
    %c0_i32 = arith.constant 0 : i32
    %c0_i32_0 = arith.constant 0 : i32
    return %arg0, %c0_i32 : i32, i32
  }
  func.func @transform_9(%arg0: i32) -> (i32, i32) {
    %c0_i32 = arith.constant 0 : i32
    %c0_i32_0 = arith.constant 0 : i32
    return %arg0, %c0_i32 : i32, i32
  }
}

</mosaic_0001>

<bundles_post_ra>
// kernel: init_embed_forward.1
= control target key start
LH: loop header
LB: loop body
LE: loop exit
PB: predicated region body
PF: predicated region fallthrough
CT: control target
= control target key end

     0   :  { %15 = vsyncpa [#allocation6], 0  ;;  %s4308_s0 = inlined_call_operand.vmem [shape: f32[8,8,1], index: 0, kind: input, shape index: {}]   ;;  %s4309_s1 = inlined_call_operand.vmem [shape: f32[8,8,32], index: 1, kind: input, shape index: {}]   ;;  %s4310_s2 = inlined_call_operand.vmem [shape: bf16[32,256], index: 2, kind: input, shape index: {}]   ;;  %s4311_s3 = inlined_call_operand.vmem [shape: bf16[32,128], index: 3, kind: input, shape index: {}]   ;;  %s4312_s4 = inlined_call_operand.vmem [shape: bf16[32,128], index: 4, kind: input, shape index: {}]   ;;  %s4313_s5 = inlined_call_operand.vmem [shape: f32[1,256], index: 5, kind: input, shape index: {}]   ;;  %s4314_s6 = inlined_call_operand.hbm [shape: f32[8,8,32], index: 6, kind: output, shape index: {0}]   ;;  %s4315_s7 = inlined_call_operand.hbm [shape: f32[8,8,32], index: 7, kind: output, shape index: {1}]   ;;  %s4316_s8 = inlined_call_operand.hbm [shape: f32[8,32], index: 8, kind: output, shape index: {2}]   ;;  %s4317_s9 = inlined_call_operand.hbm [shape: f32[8,32], index: 9, kind: output, shape index: {3}]  }
   0x1   :  { %16 = vsyncpa [#allocation8], 0  ;;  %v3062_v0 = vld [vmem:[%s4310_s2 + $0x14] ss:$8 sps:$4 sm:$0xff]   ;;  %v3064_v1 = vld [vmem:[%s4310_s2 + $0x10] ss:$8 sps:$4 sm:$0xff]  }
   0x2   :  { %v3306_v2 = vmov 0.0   ;;  %v3307_v3 = vmov 0   ;;  %104 = vmatprep.subr.bf16.mxu0 %v3062_v0  ;;  %v3378_v4 = vld [vmem:[%s4311_s3 + $0x8] sm:$0xff]   ;;  %vm3308_vm0 = vmmov 0   ;;  %v3392_v7 = vld [vmem:[%s4311_s3] sm:$0xff]   ;;  %vm79_vm1 = vcmask 261120  }
   0x3   :  { %2920 = vmatprep.subr.bf16.mxu1 %v3306_v2  ;;  %124 = vmatprep.mubr.bf16.mxu0 %v3307_v3  ;;  %v3066_v5 = vld [vmem:[%s4310_s2 + $0x4] ss:$8 sps:$4 sm:$0xff]   ;;  %v3068_v6 = vld [vmem:[%s4310_s2] ss:$8 sps:$4 sm:$0xff]  }
   0x4   :  { %3060 = vset.pattern.permute.xlu0 %v3307_v3  ;;  %105 = vmatpush1.bf16.msra.mxu0 %v3064_v1  ;;  %v31_v8 = vld [vmem:[%s4309_s1] sm:$0xff]  ;;  %v32_v9 = vld [vmem:[%s4309_s1 + $0x8] sm:$0xff] }
   0x5   :  { %2924 = vmatprep.mubr.msk.bf16.mxu1 %vm3308_vm0, %v3306_v2  ;;  %2921 = vmatpush3.bf16.msra.mxu1 %v3378_v4  ;;  %v39_v10 = vpack.c.bf16 %v32_v9, %v31_v8  ;;  %v3405_v11 = vld [vmem:[%s4312_s4 + $0x8] sm:$0xff]  }
   0x6   :  { %3061 = vset.pattern.permute.xlu1 %v3307_v3  ;;  %106 = vmatprep.subr.bf16.mxu0 %v3066_v5 }
   0x7   :  { %2922 = vmatprep.subr.bf16.mxu1 %v3306_v2 }
   0x8   :  { %107 = vmatpush1.bf16.msra.mxu0 %v3068_v6 }
   0x9   :  { %2923 = vmatpush3.bf16.msra.mxu1 %v3392_v7  ;;  %2952 = vmatprep.subr.bf16.mxu0 %v3306_v2 }
   0xa   :  { %2928 = vmatprep.subr.bf16.mxu1 %v3306_v2 }
   0xb   :  { %17 = vsyncpa [#allocation11], 0  ;;  %2820 = vmatmul.mubr.msk.bf16.vlgmr.msra.gmra.mxu0 %vm79_vm1, %v39_v10  ;;  %v33_v12 = vld [vmem:[%s4309_s1 + $0x10] sm:$0xff]  ;;  %v34_v13 = vld [vmem:[%s4309_s1 + $0x18] sm:$0xff]  ;;  %v49_v22 = vlaneseq  ;;  %s3310_s23 = smov 64   ;;  %vm1743_vm2 = vcmask 253952  }
   0xc   :  { %2925 = vmatmul.mubr.bf16.vlgmr.msra.gmra.mxu1 %v3307_v3  ;;  %134 = vmatprep.mubr.bf16.mxu0 %v3307_v3  ;;  %v3420_v14 = vld [vmem:[%s4312_s4] sm:$0xff]   ;;  %v40_v15 = vpack.c.bf16 %v34_v13, %v33_v12  ;;  %v36_v17 = vld [vmem:[%s4309_s1 + $0x28] sm:$0xff]  ;;  %v37_v19 = vld [vmem:[%s4309_s1 + $0x30] sm:$0xff] }
   0xd   :  { %2929 = vmatpush3.bf16.msra.mxu1 %v3405_v11  ;;  %2932 = vmatprep.mubr.msk.bf16.mxu1 %vm3308_vm0, %v3306_v2  ;;  %v35_v16 = vld [vmem:[%s4309_s1 + $0x20] sm:$0xff]  ;;  %v38_v20 = vld [vmem:[%s4309_s1 + $0x38] sm:$0xff]  ;;  %v3454_v23 = vshrl.u32 %v49_v22, 7  ;;  %s3309_s1 = smov 32  }
   0xe   :  { %2930 = vmatprep.subr.bf16.mxu1 %v3306_v2  ;;  %2953 = vmatpush3.bf16.msra.mxu0 %v3378_v4  ;;  %v41_v18 = vpack.c.bf16 %v36_v17, %v35_v16  ;;  %v42_v21 = vpack.c.bf16 %v38_v20, %v37_v19  ;;  %v47_v25 = vld [vmem:[%s4313_s5] sm:$0x3] }
   0xf   :  { %2954 = vmatprep.subr.bf16.mxu0 %v3306_v2  ;;  %v51_v24 = vsub.s32 0, %v3454_v23  ;;  %v55_v26 = vsub.s32 1, %v3454_v23  ;;  %v192_v13 = vld [vmem:[%s4308_s0] sm:$0xff] }
  0x11   :  { %2931 = vmatpush3.bf16.msra.mxu1 %v3420_v14  ;;  %v52_v27 = vrot.slane %v47_v25, %v51_v24  ;;  %v56_v28 = vrot.slane %v47_v25, %v55_v26 }
  0x12   :  { %2936 = vmatprep.subr.bf16.mxu1 %v3306_v2  ;;  %2955 = vmatpush3.bf16.msra.mxu0 %v3392_v7 }
  0x13   :  { %2821 = vmatmul.mubr.msk.bf16.gmra.mxu0 %vm79_vm1, %v40_v15  ;;  %2968 = vmatprep.subr.bf16.mxu0 %v3306_v2 }
  0x14   :  { %144 = vmatprep.mubr.bf16.mxu0 %v3307_v3  ;;  %2933 = vmatmul.mubr.bf16.vlgmr.msra.gmra.mxu1 %v3307_v3 }
  0x15   :  { %2937 = vmatpush3.bf16.msra.mxu1 %v3378_v4  ;;  %2940 = vmatprep.mubr.msk.bf16.mxu1 %vm3308_vm0, %v3306_v2 }
  0x16   :  { %2938 = vmatprep.subr.bf16.mxu1 %v3306_v2 }
  0x19   :  { %2939 = vmatpush3.bf16.msra.mxu1 %v3392_v7 }
  0x1a   :  { %2944 = vmatprep.subr.bf16.mxu1 %v3306_v2 }
  0x1b   :  { %2822 = vmatmul.mubr.msk.bf16.gmra.mxu0 %vm79_vm1, %v41_v18 }
  0x1c   :  { %154 = vmatprep.mubr.bf16.mxu0 %v3307_v3 }
  0x23   :  { %2823 = vmatmul.mubr.msk.bf16.gmra.mxu0 %vm79_vm1, %v42_v21 }
  0x24   :  { %2956 = vmatprep.mubr.msk.bf16.mxu0 %vm3308_vm0, %v3306_v2 }
  0xcb   :  { %v126_v29 = vpop.f32.mrf.mxu0 }
  0xcc   :  { %v127_v30 = vadd.f32 %v126_v29, %v52_v27  ;;  %v244_v31 = vpop.f32.mrf.mxu1 }
  0xcd   :  { %v128_v32 = vpop.f32.mrf.mxu0 }
  0xce   :  { %v3461_v33 = vadd.f32 %v128_v32, %v56_v28  ;;  %v250_v34 = vadd.f32 %v244_v31, %v127_v30  ;;  %v2926_v35 = vpop.f32.mrf.mxu1  ;;  %v2824_v32 = vld [vmem:[%s4308_s0 + $0x38] sm:$0xff] }
  0xcf   :  { %v130_v36 = vpop.f32.mrf.mxu0 }
  0xd0   :  { %3088 = vtanh.f32 %v250_v34  ;;  %v3463_v37 = vadd.f32 %v130_v36, %v52_v27  ;;  %v247_v38 = vpop.f32.mrf.mxu1  ;;  %v2827_v15 = vmul.f32 -1.442695, %v250_v34 }
  0xd1   :  { %v132_v39 = vpop.f32.mrf.mxu0 }
  0xd2   :  { %v3465_v40 = vadd.f32 %v132_v39, %v56_v28  ;;  %v2927_v41 = vpop.f32.mrf.mxu1 }
  0xd3   :  { %v136_v42 = vpop.f32.mrf.mxu0 }
  0xd4   :  { %v3467_v43 = vadd.f32 %v136_v42, %v52_v27  ;;  %v321_v44 = vpop.f32.mrf.mxu1 }
  0xd5   :  { %v138_v45 = vpop.f32.mrf.mxu0 }
  0xd6   :  { %v3469_v46 = vadd.f32 %v138_v45, %v56_v28  ;;  %v2934_v47 = vpop.f32.mrf.mxu1 }
  0xd7   :  { %v140_v48 = vpop.f32.mrf.mxu0 }
  0xd8   :  { %v3471_v49 = vadd.f32 %v140_v48, %v52_v27  ;;  %v324_v50 = vpop.f32.mrf.mxu1 }
  0xd9   :  { %v142_v51 = vpop.f32.mrf.mxu0 }
  0xda   :  { %v3473_v52 = vadd.f32 %v142_v51, %v56_v28  ;;  %v2935_v53 = vpop.f32.mrf.mxu1 }
  0xdb   :  { %v146_v54 = vpop.f32.mrf.mxu0 }
  0xdc   :  { %v3475_v55 = vadd.f32 %v146_v54, %v52_v27 }
  0xdd   :  { %v3089_v56 = vpop.eup %3088  ;;  %v148_v57 = vpop.f32.mrf.mxu0 }
  0xde   :  { %v3477_v58 = vadd.f32 %v148_v57, %v56_v28  ;;  %260 = vrot.lane.b32.xlu0 %v3089_v56, %s3309_s1 }
  0xdf   :  { %v150_v59 = vpop.f32.mrf.mxu0 }
  0xe0   :  { %v3480_v60 = vadd.f32 %v150_v59, %v52_v27 }
  0xe1   :  { %v152_v61 = vpop.f32.mrf.mxu0 }
  0xe2   :  { %v3482_v62 = vadd.f32 %v152_v61, %v56_v28 }
  0xe3   :  { %v156_v63 = vpop.f32.mrf.mxu0 }
  0xe4   :  { %v3484_v0 = vadd.f32 %v156_v63, %v52_v27 }
  0xe5   :  { %v158_v1 = vpop.f32.mrf.mxu0 }
  0xe6   :  { %v3486_v3 = vadd.f32 %v158_v1, %v56_v28 }
  0xe7   :  { %v160_v5 = vpop.f32.mrf.mxu0 }
  0xe8   :  { %v3488_v6 = vadd.f32 %v160_v5, %v52_v27 }
  0xe9   :  { %v162_v8 = vpop.f32.mrf.mxu0 }
  0xea   :  { %v163_v9 = vadd.f32 %v162_v8, %v56_v28 }
  0xec   :  { %v327_v10 = vadd.f32 %v321_v44, %v163_v9 }
  0xee   :  { %3090 = vtanh.f32 %v327_v10  ;;  %v2830_v18 = vmul.f32 -1.442695, %v327_v10 }
  0xef   :  { %3092 = vpow2.f32 %v2827_v15 }
  0xfb   :  { %v3091_v12 = vpop.eup %3090 }
  0xfc   :  { %337 = vrot.lane.b32.xlu0 %v3091_v12, %s3309_s1  ;;  %v3093_v16 = vpop.eup %3092 }
  0xfd   :  { %v254_v17 = vadd.f32 1.0, %v3093_v16 }
  0xff   :  { %3094 = vrcp.f32 %v254_v17 }
 0x100   :  { %354 = vperm.xlu0 %3060, %v192_v13   ;;  %3096 = vpow2.f32 %v2830_v18 }
 0x10c   :  { %v3095_v19 = vpop.eup %3094 }
 0x10d   :  { %v3097_v22 = vpop.eup %3096  ;;  %v258_v28 = vmul.f32 0.0, %v3095_v19 }
 0x10e   :  { %v331_v24 = vadd.f32 1.0, %v3097_v22 }
 0x110   :  { %3098 = vrcp.f32 %v331_v24 }
 0x11d   :  { %v3099_v25 = vpop.eup %3098 }
 0x11e   :  { %v335_v34 = vmul.f32 0.0, %v3099_v25 }
 0x150   :  { %v261_v20 = vpop.permute.xlu0 %260 }
 0x151   :  { %v263_v21 = vmul.f32 %v3095_v19, %v261_v20 }
 0x153   :  { %265 = vrot.lane.b32.xlu1 %v263_v21, %s3309_s1 }
 0x16e   :  { %v338_v26 = vpop.permute.xlu0 %337 }
 0x16f   :  { %v340_v27 = vmul.f32 %v3099_v25, %v338_v26 }
 0x171   :  { %342 = vrot.lane.b32.xlu1 %v340_v27, %s3309_s1  ;;  %v3543_v27 = vld [vmem:[%s4308_s0 + $0x30] sm:$0xff] }
 0x17b   :  { %v3507_v42 = vpop.permute.xlu0 %354 }
 0x1c5   :  { %v266_v29 = vpop.permute.xlu1 %265 }
 0x1c6   :  { %v3496_v30 = vadd.f32 %v266_v29, %v258_v28  ;;  %v3549_v28 = vld [vmem:[%s4308_s0 + $0x8] sm:$0xff] }
 0x1c8   :  { %3100 = vtanh.f32 %v3496_v30 }
 0x1d5   :  { %v3101_v31 = vpop.eup %3100 }
 0x1d6   :  { %271 = vrot.lane.b32.xlu1 %v3101_v31, %s3309_s1  ;;  %v3557_v31 = vmul.f32 %v3507_v42, %v3496_v30 }
 0x1da   :  { %365 = vperm.xlu1 %3061, %v2824_v32  }
 0x1e3   :  { %v343_v35 = vpop.permute.xlu1 %342 }
 0x1e4   :  { %v3503_v36 = vadd.f32 %v343_v35, %v335_v34 }
 0x1e6   :  { %3102 = vtanh.f32 %v3503_v36 }
 0x1f3   :  { %v3103_v38 = vpop.eup %3102 }
 0x1f4   :  { %348 = vrot.lane.b32.xlu0 %v3103_v38, %s3309_s1 }
 0x248   :  { %v272_v39 = vpop.permute.xlu1 %271 }
 0x249   :  { %v274_v41 = vmul.f32 %v3095_v19, %v272_v39 }
 0x24b   :  { %v3510_v44 = vmul.f32 %v3507_v42, %v274_v41 }
 0x24d   :  { %v389_v45 = vpack.c.bf16 %v3510_v44, %v3510_v44 }
 0x24f   :  { %391 = vrot.lane.b32.xlu1 %v389_v45, %s3310_s23 }
 0x255   :  { %v366_v50 = vpop.permute.xlu1 %365 }
 0x256   :  { %v3553_v29 = vmul.f32 %v366_v50, %v3503_v36 }
 0x266   :  { %v349_v47 = vpop.permute.xlu0 %348 }
 0x267   :  { %v351_v48 = vmul.f32 %v3099_v25, %v349_v47 }
 0x269   :  { %v3515_v51 = vmul.f32 %v366_v50, %v351_v48 }
 0x26b   :  { %v461_v53 = vpack.c.bf16 %v3515_v51, %v3515_v51 }
 0x26d   :  { %463 = vrot.lane.b32.xlu0 %v461_v53, %s3310_s23 }
 0x2c1   :  { %v392_v54 = vpop.permute.xlu1 %391 }
 0x2c2   :  { %2941 = vmatmul.mubr.msk.bf16.vlgmr.msra.gmra.mxu1 %vm79_vm1, %v392_v54 }
 0x2c3   :  { %2945 = vmatpush3.bf16.msra.mxu1 %v3405_v11  ;;  %2948 = vmatprep.mubr.msk.bf16.mxu1 %vm3308_vm0, %v3306_v2 }
 0x2c4   :  { %2946 = vmatprep.subr.bf16.mxu1 %v3306_v2 }
 0x2c7   :  { %2947 = vmatpush3.bf16.msra.mxu1 %v3420_v14 }
 0x2c8   :  { %2960 = vmatprep.subr.bf16.mxu1 %v3306_v2 }
 0x2df   :  { %v464_v56 = vpop.permute.xlu0 %463 }
 0x2e0   :  { %2949 = vmatmul.mubr.msk.bf16.vlgmr.msra.gmra.mxu1 %vm79_vm1, %v464_v56 }
 0x2e1   :  { %2961 = vmatpush3.bf16.msra.mxu1 %v3405_v11  ;;  %2964 = vmatprep.mubr.msk.bf16.mxu1 %vm3308_vm0, %v3306_v2 }
 0x2e2   :  { %2962 = vmatprep.subr.bf16.mxu1 %v3306_v2 }
 0x2e5   :  { %2963 = vmatpush3.bf16.msra.mxu1 %v3420_v14 }
 0x2e6   :  { %2976 = vmatprep.subr.bf16.mxu1 %v3306_v2 }
 0x382   :  { %v430_v57 = vpop.f32.mrf.mxu1 }
 0x383   :  { %v436_v59 = vadd.f32 %v430_v57, %v3463_v37 }
 0x384   :  { %v2942_v61 = vpop.f32.mrf.mxu1 }
 0x385   :  { %3104 = vtanh.f32 %v436_v59  ;;  %v2834_v16 = vmul.f32 -1.442695, %v436_v59 }
 0x386   :  { %v433_v63 = vpop.f32.mrf.mxu1 }
 0x388   :  { %v2943_v1 = vpop.f32.mrf.mxu1 }
 0x392   :  { %v3105_v5 = vpop.eup %3104 }
 0x393   :  { %446 = vrot.lane.b32.xlu0 %v3105_v5, %s3309_s1 }
 0x3a0   :  { %v502_v8 = vpop.f32.mrf.mxu1 }
 0x3a1   :  { %v508_v9 = vadd.f32 %v502_v8, %v3486_v3 }
 0x3a2   :  { %v2950_v10 = vpop.f32.mrf.mxu1 }
 0x3a3   :  { %3106 = vtanh.f32 %v508_v9  ;;  %v2836_v18 = vmul.f32 -1.442695, %v508_v9 }
 0x3a4   :  { %v505_v12 = vpop.f32.mrf.mxu1  ;;  %3108 = vpow2.f32 %v2834_v16 }
 0x3a6   :  { %v2951_v13 = vpop.f32.mrf.mxu1 }
 0x3b0   :  { %v3107_v15 = vpop.eup %3106 }
 0x3b1   :  { %518 = vrot.lane.b32.xlu1 %v3107_v15, %s3309_s1  ;;  %v3109_v37 = vpop.eup %3108 }
 0x3b2   :  { %v440_v17 = vadd.f32 1.0, %v3109_v37 }
 0x3b4   :  { %3110 = vrcp.f32 %v440_v17 }
 0x3b5   :  { %3112 = vpow2.f32 %v2836_v18 }
 0x3c1   :  { %v3111_v19 = vpop.eup %3110 }
 0x3c2   :  { %v3113_v3 = vpop.eup %3112  ;;  %v444_v38 = vmul.f32 %v3111_v19, %v3557_v31 }
 0x3c3   :  { %v512_v22 = vadd.f32 1.0, %v3113_v3 }
 0x3c5   :  { %3114 = vrcp.f32 %v512_v22 }
 0x3d2   :  { %v3115_v24 = vpop.eup %3114 }
 0x3d3   :  { %v516_v32 = vmul.f32 %v3115_v24, %v3553_v29 }
 0x405   :  { %v447_v20 = vpop.permute.xlu0 %446 }
 0x406   :  { %v449_v21 = vmul.f32 %v3111_v19, %v447_v20 }
 0x408   :  { %451 = vrot.lane.b32.xlu0 %v449_v21, %s3309_s1 }
 0x423   :  { %v519_v25 = vpop.permute.xlu1 %518 }
 0x424   :  { %v521_v26 = vmul.f32 %v3115_v24, %v519_v25 }
 0x426   :  { %523 = vrot.lane.b32.xlu1 %v521_v26, %s3309_s1 }
 0x42a   :  { %547 = vperm.xlu1 %3061, %v3543_v27  }
 0x42e   :  { %535 = vperm.xlu1 %3061, %v3549_v28  }
 0x47a   :  { %v452_v34 = vpop.permute.xlu0 %451 }
 0x47b   :  { %v3563_v41 = vadd.f32 %v452_v34, %v444_v38 }
 0x498   :  { %v524_v35 = vpop.permute.xlu1 %523 }
 0x499   :  { %v3561_v39 = vadd.f32 %v524_v35, %v516_v32 }
 0x49b   :  { %3116 = vtanh.f32 %v3561_v39 }
 0x49c   :  { %3118 = vtanh.f32 %v3563_v41 }
 0x4a5   :  { %v3571_v47 = vpop.permute.xlu1 %547 }
 0x4a8   :  { %v3117_v36 = vpop.eup %3116 }
 0x4a9   :  { %529 = vrot.lane.b32.xlu0 %v3117_v36, %s3309_s1  ;;  %v3119_v45 = vpop.eup %3118  ;;  %v3583_v59 = vpop.permute.xlu1 %535 }
 0x4ad   :  { %457 = vrot.lane.b32.xlu0 %v3119_v45, %s3309_s1  ;;  %v3617_v45 = vld [vmem:[%s4308_s0 + $0x28] sm:$0xff] }
 0x51b   :  { %v530_v30 = vpop.permute.xlu0 %529 }
 0x51c   :  { %v3569_v42 = vmul.f32 %v3115_v24, %v530_v30 }
 0x51e   :  { %v563_v48 = vsub.f32 %v3569_v42, %v3515_v51 }
 0x51f   :  { %v458_v50 = vpop.permute.xlu0 %457 }
 0x520   :  { %v564_v53 = vmul.f32 %v563_v48, %v3571_v47  ;;  %v3576_v54 = vmul.f32 %v3111_v19, %v458_v50  ;;  %v3624_v48 = vld [vmem:[%s4308_s0 + $0x10] sm:$0xff]  ;;  %v566_v50 = vsub.f32 %v3561_v39, %v3553_v29 }
 0x522   :  { %v3579_v56 = vadd.f32 %v564_v53, %v3515_v51  ;;  %v557_v57 = vsub.f32 %v3576_v54, %v3510_v44  ;;  %v567_v53 = vmul.f32 %v566_v50, %v3571_v47 }
 0x524   :  { %v558_v61 = vmul.f32 %v557_v57, %v3583_v59  ;;  %v649_v63 = vpack.c.bf16 %v3579_v56, %v3579_v56  ;;  %v560_v57 = vsub.f32 %v3563_v41, %v3557_v31 }
 0x526   :  { %v3589_v1 = vadd.f32 %v558_v61, %v3510_v44  ;;  %651 = vrot.lane.b32.xlu1 %v649_v63, %s3310_s23  ;;  %v3633_v61 = vadd.f32 %v567_v53, %v3553_v29  ;;  %v561_v63 = vmul.f32 %v560_v57, %v3583_v59 }
 0x528   :  { %v577_v5 = vpack.c.bf16 %v3589_v1, %v3589_v1 }
 0x52a   :  { %579 = vrot.lane.b32.xlu0 %v577_v5, %s3310_s23 }
 0x598   :  { %v652_v8 = vpop.permute.xlu1 %651 }
 0x599   :  { %2965 = vmatmul.mubr.msk.bf16.vlgmr.msra.gmra.mxu1 %vm79_vm1, %v652_v8 }
 0x59a   :  { %2977 = vmatpush3.bf16.msra.mxu1 %v3405_v11  ;;  %2980 = vmatprep.mubr.msk.bf16.mxu1 %vm3308_vm0, %v3306_v2 }
 0x59b   :  { %2978 = vmatprep.subr.bf16.mxu1 %v3306_v2 }
 0x59c   :  { %v580_v9 = vpop.permute.xlu0 %579 }
 0x59d   :  { %2957 = vmatmul.mubr.msk.bf16.vlgmr.msra.gmra.mxu0 %vm79_vm1, %v580_v9  ;;  %v3638_v9 = vadd.f32 %v561_v63, %v3557_v31 }
 0x59e   :  { %2969 = vmatpush3.bf16.msra.mxu0 %v3378_v4  ;;  %2979 = vmatpush3.bf16.msra.mxu1 %v3420_v14 }
 0x59f   :  { %2970 = vmatprep.subr.bf16.mxu0 %v3306_v2  ;;  %2972 = vmatprep.mubr.msk.bf16.mxu0 %vm3308_vm0, %v3306_v2 }
 0x5a0   :  { %2992 = vmatprep.subr.bf16.mxu1 %v3306_v2 }
 0x5a2   :  { %2971 = vmatpush3.bf16.msra.mxu0 %v3392_v7 }
 0x5a3   :  { %2984 = vmatprep.subr.bf16.mxu0 %v3306_v2 }
 0x659   :  { %v690_v10 = vpop.f32.mrf.mxu1 }
 0x65a   :  { %v696_v12 = vadd.f32 %v690_v10, %v3482_v62 }
 0x65b   :  { %v2966_v13 = vpop.f32.mrf.mxu1 }
 0x65c   :  { %3120 = vtanh.f32 %v696_v12  ;;  %v2842_v22 = vmul.f32 -1.442695, %v696_v12 }
 0x65d   :  { %v618_v15 = vpop.f32.mrf.mxu0  ;;  %v693_v16 = vpop.f32.mrf.mxu1 }
 0x65e   :  { %v624_v37 = vadd.f32 %v618_v15, %v3467_v43 }
 0x65f   :  { %v2958_v17 = vpop.f32.mrf.mxu0  ;;  %v2967_v18 = vpop.f32.mrf.mxu1 }
 0x660   :  { %3122 = vtanh.f32 %v624_v37  ;;  %v2840_v62 = vmul.f32 -1.442695, %v624_v37 }
 0x661   :  { %v621_v19 = vpop.f32.mrf.mxu0  ;;  %3124 = vpow2.f32 %v2842_v22 }
 0x662   :  { %3126 = vpow2.f32 %v2840_v62 }
 0x663   :  { %v2959_v20 = vpop.f32.mrf.mxu0 }
 0x669   :  { %v3121_v21 = vpop.eup %3120 }
 0x66a   :  { %706 = vrot.lane.b32.xlu1 %v3121_v21, %s3309_s1 }
 0x66d   :  { %v3123_v3 = vpop.eup %3122 }
 0x66e   :  { %634 = vrot.lane.b32.xlu0 %v3123_v3, %s3309_s1  ;;  %v3125_v24 = vpop.eup %3124 }
 0x66f   :  { %v700_v25 = vadd.f32 1.0, %v3125_v24  ;;  %v3127_v26 = vpop.eup %3126 }
 0x670   :  { %v628_v43 = vadd.f32 1.0, %v3127_v26 }
 0x671   :  { %3128 = vrcp.f32 %v700_v25 }
 0x672   :  { %3130 = vrcp.f32 %v628_v43 }
 0x67e   :  { %v3129_v32 = vpop.eup %3128 }
 0x67f   :  { %v3131_v38 = vpop.eup %3130  ;;  %v704_v5 = vmul.f32 %v3129_v32, %v3633_v61 }
 0x680   :  { %v632_v39 = vmul.f32 %v3131_v38, %v3638_v9 }
 0x6dc   :  { %v707_v34 = vpop.permute.xlu1 %706 }
 0x6dd   :  { %v709_v35 = vmul.f32 %v3129_v32, %v707_v34 }
 0x6df   :  { %711 = vrot.lane.b32.xlu1 %v709_v35, %s3309_s1 }
 0x6e0   :  { %v635_v36 = vpop.permute.xlu0 %634 }
 0x6e1   :  { %v637_v30 = vmul.f32 %v3131_v38, %v635_v36 }
 0x6e3   :  { %639 = vrot.lane.b32.xlu0 %v637_v30, %s3309_s1  ;;  %735 = vperm.xlu1 %3061, %v3617_v45  }
 0x6e7   :  { %723 = vperm.xlu1 %3061, %v3624_v48  }
 0x751   :  { %v712_v8 = vpop.permute.xlu1 %711 }
 0x752   :  { %v3640_v10 = vadd.f32 %v712_v8, %v704_v5 }
 0x754   :  { %3132 = vtanh.f32 %v3640_v10 }
 0x755   :  { %v640_v12 = vpop.permute.xlu0 %639 }
 0x756   :  { %v3644_v13 = vadd.f32 %v640_v12, %v632_v39 }
 0x758   :  { %3134 = vtanh.f32 %v3644_v13 }
 0x75e   :  { %v3651_v16 = vpop.permute.xlu1 %735 }
 0x761   :  { %v3133_v29 = vpop.eup %3132 }
 0x762   :  { %717 = vrot.lane.b32.xlu0 %v3133_v29, %s3309_s1  ;;  %v3663_v3 = vpop.permute.xlu1 %723 }
 0x765   :  { %v3135_v41 = vpop.eup %3134 }
 0x766   :  { %645 = vrot.lane.b32.xlu0 %v3135_v41, %s3309_s1 }
 0x7d4   :  { %v718_v15 = vpop.permute.xlu0 %717 }
 0x7d5   :  { %v3649_v31 = vmul.f32 %v3129_v32, %v718_v15 }
 0x7d7   :  { %v751_v37 = vsub.f32 %v3649_v31, %v3579_v56 }
 0x7d8   :  { %v646_v17 = vpop.permute.xlu0 %645 }
 0x7d9   :  { %v752_v18 = vmul.f32 %v751_v37, %v3651_v16  ;;  %v3656_v19 = vmul.f32 %v3131_v38, %v646_v17 }
 0x7db   :  { %v3659_v20 = vadd.f32 %v752_v18, %v3579_v56  ;;  %v745_v21 = vsub.f32 %v3656_v19, %v3589_v1  ;;  %v3697_v18 = vld [vmem:[%s4308_s0 + $0x20] sm:$0xff] }
 0x7dd   :  { %v746_v22 = vmul.f32 %v745_v21, %v3663_v3  ;;  %v837_v62 = vpack.c.bf16 %v3659_v20, %v3659_v20 }
 0x7df   :  { %v3669_v24 = vadd.f32 %v746_v22, %v3589_v1  ;;  %839 = vrot.lane.b32.xlu1 %v837_v62, %s3310_s23  ;;  %v3704_v22 = vld [vmem:[%s4308_s0 + $0x18] sm:$0xff]  ;;  %v754_v62 = vsub.f32 %v3640_v10, %v3633_v61 }
 0x7e1   :  { %v765_v25 = vpack.c.bf16 %v3669_v24, %v3669_v24 }
 0x7e3   :  { %767 = vrot.lane.b32.xlu0 %v765_v25, %s3310_s23  ;;  %v755_v25 = vmul.f32 %v754_v62, %v3651_v16 }
 0x851   :  { %v840_v56 = vpop.permute.xlu1 %839 }
 0x852   :  { %2981 = vmatmul.mubr.msk.bf16.vlgmr.msra.gmra.mxu1 %vm79_vm1, %v840_v56  ;;  %v748_v56 = vsub.f32 %v3644_v13, %v3638_v9 }
 0x853   :  { %2993 = vmatpush3.bf16.msra.mxu1 %v3405_v11  ;;  %2996 = vmatprep.mubr.msk.bf16.mxu1 %vm3308_vm0, %v3306_v2 }
 0x854   :  { %2994 = vmatprep.subr.bf16.mxu1 %v3306_v2 }
 0x855   :  { %v768_v26 = vpop.permute.xlu0 %767 }
 0x856   :  { %2973 = vmatmul.mubr.msk.bf16.vlgmr.msra.gmra.mxu0 %vm79_vm1, %v768_v26  ;;  %v3713_v26 = vadd.f32 %v755_v25, %v3633_v61 }
 0x857   :  { %2985 = vmatpush3.bf16.msra.mxu0 %v3378_v4  ;;  %2995 = vmatpush3.bf16.msra.mxu1 %v3420_v14 }
 0x858   :  { %2986 = vmatprep.subr.bf16.mxu0 %v3306_v2  ;;  %2988 = vmatprep.mubr.msk.bf16.mxu0 %vm3308_vm0, %v3306_v2 }
 0x859   :  { %3008 = vmatprep.subr.bf16.mxu1 %v3306_v2 }
 0x85b   :  { %2987 = vmatpush3.bf16.msra.mxu0 %v3392_v7 }
 0x85c   :  { %3000 = vmatprep.subr.bf16.mxu0 %v3306_v2 }
 0x912   :  { %v878_v1 = vpop.f32.mrf.mxu1 }
 0x913   :  { %v884_v43 = vadd.f32 %v878_v1, %v3477_v58  ;;  %v749_v1 = vmul.f32 %v748_v56, %v3663_v3 }
 0x914   :  { %v2982_v32 = vpop.f32.mrf.mxu1 }
 0x915   :  { %3136 = vtanh.f32 %v884_v43  ;;  %v2848_v5 = vmul.f32 -1.442695, %v884_v43 }
 0x916   :  { %v806_v34 = vpop.f32.mrf.mxu0  ;;  %v881_v35 = vpop.f32.mrf.mxu1 }
 0x917   :  { %v812_v38 = vadd.f32 %v806_v34, %v3471_v49  ;;  %v3718_v34 = vadd.f32 %v749_v1, %v3638_v9 }
 0x918   :  { %v2974_v36 = vpop.f32.mrf.mxu0  ;;  %v2983_v30 = vpop.f32.mrf.mxu1 }
 0x919   :  { %3138 = vtanh.f32 %v812_v38  ;;  %v2846_v58 = vmul.f32 -1.442695, %v812_v38 }
 0x91a   :  { %v809_v50 = vpop.f32.mrf.mxu0  ;;  %3140 = vpow2.f32 %v2848_v5 }
 0x91b   :  { %3142 = vpow2.f32 %v2846_v58 }
 0x91c   :  { %v2975_v53 = vpop.f32.mrf.mxu0 }
 0x922   :  { %v3137_v57 = vpop.eup %3136 }
 0x923   :  { %894 = vrot.lane.b32.xlu1 %v3137_v57, %s3309_s1 }
 0x926   :  { %v3139_v63 = vpop.eup %3138 }
 0x927   :  { %822 = vrot.lane.b32.xlu0 %v3139_v63, %s3309_s1  ;;  %v3141_v8 = vpop.eup %3140 }
 0x928   :  { %v888_v39 = vadd.f32 1.0, %v3141_v8  ;;  %v3143_v12 = vpop.eup %3142 }
 0x929   :  { %v816_v49 = vadd.f32 1.0, %v3143_v12 }
 0x92a   :  { %3144 = vrcp.f32 %v888_v39 }
 0x92b   :  { %3146 = vrcp.f32 %v816_v49 }
 0x937   :  { %v3145_v29 = vpop.eup %3144 }
 0x938   :  { %v3147_v37 = vpop.eup %3146  ;;  %v892_v43 = vmul.f32 %v3145_v29, %v3713_v26 }
 0x939   :  { %v820_v10 = vmul.f32 %v3147_v37, %v3718_v34 }
 0x995   :  { %v895_v41 = vpop.permute.xlu1 %894 }
 0x996   :  { %v897_v15 = vmul.f32 %v3145_v29, %v895_v41 }
 0x998   :  { %899 = vrot.lane.b32.xlu1 %v897_v15, %s3309_s1 }
 0x999   :  { %v823_v17 = vpop.permute.xlu0 %822 }
 0x99a   :  { %v825_v21 = vmul.f32 %v3147_v37, %v823_v17 }
 0x99c   :  { %827 = vrot.lane.b32.xlu0 %v825_v21, %s3309_s1  ;;  %923 = vperm.xlu1 %3061, %v3697_v18  }
 0x9a0   :  { %911 = vperm.xlu1 %3061, %v3704_v22  }
 0xa0a   :  { %v900_v32 = vpop.permute.xlu1 %899 }
 0xa0b   :  { %v3720_v35 = vadd.f32 %v900_v32, %v892_v43 }
 0xa0d   :  { %3148 = vtanh.f32 %v3720_v35 }
 0xa0e   :  { %v828_v38 = vpop.permute.xlu0 %827 }
 0xa0f   :  { %v3724_v36 = vadd.f32 %v828_v38, %v820_v10 }
 0xa11   :  { %3150 = vtanh.f32 %v3724_v36 }
 0xa17   :  { %v3731_v50 = vpop.permute.xlu1 %923 }
 0xa1a   :  { %v3149_v61 = vpop.eup %3148 }
 0xa1b   :  { %905 = vrot.lane.b32.xlu0 %v3149_v61, %s3309_s1  ;;  %v3743_v39 = vpop.permute.xlu1 %911 }
 0xa1e   :  { %v3151_v13 = vpop.eup %3150 }
 0xa1f   :  { %833 = vrot.lane.b32.xlu0 %v3151_v13, %s3309_s1 }
 0xa8d   :  { %v906_v30 = vpop.permute.xlu0 %905 }
 0xa8e   :  { %v3729_v9 = vmul.f32 %v3145_v29, %v906_v30 }
 0xa90   :  { %v939_v53 = vsub.f32 %v3729_v9, %v3659_v20 }
 0xa91   :  { %v834_v57 = vpop.permute.xlu0 %833 }
 0xa92   :  { %v940_v63 = vmul.f32 %v939_v53, %v3731_v50  ;;  %v3736_v5 = vmul.f32 %v3147_v37, %v834_v57 }
 0xa94   :  { %v3739_v58 = vadd.f32 %v940_v63, %v3659_v20  ;;  %v933_v8 = vsub.f32 %v3736_v5, %v3669_v24 }
 0xa96   :  { %v934_v12 = vmul.f32 %v933_v8, %v3743_v39  ;;  %v1021_v49 = vpack.c.bf16 %v3739_v58, %v3739_v58 }
 0xa98   :  { %v3749_v29 = vadd.f32 %v934_v12, %v3669_v24  ;;  %1023 = vrot.lane.b32.xlu1 %v1021_v49, %s3310_s23 }
 0xa9a   :  { %v949_v41 = vpack.c.bf16 %v3749_v29, %v3749_v29 }
 0xa9c   :  { %951 = vrot.lane.b32.xlu0 %v949_v41, %s3310_s23  ;;  %v942_v41 = vsub.f32 %v3720_v35, %v3713_v26 }
 0xb0a   :  { %v1024_v20 = vpop.permute.xlu1 %1023 }
 0xb0b   :  { %2997 = vmatmul.mubr.msk.bf16.vlgmr.msra.gmra.mxu1 %vm79_vm1, %v1024_v20  ;;  %v943_v20 = vmul.f32 %v942_v41, %v3731_v50 }
 0xb0c   :  { %3009 = vmatpush3.bf16.msra.mxu1 %v3405_v11  ;;  %3012 = vmatprep.mubr.msk.bf16.mxu1 %vm3308_vm0, %v3306_v2 }
 0xb0d   :  { %3010 = vmatprep.subr.bf16.mxu1 %v3306_v2 }
 0xb0e   :  { %v952_v15 = vpop.permute.xlu0 %951 }
 0xb0f   :  { %2989 = vmatmul.mubr.msk.bf16.vlgmr.msra.gmra.mxu0 %vm79_vm1, %v952_v15  ;;  %v936_v15 = vsub.f32 %v3724_v36, %v3718_v34 }
 0xb10   :  { %3001 = vmatpush3.bf16.msra.mxu0 %v3378_v4  ;;  %3011 = vmatpush3.bf16.msra.mxu1 %v3420_v14 }
 0xb11   :  { %3002 = vmatprep.subr.bf16.mxu0 %v3306_v2  ;;  %3004 = vmatprep.mubr.msk.bf16.mxu0 %vm3308_vm0, %v3306_v2 }
 0xb12   :  { %3024 = vmatprep.subr.bf16.mxu1 %v3306_v2 }
 0xb14   :  { %3003 = vmatpush3.bf16.msra.mxu0 %v3392_v7 }
 0xb15   :  { %3016 = vmatprep.subr.bf16.mxu0 %v3306_v2 }
 0xbcb   :  { %v1062_v24 = vpop.f32.mrf.mxu1 }
 0xbcc   :  { %v1068_v37 = vadd.f32 %v1062_v24, %v3473_v52  ;;  %v3783_v24 = vadd.f32 %v943_v20, %v3713_v26 }
 0xbcd   :  { %v2998_v17 = vpop.f32.mrf.mxu1 }
 0xbce   :  { %3152 = vtanh.f32 %v1068_v37  ;;  %v2854_v38 = vmul.f32 -1.442695, %v1068_v37  ;;  %v937_v37 = vmul.f32 %v936_v15, %v3743_v39 }
 0xbcf   :  { %v990_v21 = vpop.f32.mrf.mxu0  ;;  %v1065_v4 = vpop.f32.mrf.mxu1 }
 0xbd0   :  { %v996_v62 = vadd.f32 %v990_v21, %v3475_v55 }
 0xbd1   :  { %v2990_v25 = vpop.f32.mrf.mxu0  ;;  %v2999_v56 = vpop.f32.mrf.mxu1 }
 0xbd2   :  { %3154 = vtanh.f32 %v996_v62  ;;  %v2852_v52 = vmul.f32 -1.442695, %v996_v62 }
 0xbd3   :  { %v993_v1 = vpop.f32.mrf.mxu0  ;;  %3156 = vpow2.f32 %v2854_v38 }
 0xbd4   :  { %3158 = vpow2.f32 %v2852_v52 }
 0xbd5   :  { %v2991_v43 = vpop.f32.mrf.mxu0 }
 0xbdb   :  { %v3153_v32 = vpop.eup %3152 }
 0xbdc   :  { %1078 = vrot.lane.b32.xlu1 %v3153_v32, %s3309_s1 }
 0xbdf   :  { %v3155_v10 = vpop.eup %3154 }
 0xbe0   :  { %1006 = vrot.lane.b32.xlu0 %v3155_v10, %s3309_s1  ;;  %v3157_v61 = vpop.eup %3156 }
 0xbe1   :  { %v1072_v13 = vadd.f32 1.0, %v3157_v61  ;;  %v3159_v30 = vpop.eup %3158 }
 0xbe2   :  { %v1000_v55 = vadd.f32 1.0, %v3159_v30 }
 0xbe3   :  { %3160 = vrcp.f32 %v1072_v13 }
 0xbe4   :  { %3162 = vrcp.f32 %v1000_v55 }
 0xbf0   :  { %v3161_v53 = vpop.eup %3160 }
 0xbf1   :  { %v3163_v8 = vpop.eup %3162  ;;  %v1076_v17 = vmul.f32 %v3161_v53, %v3783_v24 }
 0xc4e   :  { %v1079_v57 = vpop.permute.xlu1 %1078 }
 0xc4f   :  { %v1081_v63 = vmul.f32 %v3161_v53, %v1079_v57 }
 0xc51   :  { %1083 = vrot.lane.b32.xlu1 %v1081_v63, %s3309_s1 }
 0xc52   :  { %v1007_v12 = vpop.permute.xlu0 %1006 }
 0xc53   :  { %v1009_v49 = vmul.f32 %v3163_v8, %v1007_v12 }
 0xc55   :  { %1011 = vrot.lane.b32.xlu0 %v1009_v49, %s3309_s1  ;;  %1107 = vperm.xlu1 %3061, %v3704_v22   ;;  %v3788_v22 = vadd.f32 %v937_v37, %v3718_v34 }
 0xc57   :  { %v1004_v35 = vmul.f32 %v3163_v8, %v3788_v22 }
 0xc59   :  { %1095 = vperm.xlu1 %3061, %v3697_v18  }
 0xcc3   :  { %v1084_v21 = vpop.permute.xlu1 %1083 }
 0xcc4   :  { %v3790_v18 = vadd.f32 %v1084_v21, %v1076_v17 }
 0xcc6   :  { %3164 = vtanh.f32 %v3790_v18 }
 0xcc7   :  { %v1012_v4 = vpop.permute.xlu0 %1011 }
 0xcc8   :  { %v3794_v62 = vadd.f32 %v1012_v4, %v1004_v35 }
 0xcca   :  { %3166 = vtanh.f32 %v3794_v62 }
 0xcd0   :  { %v3801_v56 = vpop.permute.xlu1 %1107 }
 0xcd3   :  { %v3165_v26 = vpop.eup %3164 }
 0xcd4   :  { %1089 = vrot.lane.b32.xlu0 %v3165_v26, %s3309_s1  ;;  %v3813_v61 = vpop.permute.xlu1 %1095 }
 0xcd7   :  { %v3167_v36 = vpop.eup %3166 }
 0xcd8   :  { %1017 = vrot.lane.b32.xlu0 %v3167_v36, %s3309_s1 }
 0xd46   :  { %v1090_v25 = vpop.permute.xlu0 %1089 }
 0xd47   :  { %v3799_v34 = vmul.f32 %v3161_v53, %v1090_v25 }
 0xd49   :  { %v1123_v1 = vsub.f32 %v3799_v34, %v3739_v58 }
 0xd4a   :  { %v1018_v43 = vpop.permute.xlu0 %1017 }
 0xd4b   :  { %v1124_v32 = vmul.f32 %v1123_v1, %v3801_v56  ;;  %v3806_v10 = vmul.f32 %v3163_v8, %v1018_v43 }
 0xd4d   :  { %v3809_v38 = vadd.f32 %v1124_v32, %v3739_v58  ;;  %v1117_v52 = vsub.f32 %v3806_v10, %v3749_v29 }
 0xd4f   :  { %v1118_v13 = vmul.f32 %v1117_v52, %v3813_v61  ;;  %v1205_v30 = vpack.c.bf16 %v3809_v38, %v3809_v38 }
 0xd51   :  { %v3819_v55 = vadd.f32 %v1118_v13, %v3749_v29  ;;  %1207 = vrot.lane.b32.xlu1 %v1205_v30, %s3310_s23  ;;  %v3834_v29 = vld [vmem:[%s4311_s3 + $0x8] sm:$0xff]   ;;  %v1126_v13 = vsub.f32 %v3790_v18, %v3783_v24 }
 0xd53   :  { %v1133_v53 = vpack.c.bf16 %v3819_v55, %v3819_v55  ;;  %v1127_v30 = vmul.f32 %v1126_v13, %v3801_v56 }
 0xd55   :  { %1135 = vrot.lane.b32.xlu0 %v1133_v53, %s3310_s23  ;;  %v1120_v53 = vsub.f32 %v3794_v62, %v3788_v22 }
 0xdc3   :  { %v1208_v58 = vpop.permute.xlu1 %1207 }
 0xdc4   :  { %3013 = vmatmul.mubr.msk.bf16.vlgmr.msra.gmra.mxu1 %vm79_vm1, %v1208_v58  ;;  %v3858_v58 = vadd.f32 %v1127_v30, %v3783_v24 }
 0xdc5   :  { %3025 = vmatpush3.bf16.msra.mxu1 %v3405_v11  ;;  %3028 = vmatprep.mubr.msk.bf16.mxu1 %vm3308_vm0, %v3306_v2 }
 0xdc6   :  { %3026 = vmatprep.subr.bf16.mxu1 %v3306_v2 }
 0xdc7   :  { %v1136_v57 = vpop.permute.xlu0 %1135 }
 0xdc8   :  { %3005 = vmatmul.mubr.msk.bf16.vlgmr.msra.gmra.mxu0 %vm79_vm1, %v1136_v57  ;;  %v1121_v57 = vmul.f32 %v1120_v53, %v3813_v61 }
 0xdc9   :  { %3017 = vmatpush3.bf16.msra.mxu0 %v3834_v29  ;;  %3027 = vmatpush3.bf16.msra.mxu1 %v3420_v14 }
 0xdca   :  { %3018 = vmatprep.subr.bf16.mxu0 %v3306_v2  ;;  %3020 = vmatprep.mubr.msk.bf16.mxu0 %vm3308_vm0, %v3306_v2 }
 0xdcb   :  { %3040 = vmatprep.subr.bf16.mxu1 %v3306_v2 }
 0xdcd   :  { %3019 = vmatpush3.bf16.msra.mxu0 %v3392_v7 }
 0xdce   :  { %3032 = vmatprep.subr.bf16.mxu0 %v3306_v2 }
 0xe84   :  { %v1246_v11 = vpop.f32.mrf.mxu1 }
 0xe85   :  { %v1252_v63 = vadd.f32 %v1246_v11, %v3469_v46 }
 0xe86   :  { %v3014_v8 = vpop.f32.mrf.mxu1 }
 0xe87   :  { %3168 = vtanh.f32 %v1252_v63  ;;  %v2860_v21 = vmul.f32 -1.442695, %v1252_v63 }
 0xe88   :  { %v1174_v12 = vpop.f32.mrf.mxu0  ;;  %v1249_v49 = vpop.f32.mrf.mxu1 }
 0xe89   :  { %v1180_v14 = vadd.f32 %v1174_v12, %v3480_v60 }
 0xe8a   :  { %v3006_v41 = vpop.f32.mrf.mxu0  ;;  %v3015_v20 = vpop.f32.mrf.mxu1 }
 0xe8b   :  { %3170 = vtanh.f32 %v1180_v14  ;;  %v2858_v46 = vmul.f32 -1.442695, %v1180_v14 }
 0xe8c   :  { %v1177_v15 = vpop.f32.mrf.mxu0  ;;  %3172 = vpow2.f32 %v2860_v21 }
 0xe8d   :  { %3174 = vpow2.f32 %v2858_v46 }
 0xe8e   :  { %v3007_v37 = vpop.f32.mrf.mxu0 }
 0xe94   :  { %v3169_v17 = vpop.eup %3168 }
 0xe95   :  { %1262 = vrot.lane.b32.xlu1 %v3169_v17, %s3309_s1 }
 0xe98   :  { %v3171_v7 = vpop.eup %3170 }
 0xe99   :  { %1190 = vrot.lane.b32.xlu0 %v3171_v7, %s3309_s1  ;;  %v3173_v35 = vpop.eup %3172 }
 0xe9a   :  { %v1256_v4 = vadd.f32 1.0, %v3173_v35  ;;  %v3175_v26 = vpop.eup %3174 }
 0xe9b   :  { %v1184_v60 = vadd.f32 1.0, %v3175_v26 }
 0xe9c   :  { %3176 = vrcp.f32 %v1256_v4 }
 0xe9d   :  { %3178 = vrcp.f32 %v1184_v60  ;;  %v3217_v60 = vld [vmem:[%s4312_s4 + $0x8] sm:$0xff]  }
 0xea9   :  { %v3177_v36 = vpop.eup %3176 }
 0xeaa   :  { %v3179_v43 = vpop.eup %3178  ;;  %v1260_v11 = vmul.f32 %v3177_v36, %v3858_v58 }
 0xf07   :  { %v1263_v25 = vpop.permute.xlu1 %1262 }
 0xf08   :  { %v1265_v1 = vmul.f32 %v3177_v36, %v1263_v25  ;;  %v3219_v25 = vld [vmem:[%s4311_s3] sm:$0xff]  }
 0xf0a   :  { %1267 = vrot.lane.b32.xlu1 %v1265_v1, %s3309_s1 }
 0xf0b   :  { %v1191_v32 = vpop.permute.xlu0 %1190 }
 0xf0c   :  { %v1193_v52 = vmul.f32 %v3179_v43, %v1191_v32 }
 0xf0e   :  { %1195 = vrot.lane.b32.xlu0 %v1193_v52, %s3309_s1  ;;  %1291 = vperm.xlu1 %3061, %v3624_v48   ;;  %v3863_v48 = vadd.f32 %v1121_v57, %v3788_v22 }
 0xf10   :  { %v1188_v18 = vmul.f32 %v3179_v43, %v3863_v48 }
 0xf12   :  { %1279 = vperm.xlu1 %3061, %v3617_v45  }
 0xf7c   :  { %v1268_v63 = vpop.permute.xlu1 %1267 }
 0xf7d   :  { %v3865_v45 = vadd.f32 %v1268_v63, %v1260_v11 }
 0xf7f   :  { %3180 = vtanh.f32 %v3865_v45 }
 0xf80   :  { %v1196_v8 = vpop.permute.xlu0 %1195 }
 0xf81   :  { %v3869_v12 = vadd.f32 %v1196_v8, %v1188_v18 }
 0xf83   :  { %3182 = vtanh.f32 %v3869_v12 }
 0xf89   :  { %v3876_v14 = vpop.permute.xlu1 %1291 }
 0xf8c   :  { %v3181_v24 = vpop.eup %3180 }
 0xf8d   :  { %1273 = vrot.lane.b32.xlu0 %v3181_v24, %s3309_s1  ;;  %v3888_v21 = vpop.permute.xlu1 %1279 }
 0xf90   :  { %v3183_v62 = vpop.eup %3182 }
 0xf91   :  { %1201 = vrot.lane.b32.xlu0 %v3183_v62, %s3309_s1 }
 0xfff   :  { %v1274_v49 = vpop.permute.xlu0 %1273 }
0x1000   :  { %v3874_v22 = vmul.f32 %v3177_v36, %v1274_v49  ;;  %v3218_v36 = vld [vmem:[%s4312_s4] sm:$0xff]  }
0x1002   :  { %v1307_v41 = vsub.f32 %v3874_v22, %v3809_v38 }
0x1003   :  { %v1202_v20 = vpop.permute.xlu0 %1201 }
0x1004   :  { %v1308_v15 = vmul.f32 %v1307_v41, %v3876_v14  ;;  %v3881_v37 = vmul.f32 %v3179_v43, %v1202_v20 }
0x1006   :  { %v3884_v17 = vadd.f32 %v1308_v15, %v3809_v38  ;;  %v1301_v7 = vsub.f32 %v3881_v37, %v3819_v55 }
0x1008   :  { %v1302_v46 = vmul.f32 %v1301_v7, %v3888_v21  ;;  %v1389_v35 = vpack.c.bf16 %v3884_v17, %v3884_v17 }
0x100a   :  { %v3894_v4 = vadd.f32 %v1302_v46, %v3819_v55  ;;  %1391 = vrot.lane.b32.xlu1 %v1389_v35, %s3310_s23  ;;  %v1310_v35 = vsub.f32 %v3865_v45, %v3858_v58 }
0x100c   :  { %v1317_v26 = vpack.c.bf16 %v3894_v4, %v3894_v4 }
0x100e   :  { %1319 = vrot.lane.b32.xlu0 %v1317_v26, %s3310_s23  ;;  %v1311_v26 = vmul.f32 %v1310_v35, %v3876_v14 }
0x107c   :  { %v1392_v38 = vpop.permute.xlu1 %1391 }
0x107d   :  { %3029 = vmatmul.mubr.msk.bf16.vlgmr.msra.gmra.mxu1 %vm79_vm1, %v1392_v38  ;;  %v1304_v38 = vsub.f32 %v3869_v12, %v3863_v48 }
0x107e   :  { %3041 = vmatpush3.bf16.msra.mxu1 %v3217_v60  ;;  %3044 = vmatprep.mubr.msk.bf16.mxu1 %vm3308_vm0, %v3306_v2  ;;  %v3932_v60 = vadd.f32 %v1311_v26, %v3858_v58 }
0x107f   :  { %3042 = vmatprep.subr.bf16.mxu1 %v3306_v2 }
0x1080   :  { %v1320_v55 = vpop.permute.xlu0 %1319 }
0x1081   :  { %3021 = vmatmul.mubr.msk.bf16.vlgmr.msra.gmra.mxu0 %vm79_vm1, %v1320_v55  ;;  %v1305_v55 = vmul.f32 %v1304_v38, %v3888_v21 }
0x1082   :  { %3033 = vmatpush3.bf16.msra.mxu0 %v3834_v29  ;;  %3043 = vmatpush3.bf16.msra.mxu1 %v3218_v36 }
0x1083   :  { %3034 = vmatprep.subr.bf16.mxu0 %v3306_v2  ;;  %3036 = vmatprep.mubr.msk.bf16.mxu0 %vm3308_vm0, %v3306_v2 }
0x1086   :  { %3035 = vmatpush3.bf16.msra.mxu0 %v3219_v25 }
0x113d   :  { %v1430_v1 = vpop.f32.mrf.mxu1 }
0x113e   :  { %v1436_v43 = vadd.f32 %v1430_v1, %v3465_v40 }
0x113f   :  { %v3030_v32 = vpop.f32.mrf.mxu1 }
0x1140   :  { %3184 = vtanh.f32 %v1436_v43  ;;  %v2866_v18 = vmul.f32 -1.442695, %v1436_v43 }
0x1141   :  { %v1358_v29 = vpop.f32.mrf.mxu0  ;;  %v1433_v52 = vpop.f32.mrf.mxu1 }
0x1142   :  { %v1364_v13 = vadd.f32 %v1358_v29, %v3484_v0 }
0x1143   :  { %v3022_v30 = vpop.f32.mrf.mxu0  ;;  %v3031_v53 = vpop.f32.mrf.mxu1 }
0x1144   :  { %3186 = vtanh.f32 %v1364_v13  ;;  %v2864_v40 = vmul.f32 -1.442695, %v1364_v13 }
0x1145   :  { %v1361_v57 = vpop.f32.mrf.mxu0  ;;  %3188 = vpow2.f32 %v2866_v18 }
0x1146   :  { %3190 = vpow2.f32 %v2864_v40 }
0x1147   :  { %v3023_v11 = vpop.f32.mrf.mxu0 }
0x114d   :  { %v3185_v2 = vpop.eup %3184 }
0x114e   :  { %1446 = vrot.lane.b32.xlu1 %v3185_v2, %s3309_s1 }
0x1151   :  { %v3187_v63 = vpop.eup %3186 }
0x1152   :  { %1374 = vrot.lane.b32.xlu0 %v3187_v63, %s3309_s1  ;;  %v3189_v8 = vpop.eup %3188 }
0x1153   :  { %v1440_v24 = vadd.f32 1.0, %v3189_v8  ;;  %v3191_v62 = vpop.eup %3190 }
0x1154   :  { %v1368_v0 = vadd.f32 1.0, %v3191_v62 }
0x1155   :  { %3192 = vrcp.f32 %v1440_v24 }
0x1156   :  { %3194 = vrcp.f32 %v1368_v0 }
0x1162   :  { %v3193_v49 = vpop.eup %3192 }
0x1163   :  { %v3195_v15 = vpop.eup %3194  ;;  %v1444_v36 = vmul.f32 %v3193_v49, %v3932_v60 }
0x11c0   :  { %v1447_v41 = vpop.permute.xlu1 %1446 }
0x11c1   :  { %v1449_v20 = vmul.f32 %v3193_v49, %v1447_v41 }
0x11c3   :  { %1451 = vrot.lane.b32.xlu1 %v1449_v20, %s3309_s1 }
0x11c4   :  { %v1375_v7 = vpop.permute.xlu0 %1374 }
0x11c5   :  { %v1377_v46 = vmul.f32 %v3195_v15, %v1375_v7 }
0x11c7   :  { %1379 = vrot.lane.b32.xlu0 %v1377_v46, %s3309_s1  ;;  %1475 = vperm.xlu1 %3061, %v3549_v28   ;;  %v3937_v28 = vadd.f32 %v1305_v55, %v3863_v48 }
0x11c9   :  { %v1372_v45 = vmul.f32 %v3195_v15, %v3937_v28 }
0x11cb   :  { %1463 = vperm.xlu1 %3061, %v3543_v27  }
0x1235   :  { %v1452_v25 = vpop.permute.xlu1 %1451 }
0x1236   :  { %v3939_v27 = vadd.f32 %v1452_v25, %v1444_v36 }
0x1238   :  { %3196 = vtanh.f32 %v3939_v27 }
0x1239   :  { %v1380_v1 = vpop.permute.xlu0 %1379 }
0x123a   :  { %v3943_v43 = vadd.f32 %v1380_v1, %v1372_v45 }
0x123c   :  { %3198 = vtanh.f32 %v3943_v43 }
0x1242   :  { %v3950_v29 = vpop.permute.xlu1 %1475 }
0x1245   :  { %v3197_v58 = vpop.eup %3196 }
0x1246   :  { %1457 = vrot.lane.b32.xlu0 %v3197_v58, %s3309_s1  ;;  %v3962_v2 = vpop.permute.xlu1 %1463 }
0x1249   :  { %v3199_v12 = vpop.eup %3198 }
0x124a   :  { %1385 = vrot.lane.b32.xlu0 %v3199_v12, %s3309_s1 }
0x12b8   :  { %v1458_v32 = vpop.permute.xlu0 %1457 }
0x12b9   :  { %v3948_v48 = vmul.f32 %v3193_v49, %v1458_v32 }
0x12bb   :  { %v1491_v52 = vsub.f32 %v3948_v48, %v3884_v17 }
0x12bc   :  { %v1386_v13 = vpop.permute.xlu0 %1385 }
0x12bd   :  { %v1492_v30 = vmul.f32 %v1491_v52, %v3950_v29  ;;  %v3955_v53 = vmul.f32 %v3195_v15, %v1386_v13  ;;  %v1500_v13 = vld [vmem:[%s4308_s0] sm:$0xff] }
0x12bf   :  { %v3958_v57 = vadd.f32 %v1492_v30, %v3884_v17  ;;  %v1485_v11 = vsub.f32 %v3955_v53, %v3894_v4 }
0x12c1   :  { %v1486_v63 = vmul.f32 %v1485_v11, %v3962_v2  ;;  %v1573_v18 = vpack.c.bf16 %v3958_v57, %v3958_v57  ;;  %v2867_v11 = vld [vmem:[%s4308_s0 + $0x38] sm:$0xff]  ;;  %s3312_s0 = smov [#allocation10]  }
0x12c3   :  { %v3968_v40 = vadd.f32 %v1486_v63, %v3894_v4  ;;  %1575 = vrot.lane.b32.xlu1 %v1573_v18, %s3310_s23  ;;  %v1494_v63 = vsub.f32 %v3939_v27, %v3932_v60 }
0x12c5   :  { %v1501_v8 = vpack.c.bf16 %v3968_v40, %v3968_v40  ;;  %v1495_v18 = vmul.f32 %v1494_v63, %v3950_v29 }
0x12c7   :  { %1503 = vrot.lane.b32.xlu0 %v1501_v8, %s3310_s23  ;;  %v1488_v8 = vsub.f32 %v3943_v43, %v3937_v28  ;;  %v926_v43 = vmul.f32 %v3731_v50, %v3729_v9  ;;  %v1098_v9 = vmul.f32 %v3813_v61, %v3806_v10  ;;  %v3311_v50 = vmov 1966171168  }
0x1335   :  { %v1576_v17 = vpop.permute.xlu1 %1575 }
0x1336   :  { %3045 = vmatmul.mubr.msk.bf16.vlgmr.msra.gmra.mxu1 %vm79_vm1, %v1576_v17  ;;  %v1489_v17 = vmul.f32 %v1488_v8, %v3962_v2 }
0x1339   :  { %v1504_v24 = vpop.permute.xlu0 %1503 }
0x133a   :  { %3037 = vmatmul.mubr.msk.bf16.vlgmr.msra.gmra.mxu0 %vm79_vm1, %v1504_v24  ;;  %v1496_v24 = vadd.f32 %v1495_v18, %v3932_v60  ;;  %v550_v60 = vmul.f32 %v3571_v47, %v3569_v42  ;;  %v1478_v42 = vmul.f32 %v3950_v29, %v3948_v48  ;;  %v538_v47 = vmul.f32 %v3583_v59, %v3576_v54 }
0x133b   :  { %v1282_v54 = vmul.f32 %v3888_v21, %v3881_v37 }
0x13f6   :  { %v1614_v62 = vpop.f32.mrf.mxu1 }
0x13f7   :  { %v1620_v0 = vadd.f32 %v1614_v62, %v3461_v33 }
0x13f8   :  { %v3046_v49 = vpop.f32.mrf.mxu1 }
0x13f9   :  { %3200 = vtanh.f32 %v1620_v0  ;;  %v2871_v55 = vmul.f32 -1.442695, %v1620_v0 }
0x13fa   :  { %v1542_v4 = vpop.f32.mrf.mxu0  ;;  %v1617_v41 = vpop.f32.mrf.mxu1 }
0x13fb   :  { %v1548_v20 = vadd.f32 %v1542_v4, %v3488_v6  ;;  %v1490_v4 = vadd.f32 %v1489_v17, %v3937_v28  ;;  %v738_v28 = vmul.f32 %v3651_v16, %v3649_v31  ;;  %v726_v31 = vmul.f32 %v3663_v3, %v3656_v19 }
0x13fc   :  { %v3038_v15 = vpop.f32.mrf.mxu0  ;;  %v3047_v7 = vpop.f32.mrf.mxu1  ;;  %v914_v16 = vmul.f32 %v3743_v39, %v3736_v5  ;;  %v1688_v5 = vunpack.c.l.s4 %v3311_v50 }
0x13fd   :  { %3202 = vtanh.f32 %v1548_v20  ;;  %v2869_v33 = vmul.f32 -1.442695, %v1548_v20 }
0x13fe   :  { %v1545_v46 = vpop.f32.mrf.mxu0  ;;  %3204 = vpow2.f32 %v2871_v55 }
0x13ff   :  { %3206 = vpow2.f32 %v2869_v33  ;;  %v1110_v46 = vmul.f32 %v3801_v56, %v3799_v34 }
0x1400   :  { %v3039_v35 = vpop.f32.mrf.mxu0 }
0x1406   :  { %v3201_v26 = vpop.eup %3200 }
0x1407   :  { %1630 = vrot.lane.b32.xlu1 %v3201_v26, %s3309_s1 }
0x140a   :  { %v3203_v38 = vpop.eup %3202 }
0x140b   :  { %1558 = vrot.lane.b32.xlu0 %v3203_v38, %s3309_s1  ;;  %v3205_v36 = vpop.eup %3204 }
0x140c   :  { %v1624_v25 = vadd.f32 1.0, %v3205_v36  ;;  %v3207_v45 = vpop.eup %3206 }
0x140d   :  { %v1552_v6 = vadd.f32 1.0, %v3207_v45 }
0x140e   :  { %3208 = vrcp.f32 %v1624_v25 }
0x140f   :  { %3210 = vrcp.f32 %v1552_v6 }
0x141b   :  { %v3209_v1 = vpop.eup %3208 }
0x141c   :  { %v3981_v32 = vpop.eup %3210  ;;  %v1628_v62 = vmul.f32 %v3209_v1, %v1496_v24 }
0x141d   :  { %v1556_v41 = vmul.f32 %v3981_v32, %v1490_v4 }
0x1479   :  { %v1631_v58 = vpop.permute.xlu1 %1630 }
0x147a   :  { %v1633_v12 = vmul.f32 %v3209_v1, %v1631_v58 }
0x147c   :  { %1635 = vrot.lane.b32.xlu1 %v1633_v12, %s3309_s1 }
0x147d   :  { %v1559_v52 = vpop.permute.xlu0 %1558 }
0x147e   :  { %v1561_v30 = vmul.f32 %v3981_v32, %v1559_v52 }
0x1480   :  { %1563 = vrot.lane.b32.xlu0 %v1561_v30, %s3309_s1  ;;  %1659 = vperm.xlu1 %3061, %v1500_v13  }
0x1484   :  { %1647 = vperm.xlu0 %3060, %v2867_v11  }
0x14ee   :  { %v1636_v0 = vpop.permute.xlu1 %1635 }
0x14ef   :  { %v1638_v49 = vadd.f32 %v1636_v0, %v1628_v62 }
0x14f1   :  { %3212 = vtanh.f32 %v1638_v49 }
0x14f2   :  { %v1564_v20 = vpop.permute.xlu0 %1563 }
0x14f3   :  { %v1566_v15 = vadd.f32 %v1564_v20, %v1556_v41 }
0x14f5   :  { %3214 = vtanh.f32 %v1566_v15 }
0x14fb   :  { %v1660_v59 = vpop.permute.xlu1 %1659 }
0x14fe   :  { %v3213_v27 = vpop.eup %3212 }
0x14ff   :  { %1641 = vrot.lane.b32.xlu1 %v3213_v27, %s3309_s1  ;;  %v1648_v19 = vpop.permute.xlu0 %1647 }
0x1502   :  { %v3215_v7 = vpop.eup %3214 }
0x1503   :  { %1569 = vrot.lane.b32.xlu0 %v3215_v7, %s3309_s1  ;;  %370 = vrot.lane.b32.xlu1 %v3515_v51, %s3310_s23  ;;  %v1294_v51 = vmul.f32 %v3876_v14, %v3874_v22  ;;  %v1689_v22 = vunpack.c.0.s8 %v1688_v5  ;;  %s2797_s1 = sshll.u32 %s3312_s0, 4  ;;  %s2798_s1 = int_to_ptr.vmem [resolvable:$true] %s2797_s1 }
0x1504   :  { %p3225_p1 = scmp.lt.s32.totalorder %s2798_s1, %s2798_s1 }
0x1507   :  { %552 = vrot.lane.b32.xlu0 %v550_v60, %s3310_s23  ;;  %740 = vrot.lane.b32.xlu1 %v738_v28, %s3310_s23 }
0x150b   :  { %928 = vrot.lane.b32.xlu0 %v926_v43, %s3310_s23  ;;  %1112 = vrot.lane.b32.xlu1 %v1110_v46, %s3310_s23 }
0x150f   :  { %1296 = vrot.lane.b32.xlu0 %v1294_v51, %s3310_s23  ;;  %1480 = vrot.lane.b32.xlu1 %v1478_v42, %s3310_s23 }
0x1513   :  { %540 = vrot.lane.b32.xlu0 %v538_v47, %s3310_s23  ;;  %359 = vrot.lane.b32.xlu1 %v3510_v44, %s3310_s23  ;;  %v1466_v44 = vmul.f32 %v3962_v2, %v3955_v53  ;;  %v4048_v2 = vsub.s32 %v1689_v22, %v3454_v23 }
0x1517   :  { %916 = vrot.lane.b32.xlu0 %v914_v16, %s3310_s23  ;;  %728 = vrot.lane.b32.xlu1 %v726_v31, %s3310_s23 }
0x151b   :  { %1284 = vrot.lane.b32.xlu0 %v1282_v54, %s3310_s23  ;;  %1100 = vrot.lane.b32.xlu1 %v1098_v9, %s3310_s23 }
0x151f   :  { %1468 = vrot.lane.b32.xlu1 %v1466_v44, %s3310_s23 }
0x1571   :  { %v1642_v3 = vpop.permute.xlu1 %1641 }
0x1572   :  { %v1644_v39 = vmul.f32 %v3209_v1, %v1642_v3 }
0x1574   :  { %v1662_v34 = vmul.f32 %v1660_v59, %v1644_v39  ;;  %v1671_v56 = vsub.f32 %v1644_v39, %v3958_v57 }
0x1575   :  { %v1570_v10 = vpop.permute.xlu0 %1569  ;;  %v371_v61 = vpop.permute.xlu1 %370 }
0x1576   :  { %v1572_v14 = vmul.f32 %v3981_v32, %v1570_v10  ;;  %374 = vst.msk [vmem:[#allocation4 + $0x38] sm:$0xff] %vm79_vm1, %v371_v61  ;;  %1664 = vrot.lane.b32.xlu0 %v1662_v34, %s3310_s23  ;;  %v1672_v37 = vmul.f32 %v1671_v56, %v1660_v59 }
0x1578   :  { %v1650_v21 = vmul.f32 %v1648_v19, %v1572_v14  ;;  %v1668_v48 = vsub.f32 %v1572_v14, %v3968_v40  ;;  %v1673_v38 = vadd.f32 %v1672_v37, %v3958_v57 }
0x1579   :  { %v553_v29 = vpop.permute.xlu0 %552  ;;  %v741_v53 = vpop.permute.xlu1 %740 }
0x157a   :  { %v1669_v35 = vmul.f32 %v1668_v48, %v1648_v19  ;;  %556 = vst.msk [vmem:[#allocation4 + $0x30] sm:$0xff] %vm79_vm1, %v553_v29  ;;  %744 = vst.msk [vmem:[#allocation4 + $0x28] sm:$0xff] %vm79_vm1, %v741_v53  ;;  %1652 = vrot.lane.b32.xlu0 %v1650_v21, %s3310_s23 }
0x157c   :  { %v1670_v26 = vadd.f32 %v1669_v35, %v3968_v40 }
0x157d   :  { %v2690_v55 = vld [vmem:[#allocation4 + $0x38] sm:$0xff]  ;;  %v929_v33 = vpop.permute.xlu0 %928  ;;  %v1113_v36 = vpop.permute.xlu1 %1112 }
0x157e   :  { %v2692_v25 = vcombine.high %v2690_v55, %v2690_v55  ;;  %v2699_v45 = vrot.slane %v2690_v55, %v4048_v2  ;;  %932 = vst.msk [vmem:[#allocation4 + $0x20] sm:$0xff] %vm79_vm1, %v929_v33  ;;  %1116 = vst.msk [vmem:[#allocation4 + $0x18] sm:$0xff] %vm79_vm1, %v1113_v36  ;;  %1675 = vrot.lane.b32.xlu1 %v1670_v26, %s3310_s23  ;;  %1680 = vrot.lane.b32.xlu0 %v1673_v38, %s3310_s23  ;;  %s3220_s23 = scalar_lea.vmem %s2798_s1, 128 }
0x157f   :  { %p3221_p0 = scmp.ne.s32.totalorder %s2798_s1, %s3220_s23  ;;  %p3226_p2 = scmp.lt.s32.totalorder %s3220_s23, %s3220_s23 }
0x1580   :  { %v2706_v23 = vrot.slane %v2692_v25, %v4048_v2  ;;  %v2707_v40 = vcombine.high %v2699_v45, %v2699_v45  ;;  %v2715_v57 = vrot.slane %v2699_v45, %v4048_v2 }
0x1581   :  { %v2556_v6 = vld [vmem:[#allocation4 + $0x30] sm:$0xff]  ;;  %v2422_v1 = vld [vmem:[#allocation4 + $0x28] sm:$0xff]  ;;  %v1297_v58 = vpop.permute.xlu0 %1296  ;;  %v1481_v12 = vpop.permute.xlu1 %1480  ;;  %p3227_p3 = por %p3226_p2, %p3225_p1 }
0x1582   :  { %v2708_v32 = vcombine.high %v2706_v23, %v2706_v23  ;;  %v2722_v52 = vrot.slane %v2706_v23, %v4048_v2  ;;  %v2729_v13 = vrot.slane %v2707_v40, %v4048_v2  ;;  %v2737_v30 = vcombine.high %v2715_v57, %v2715_v57  ;;  %2749 = vst.msk [vmem:[#allocation7 + $0x7] sm:$0x1] %vm1743_vm2, %v2715_v57 }
0x1583   :  { %1300 = vst.msk [vmem:[#allocation4 + $0x10] sm:$0xff] %vm79_vm1, %v1297_v58  ;;  %1484 = vst.msk [vmem:[#allocation4 + $0x8] sm:$0xff] %vm79_vm1, %v1481_v12  ;;  %v2558_v11 = vcombine.high %v2556_v6, %v2556_v6  ;;  %v2565_v63 = vrot.slane %v2556_v6, %v4048_v2  ;;  %v2424_v18 = vcombine.high %v2422_v1, %v2422_v1  ;;  %p3228_p4 = pnand %p3227_p3, %p3221_p0 }
0x1584   :  { %v2431_v8 = vrot.slane %v2422_v1, %v4048_v2  ;;  %v2736_v17 = vrot.slane %v2708_v32, %v4048_v2  ;;  %v2738_v24 = vcombine.high %v2722_v52, %v2722_v52  ;;  %v2739_v62 = vcombine.high %v2729_v13, %v2729_v13  ;;  %2750 = vst.msk [vmem:[#allocation7 + $0xf] sm:$0x1] %vm1743_vm2, %v2729_v13 }
0x1585   :  { %2751 = vst.msk [vmem:[#allocation7 + $0x17] sm:$0x1] %vm1743_vm2, %v2737_v30  ;;  %2753 = vst.msk [vmem:[#allocation7 + $0x27] sm:$0x1] %vm1743_vm2, %v2722_v52  ;;  %v2572_v0 = vrot.slane %v2558_v11, %v4048_v2  ;;  %v2573_v49 = vcombine.high %v2565_v63, %v2565_v63  ;;  %v2581_v4 = vrot.slane %v2565_v63, %v4048_v2  ;;  %v2288_v20 = vld [vmem:[#allocation4 + $0x20] sm:$0xff]  ;;  %v541_v15 = vpop.permute.xlu0 %540  ;;  %v360_v27 = vpop.permute.xlu1 %359  ;;  %v2154_v44 = vld [vmem:[#allocation4 + $0x18] sm:$0xff] }
0x1586   :  { %v2438_v41 = vrot.slane %v2424_v18, %v4048_v2  ;;  %v2740_v7 = vcombine.high %v2736_v17, %v2736_v17  ;;  %2752 = vst.msk [vmem:[#allocation7 + $0x1f] sm:$0x1] %vm1743_vm2, %v2739_v62  ;;  %2754 = vst.msk [vmem:[#allocation7 + $0x2f] sm:$0x1] %vm1743_vm2, %v2736_v17  ;;  %v2439_v60 = vcombine.high %v2431_v8, %v2431_v8 }
0x1587   :  { %2755 = vst.msk [vmem:[#allocation7 + $0x37] sm:$0x1] %vm1743_vm2, %v2738_v24  ;;  %v2447_v28 = vrot.slane %v2431_v8, %v4048_v2  ;;  %v2290_v43 = vcombine.high %v2288_v20, %v2288_v20  ;;  %v2574_v46 = vcombine.high %v2572_v0, %v2572_v0  ;;  %v2588_v51 = vrot.slane %v2572_v0, %v4048_v2 }
0x1588   :  { %544 = vst.msk [vmem:[#allocation3 + $0x8] sm:$0xff] %vm79_vm1, %v541_v15  ;;  %362 = vst.msk [vmem:[#allocation3] sm:$0xff] %vm79_vm1, %v360_v27  ;;  %v2595_v42 = vrot.slane %v2573_v49, %v4048_v2  ;;  %v2603_v47 = vcombine.high %v2581_v4, %v2581_v4  ;;  %v2440_v31 = vcombine.high %v2438_v41, %v2438_v41 }
0x1589   :  { %2615 = vst.msk [vmem:[#allocation7 + $0x6] sm:$0x1] %vm1743_vm2, %v2581_v4  ;;  %2756 = vst.msk [vmem:[#allocation7 + $0x3f] sm:$0x1] %vm1743_vm2, %v2740_v7  ;;  %v2454_v16 = vrot.slane %v2438_v41, %v4048_v2  ;;  %v2461_v9 = vrot.slane %v2439_v60, %v4048_v2  ;;  %v2469_v54 = vcombine.high %v2447_v28, %v2447_v28  ;;  %v917_v5 = vpop.permute.xlu0 %916  ;;  %v729_v39 = vpop.permute.xlu1 %728 }
0x158a   :  { %2481 = vst.msk [vmem:[#allocation7 + $0x5] sm:$0x1] %vm1743_vm2, %v2447_v28  ;;  %v2602_v59 = vrot.slane %v2574_v46, %v4048_v2  ;;  %v2604_v19 = vcombine.high %v2588_v51, %v2588_v51  ;;  %v2605_v3 = vcombine.high %v2595_v42, %v2595_v42  ;;  %2616 = vst.msk [vmem:[#allocation7 + $0xe] sm:$0x1] %vm1743_vm2, %v2595_v42  ;;  %v2020_v22 = vld [vmem:[#allocation4 + $0x10] sm:$0xff]  ;;  %v1886_v52 = vld [vmem:[#allocation4 + $0x8] sm:$0xff] }
0x158b   :  { %2617 = vst.msk [vmem:[#allocation7 + $0x16] sm:$0x1] %vm1743_vm2, %v2603_v47  ;;  %2619 = vst.msk [vmem:[#allocation7 + $0x26] sm:$0x1] %vm1743_vm2, %v2588_v51  ;;  %v2297_v50 = vrot.slane %v2288_v20, %v4048_v2  ;;  %v2468_v34 = vrot.slane %v2440_v31, %v4048_v2  ;;  %v2470_v56 = vcombine.high %v2454_v16, %v2454_v16 }
0x158c   :  { %v2471_v10 = vcombine.high %v2461_v9, %v2461_v9  ;;  %2482 = vst.msk [vmem:[#allocation7 + $0xd] sm:$0x1] %vm1743_vm2, %v2461_v9  ;;  %2483 = vst.msk [vmem:[#allocation7 + $0x15] sm:$0x1] %vm1743_vm2, %v2469_v54  ;;  %v2304_v61 = vrot.slane %v2290_v43, %v4048_v2  ;;  %v2606_v14 = vcombine.high %v2602_v59, %v2602_v59 }
0x158d   :  { %2485 = vst.msk [vmem:[#allocation7 + $0x25] sm:$0x1] %vm1743_vm2, %v2454_v16  ;;  %2618 = vst.msk [vmem:[#allocation7 + $0x1e] sm:$0x1] %vm1743_vm2, %v2605_v3  ;;  %v2305_v37 = vcombine.high %v2297_v50, %v2297_v50  ;;  %v2313_v21 = vrot.slane %v2297_v50, %v4048_v2  ;;  %v2156_v48 = vcombine.high %v2154_v44, %v2154_v44  ;;  %v1285_v25 = vpop.permute.xlu0 %1284  ;;  %v1101_v45 = vpop.permute.xlu1 %1100 }
0x158e   :  { %920 = vst.msk [vmem:[#allocation3 + $0x18] sm:$0xff] %vm79_vm1, %v917_v5  ;;  %732 = vst.msk [vmem:[#allocation3 + $0x10] sm:$0xff] %vm79_vm1, %v729_v39  ;;  %v2472_v29 = vcombine.high %v2468_v34, %v2468_v34  ;;  %v2306_v53 = vcombine.high %v2304_v61, %v2304_v61  ;;  %v2320_v35 = vrot.slane %v2304_v61, %v4048_v2 }
0x158f   :  { %2620 = vst.msk [vmem:[#allocation7 + $0x2e] sm:$0x1] %vm1743_vm2, %v2602_v59  ;;  %2621 = vst.msk [vmem:[#allocation7 + $0x36] sm:$0x1] %vm1743_vm2, %v2604_v19  ;;  %v2163_v26 = vrot.slane %v2154_v44, %v4048_v2  ;;  %v2327_v38 = vrot.slane %v2305_v37, %v4048_v2  ;;  %v2335_v55 = vcombine.high %v2313_v21, %v2313_v21  ;;  %v1819_v62 = vld [vmem:[#allocation3 + $0x8] sm:$0xff]  ;;  %v1684_v19 = vld [vmem:[#allocation3] sm:$0xff] }
0x1590   :  { %2484 = vst.msk [vmem:[#allocation7 + $0x1d] sm:$0x1] %vm1743_vm2, %v2471_v10  ;;  %2486 = vst.msk [vmem:[#allocation7 + $0x2d] sm:$0x1] %vm1743_vm2, %v2468_v34  ;;  %v2170_v33 = vrot.slane %v2156_v48, %v4048_v2  ;;  %v2022_v36 = vcombine.high %v2020_v22, %v2020_v22  ;;  %v2334_v23 = vrot.slane %v2306_v53, %v4048_v2 }
0x1591   :  { %2487 = vst.msk [vmem:[#allocation7 + $0x35] sm:$0x1] %vm1743_vm2, %v2470_v56  ;;  %2622 = vst.msk [vmem:[#allocation7 + $0x3e] sm:$0x1] %vm1743_vm2, %v2606_v14  ;;  %v2336_v40 = vcombine.high %v2320_v35, %v2320_v35  ;;  %v2171_v57 = vcombine.high %v2163_v26, %v2163_v26  ;;  %v2179_v6 = vrot.slane %v2163_v26, %v4048_v2  ;;  %v1469_v0 = vpop.permute.xlu1 %1468 }
0x1592   :  { %2347 = vst.msk [vmem:[#allocation7 + $0x4] sm:$0x1] %vm1743_vm2, %v2313_v21  ;;  %2488 = vst.msk [vmem:[#allocation7 + $0x3d] sm:$0x1] %vm1743_vm2, %v2472_v29  ;;  %v2337_v1 = vcombine.high %v2327_v38, %v2327_v38  ;;  %v2172_v58 = vcombine.high %v2170_v33, %v2170_v33  ;;  %v2186_v12 = vrot.slane %v2170_v33, %v4048_v2 }
0x1593   :  { %2351 = vst.msk [vmem:[#allocation7 + $0x24] sm:$0x1] %vm1743_vm2, %v2320_v35  ;;  %2348 = vst.msk [vmem:[#allocation7 + $0xc] sm:$0x1] %vm1743_vm2, %v2327_v38  ;;  %v2029_v32 = vrot.slane %v2020_v22, %v4048_v2  ;;  %v2338_v13 = vcombine.high %v2334_v23, %v2334_v23  ;;  %v2193_v30 = vrot.slane %v2171_v57, %v4048_v2 }
0x1594   :  { %1288 = vst.msk [vmem:[#allocation3 + $0x28] sm:$0xff] %vm79_vm1, %v1285_v25  ;;  %1104 = vst.msk [vmem:[#allocation3 + $0x20] sm:$0xff] %vm79_vm1, %v1101_v45  ;;  %v2201_v11 = vcombine.high %v2179_v6, %v2179_v6  ;;  %v2036_v63 = vrot.slane %v2022_v36, %v4048_v2  ;;  %v2200_v18 = vrot.slane %v2172_v58, %v4048_v2 }
0x1595   :  { %2349 = vst.msk [vmem:[#allocation7 + $0x14] sm:$0x1] %vm1743_vm2, %v2335_v55  ;;  %2352 = vst.msk [vmem:[#allocation7 + $0x2c] sm:$0x1] %vm1743_vm2, %v2334_v23  ;;  %v2202_v8 = vcombine.high %v2186_v12, %v2186_v12  ;;  %v2037_v17 = vcombine.high %v2029_v32, %v2029_v32  ;;  %v2045_v24 = vrot.slane %v2029_v32, %v4048_v2  ;;  %v2087_v22 = vld [vmem:[#allocation3 + $0x18] sm:$0xff]  ;;  %v1953_v29 = vld [vmem:[#allocation3 + $0x10] sm:$0xff] }
0x1596   :  { %2353 = vst.msk [vmem:[#allocation7 + $0x34] sm:$0x1] %vm1743_vm2, %v2336_v40  ;;  %2213 = vst.msk [vmem:[#allocation7 + $0x3] sm:$0x1] %vm1743_vm2, %v2179_v6  ;;  %v2203_v49 = vcombine.high %v2193_v30, %v2193_v30  ;;  %v2038_v4 = vcombine.high %v2036_v63, %v2036_v63  ;;  %v2052_v41 = vrot.slane %v2036_v63, %v4048_v2 }
0x1597   :  { %2350 = vst.msk [vmem:[#allocation7 + $0x1c] sm:$0x1] %vm1743_vm2, %v2337_v1  ;;  %2217 = vst.msk [vmem:[#allocation7 + $0x23] sm:$0x1] %vm1743_vm2, %v2186_v12  ;;  %v1888_v20 = vcombine.high %v1886_v52, %v1886_v52  ;;  %v2204_v15 = vcombine.high %v2200_v18, %v2200_v18  ;;  %v2059_v27 = vrot.slane %v2037_v17, %v4048_v2 }
0x1598   :  { %2354 = vst.msk [vmem:[#allocation7 + $0x3c] sm:$0x1] %vm1743_vm2, %v2338_v13  ;;  %2214 = vst.msk [vmem:[#allocation7 + $0xb] sm:$0x1] %vm1743_vm2, %v2193_v30  ;;  %v2067_v7 = vcombine.high %v2045_v24, %v2045_v24  ;;  %v1895_v60 = vrot.slane %v1886_v52, %v4048_v2  ;;  %v2066_v28 = vrot.slane %v2038_v4, %v4048_v2 }
0x1599   :  { %2215 = vst.msk [vmem:[#allocation7 + $0x13] sm:$0x1] %vm1743_vm2, %v2201_v11  ;;  %2218 = vst.msk [vmem:[#allocation7 + $0x2b] sm:$0x1] %vm1743_vm2, %v2200_v18  ;;  %v2068_v43 = vcombine.high %v2052_v41, %v2052_v41  ;;  %v1902_v46 = vrot.slane %v1888_v20, %v4048_v2  ;;  %v1821_v51 = vcombine.high %v1819_v62, %v1819_v62 }
0x159a   :  { %1472 = vst.msk [vmem:[#allocation3 + $0x30] sm:$0xff] %vm79_vm1, %v1469_v0  ;;  %v2069_v42 = vcombine.high %v2059_v27, %v2059_v27  ;;  %v1903_v47 = vcombine.high %v1895_v60, %v1895_v60  ;;  %v1911_v31 = vrot.slane %v1895_v60, %v4048_v2  ;;  %v1828_v16 = vrot.slane %v1819_v62, %v4048_v2 }
0x159b   :  { %2219 = vst.msk [vmem:[#allocation7 + $0x33] sm:$0x1] %vm1743_vm2, %v2202_v8  ;;  %2079 = vst.msk [vmem:[#allocation7 + $0x2] sm:$0x1] %vm1743_vm2, %v2045_v24  ;;  %v2070_v9 = vcombine.high %v2066_v28, %v2066_v28  ;;  %v1904_v54 = vcombine.high %v1902_v46, %v1902_v46  ;;  %v1918_v44 = vrot.slane %v1902_v46, %v4048_v2 }
0x159c   :  { %2216 = vst.msk [vmem:[#allocation7 + $0x1b] sm:$0x1] %vm1743_vm2, %v2203_v49  ;;  %2083 = vst.msk [vmem:[#allocation7 + $0x22] sm:$0x1] %vm1743_vm2, %v2052_v41  ;;  %v1835_v59 = vrot.slane %v1821_v51, %v4048_v2  ;;  %v1925_v3 = vrot.slane %v1903_v47, %v4048_v2  ;;  %v1933_v50 = vcombine.high %v1911_v31, %v1911_v31  ;;  %v2355_v49 = vld [vmem:[#allocation3 + $0x28] sm:$0xff] }
0x159d   :  { %2220 = vst.msk [vmem:[#allocation7 + $0x3b] sm:$0x1] %vm1743_vm2, %v2204_v15  ;;  %2080 = vst.msk [vmem:[#allocation7 + $0xa] sm:$0x1] %vm1743_vm2, %v2059_v27  ;;  %v1836_v5 = vcombine.high %v1828_v16, %v1828_v16  ;;  %v1844_v39 = vrot.slane %v1828_v16, %v4048_v2  ;;  %v1932_v34 = vrot.slane %v1904_v54, %v4048_v2  ;;  %v2221_v27 = vld [vmem:[#allocation3 + $0x20] sm:$0xff] }
0x159e   :  { %2081 = vst.msk [vmem:[#allocation7 + $0x12] sm:$0x1] %vm1743_vm2, %v2067_v7  ;;  %2084 = vst.msk [vmem:[#allocation7 + $0x2a] sm:$0x1] %vm1743_vm2, %v2066_v28  ;;  %v1934_v56 = vcombine.high %v1918_v44, %v1918_v44  ;;  %v1837_v10 = vcombine.high %v1835_v59, %v1835_v59  ;;  %v1851_v61 = vrot.slane %v1835_v59, %v4048_v2 }
0x159f   :  { %2085 = vst.msk [vmem:[#allocation7 + $0x32] sm:$0x1] %vm1743_vm2, %v2068_v43  ;;  %2082 = vst.msk [vmem:[#allocation7 + $0x1a] sm:$0x1] %vm1743_vm2, %v2069_v42  ;;  %v1935_v14 = vcombine.high %v1925_v3, %v1925_v3  ;;  %v1858_v37 = vrot.slane %v1836_v5, %v4048_v2  ;;  %v1866_v21 = vcombine.high %v1844_v39, %v1844_v39 }
0x15a0   :  { %1945 = vst.msk [vmem:[#allocation7 + $0x1] sm:$0x1] %vm1743_vm2, %v1911_v31  ;;  %2086 = vst.msk [vmem:[#allocation7 + $0x3a] sm:$0x1] %vm1743_vm2, %v2070_v9  ;;  %v1686_v48 = vcombine.high %v1684_v19, %v1684_v19  ;;  %v1936_v53 = vcombine.high %v1932_v34, %v1932_v34  ;;  %v1865_v35 = vrot.slane %v1837_v10, %v4048_v2 }
0x15a1   :  { %1949 = vst.msk [vmem:[#allocation7 + $0x21] sm:$0x1] %vm1743_vm2, %v1918_v44  ;;  %1946 = vst.msk [vmem:[#allocation7 + $0x9] sm:$0x1] %vm1743_vm2, %v1925_v3  ;;  %v1867_v26 = vcombine.high %v1851_v61, %v1851_v61  ;;  %v1693_v38 = vrot.slane %v1684_v19, %v4048_v2  ;;  %v1868_v55 = vcombine.high %v1858_v37, %v1858_v37  ;;  %v2489_v31 = vld [vmem:[#allocation3 + $0x30] sm:$0xff] }
0x15a2   :  { %1947 = vst.msk [vmem:[#allocation7 + $0x11] sm:$0x1] %vm1743_vm2, %v1933_v50  ;;  %1878 = vst.msk [vmem:[#allocation5 + $0x1] sm:$0x1] %vm1743_vm2, %v1844_v39  ;;  %v1700_v33 = vrot.slane %v1686_v48, %v4048_v2  ;;  %v2089_v36 = vcombine.high %v2087_v22, %v2087_v22  ;;  %v2096_v25 = vrot.slane %v2087_v22, %v4048_v2 }
0x15a3   :  { %1950 = vst.msk [vmem:[#allocation7 + $0x29] sm:$0x1] %vm1743_vm2, %v1932_v34  ;;  %1951 = vst.msk [vmem:[#allocation7 + $0x31] sm:$0x1] %vm1743_vm2, %v1934_v56  ;;  %v1869_v45 = vcombine.high %v1865_v35, %v1865_v35  ;;  %v1701_v23 = vcombine.high %v1693_v38, %v1693_v38  ;;  %v1709_v40 = vrot.slane %v1693_v38, %v4048_v2 }
0x15a4   :  { %1882 = vst.msk [vmem:[#allocation5 + $0x21] sm:$0x1] %vm1743_vm2, %v1851_v61  ;;  %1948 = vst.msk [vmem:[#allocation7 + $0x19] sm:$0x1] %vm1743_vm2, %v1935_v14  ;;  %v1955_v57 = vcombine.high %v1953_v29, %v1953_v29  ;;  %v1702_v6 = vcombine.high %v1700_v33, %v1700_v33  ;;  %v1716_v1 = vrot.slane %v1700_v33, %v4048_v2 }
0x15a5   :  { %1879 = vst.msk [vmem:[#allocation5 + $0x9] sm:$0x1] %vm1743_vm2, %v1858_v37  ;;  %1880 = vst.msk [vmem:[#allocation5 + $0x11] sm:$0x1] %vm1743_vm2, %v1866_v21  ;;  %v2103_v58 = vrot.slane %v2089_v36, %v4048_v2  ;;  %v2104_v12 = vcombine.high %v2096_v25, %v2096_v25  ;;  %v1723_v32 = vrot.slane %v1701_v23, %v4048_v2 }
0x15a6   :  { %1952 = vst.msk [vmem:[#allocation7 + $0x39] sm:$0x1] %vm1743_vm2, %v1936_v53  ;;  %1883 = vst.msk [vmem:[#allocation5 + $0x29] sm:$0x1] %vm1743_vm2, %v1865_v35  ;;  %v1731_v52 = vcombine.high %v1709_v40, %v1709_v40  ;;  %v2112_v13 = vrot.slane %v2096_v25, %v4048_v2  ;;  %v1962_v30 = vrot.slane %v1953_v29, %v4048_v2 }
0x15a7   :  { %1884 = vst.msk [vmem:[#allocation5 + $0x31] sm:$0x1] %vm1743_vm2, %v1867_v26  ;;  %1881 = vst.msk [vmem:[#allocation5 + $0x19] sm:$0x1] %vm1743_vm2, %v1868_v55  ;;  %v1730_v11 = vrot.slane %v1702_v6, %v4048_v2  ;;  %v1732_v63 = vcombine.high %v1716_v1, %v1716_v1  ;;  %v2105_v18 = vcombine.high %v2103_v58, %v2103_v58 }
0x15a8   :  { %1885 = vst.msk [vmem:[#allocation5 + $0x39] sm:$0x1] %vm1743_vm2, %v1869_v45  ;;  %1744 = vst.msk [vmem:[#allocation5] sm:$0x1] %vm1743_vm2, %v1709_v40  ;;  %v2119_v8 = vrot.slane %v2103_v58, %v4048_v2  ;;  %v1733_v17 = vcombine.high %v1723_v32, %v1723_v32  ;;  %v2126_v24 = vrot.slane %v2104_v12, %v4048_v2 }
0x15a9   :  { %1748 = vst.msk [vmem:[#allocation5 + $0x20] sm:$0x1] %vm1743_vm2, %v1716_v1  ;;  %1745 = vst.msk [vmem:[#allocation5 + $0x8] sm:$0x1] %vm1743_vm2, %v1723_v32  ;;  %v2134_v62 = vcombine.high %v2112_v13, %v2112_v13  ;;  %v1969_v0 = vrot.slane %v1955_v57, %v4048_v2  ;;  %v1734_v4 = vcombine.high %v1730_v11, %v1730_v11 }
0x15aa   :  { %1746 = vst.msk [vmem:[#allocation5 + $0x10] sm:$0x1] %vm1743_vm2, %v1731_v52  ;;  %2146 = vst.msk [vmem:[#allocation5 + $0x3] sm:$0x1] %vm1743_vm2, %v2112_v13  ;;  %v2133_v41 = vrot.slane %v2105_v18, %v4048_v2  ;;  %v2135_v20 = vcombine.high %v2119_v8, %v2119_v8  ;;  %v1970_v15 = vcombine.high %v1962_v30, %v1962_v30 }
0x15ab   :  { %1749 = vst.msk [vmem:[#allocation5 + $0x28] sm:$0x1] %vm1743_vm2, %v1730_v11  ;;  %1750 = vst.msk [vmem:[#allocation5 + $0x30] sm:$0x1] %vm1743_vm2, %v1732_v63  ;;  %v2136_v7 = vcombine.high %v2126_v24, %v2126_v24  ;;  %v1971_v60 = vcombine.high %v1969_v0, %v1969_v0  ;;  %v1978_v28 = vrot.slane %v1962_v30, %v4048_v2 }
0x15ac   :  { %2150 = vst.msk [vmem:[#allocation5 + $0x23] sm:$0x1] %vm1743_vm2, %v2119_v8  ;;  %1747 = vst.msk [vmem:[#allocation5 + $0x18] sm:$0x1] %vm1743_vm2, %v1733_v17  ;;  %v1985_v43 = vrot.slane %v1969_v0, %v4048_v2  ;;  %v2137_v46 = vcombine.high %v2133_v41, %v2133_v41  ;;  %v1992_v51 = vrot.slane %v1970_v15, %v4048_v2 }
0x15ad   :  { %2147 = vst.msk [vmem:[#allocation5 + $0xb] sm:$0x1] %vm1743_vm2, %v2126_v24  ;;  %2148 = vst.msk [vmem:[#allocation5 + $0x13] sm:$0x1] %vm1743_vm2, %v2134_v62  ;;  %v2357_v42 = vcombine.high %v2355_v49, %v2355_v49  ;;  %v2364_v47 = vrot.slane %v2355_v49, %v4048_v2  ;;  %v1999_v16 = vrot.slane %v1971_v60, %v4048_v2 }
0x15ae   :  { %1751 = vst.msk [vmem:[#allocation5 + $0x38] sm:$0x1] %vm1743_vm2, %v1734_v4  ;;  %2151 = vst.msk [vmem:[#allocation5 + $0x2b] sm:$0x1] %vm1743_vm2, %v2133_v41  ;;  %v2000_v9 = vcombine.high %v1978_v28, %v1978_v28  ;;  %v2001_v54 = vcombine.high %v1985_v43, %v1985_v43  ;;  %v2223_v44 = vcombine.high %v2221_v27, %v2221_v27 }
0x15af   :  { %2152 = vst.msk [vmem:[#allocation5 + $0x33] sm:$0x1] %vm1743_vm2, %v2135_v20  ;;  %2149 = vst.msk [vmem:[#allocation5 + $0x1b] sm:$0x1] %vm1743_vm2, %v2136_v7  ;;  %v2002_v59 = vcombine.high %v1992_v51, %v1992_v51  ;;  %v2371_v19 = vrot.slane %v2357_v42, %v4048_v2  ;;  %v2372_v3 = vcombine.high %v2364_v47, %v2364_v47 }
0x15b0   :  { %2012 = vst.msk [vmem:[#allocation5 + $0x2] sm:$0x1] %vm1743_vm2, %v1978_v28  ;;  %2016 = vst.msk [vmem:[#allocation5 + $0x22] sm:$0x1] %vm1743_vm2, %v1985_v43  ;;  %v2380_v50 = vrot.slane %v2364_v47, %v4048_v2  ;;  %v2003_v5 = vcombine.high %v1999_v16, %v1999_v16  ;;  %v2230_v39 = vrot.slane %v2221_v27, %v4048_v2 }
0x15b1   :  { %2153 = vst.msk [vmem:[#allocation5 + $0x3b] sm:$0x1] %vm1743_vm2, %v2137_v46  ;;  %2013 = vst.msk [vmem:[#allocation5 + $0xa] sm:$0x1] %vm1743_vm2, %v1992_v51  ;;  %v2237_v34 = vrot.slane %v2223_v44, %v4048_v2  ;;  %v2491_v56 = vcombine.high %v2489_v31, %v2489_v31  ;;  %v2373_v10 = vcombine.high %v2371_v19, %v2371_v19 }
0x15b2   :  { %2014 = vst.msk [vmem:[#allocation5 + $0x12] sm:$0x1] %vm1743_vm2, %v2000_v9  ;;  %2017 = vst.msk [vmem:[#allocation5 + $0x2a] sm:$0x1] %vm1743_vm2, %v1999_v16  ;;  %v2387_v61 = vrot.slane %v2371_v19, %v4048_v2  ;;  %v2394_v22 = vrot.slane %v2372_v3, %v4048_v2  ;;  %v2402_v14 = vcombine.high %v2380_v50, %v2380_v50 }
0x15b3   :  { %2018 = vst.msk [vmem:[#allocation5 + $0x32] sm:$0x1] %vm1743_vm2, %v2001_v54  ;;  %2015 = vst.msk [vmem:[#allocation5 + $0x1a] sm:$0x1] %vm1743_vm2, %v2002_v59  ;;  %v2238_v37 = vcombine.high %v2230_v39, %v2230_v39  ;;  %v2239_v21 = vcombine.high %v2237_v34, %v2237_v34  ;;  %v2246_v48 = vrot.slane %v2230_v39, %v4048_v2 }
0x15b4   :  { %2414 = vst.msk [vmem:[#allocation5 + $0x5] sm:$0x1] %vm1743_vm2, %v2380_v50  ;;  %2019 = vst.msk [vmem:[#allocation5 + $0x3a] sm:$0x1] %vm1743_vm2, %v2003_v5  ;;  %v2253_v29 = vrot.slane %v2237_v34, %v4048_v2  ;;  %v2401_v53 = vrot.slane %v2373_v10, %v4048_v2  ;;  %v2403_v35 = vcombine.high %v2387_v61, %v2387_v61 }
0x15b5   :  { %v2404_v26 = vcombine.high %v2394_v22, %v2394_v22  ;;  %2415 = vst.msk [vmem:[#allocation5 + $0xd] sm:$0x1] %vm1743_vm2, %v2394_v22  ;;  %2416 = vst.msk [vmem:[#allocation5 + $0x15] sm:$0x1] %vm1743_vm2, %v2402_v14  ;;  %v2498_v38 = vrot.slane %v2489_v31, %v4048_v2  ;;  %v2260_v55 = vrot.slane %v2238_v37, %v4048_v2 }
0x15b6   :  { %2418 = vst.msk [vmem:[#allocation5 + $0x25] sm:$0x1] %vm1743_vm2, %v2387_v61  ;;  %v2267_v33 = vrot.slane %v2239_v21, %v4048_v2  ;;  %v2268_v36 = vcombine.high %v2246_v48, %v2246_v48  ;;  %v2269_v25 = vcombine.high %v2253_v29, %v2253_v29  ;;  %2280 = vst.msk [vmem:[#allocation5 + $0x4] sm:$0x1] %vm1743_vm2, %v2246_v48 }
0x15b7   :  { %2284 = vst.msk [vmem:[#allocation5 + $0x24] sm:$0x1] %vm1743_vm2, %v2253_v29  ;;  %v2405_v45 = vcombine.high %v2401_v53, %v2401_v53  ;;  %2417 = vst.msk [vmem:[#allocation5 + $0x1d] sm:$0x1] %vm1743_vm2, %v2404_v26  ;;  %v2505_v23 = vrot.slane %v2491_v56, %v4048_v2  ;;  %v2506_v40 = vcombine.high %v2498_v38, %v2498_v38 }
0x15b8   :  { %2419 = vst.msk [vmem:[#allocation5 + $0x2d] sm:$0x1] %vm1743_vm2, %v2401_v53  ;;  %2420 = vst.msk [vmem:[#allocation5 + $0x35] sm:$0x1] %vm1743_vm2, %v2403_v35  ;;  %v2514_v57 = vrot.slane %v2498_v38, %v4048_v2  ;;  %v2270_v6 = vcombine.high %v2260_v55, %v2260_v55  ;;  %v2271_v1 = vcombine.high %v2267_v33, %v2267_v33 }
0x15b9   :  { %2281 = vst.msk [vmem:[#allocation5 + $0xc] sm:$0x1] %vm1743_vm2, %v2260_v55  ;;  %2282 = vst.msk [vmem:[#allocation5 + $0x14] sm:$0x1] %vm1743_vm2, %v2268_v36  ;;  %v2507_v58 = vcombine.high %v2505_v23, %v2505_v23  ;;  %v2521_v12 = vrot.slane %v2505_v23, %v4048_v2  ;;  %v2528_v32 = vrot.slane %v2506_v40, %v4048_v2 }
0x15ba   :  { %2285 = vst.msk [vmem:[#allocation5 + $0x2c] sm:$0x1] %vm1743_vm2, %v2267_v33  ;;  %2286 = vst.msk [vmem:[#allocation5 + $0x34] sm:$0x1] %vm1743_vm2, %v2269_v25  ;;  %v2536_v52 = vcombine.high %v2514_v57, %v2514_v57 }
0x15bb   :  { %2421 = vst.msk [vmem:[#allocation5 + $0x3d] sm:$0x1] %vm1743_vm2, %v2405_v45  ;;  %2548 = vst.msk [vmem:[#allocation5 + $0x6] sm:$0x1] %vm1743_vm2, %v2514_v57  ;;  %v2535_v13 = vrot.slane %v2507_v58, %v4048_v2  ;;  %v2537_v30 = vcombine.high %v2521_v12, %v2521_v12  ;;  %v2538_v11 = vcombine.high %v2528_v32, %v2528_v32 }
0x15bc   :  { %2283 = vst.msk [vmem:[#allocation5 + $0x1c] sm:$0x1] %vm1743_vm2, %v2270_v6  ;;  %2287 = vst.msk [vmem:[#allocation5 + $0x3c] sm:$0x1] %vm1743_vm2, %v2271_v1 }
0x15bd   :  { %2549 = vst.msk [vmem:[#allocation5 + $0xe] sm:$0x1] %vm1743_vm2, %v2528_v32  ;;  %2550 = vst.msk [vmem:[#allocation5 + $0x16] sm:$0x1] %vm1743_vm2, %v2536_v52  ;;  %v2539_v63 = vcombine.high %v2535_v13, %v2535_v13 }
0x15be   :  { %2552 = vst.msk [vmem:[#allocation5 + $0x26] sm:$0x1] %vm1743_vm2, %v2521_v12  ;;  %2551 = vst.msk [vmem:[#allocation5 + $0x1e] sm:$0x1] %vm1743_vm2, %v2538_v11 }
0x15bf   :  { %2553 = vst.msk [vmem:[#allocation5 + $0x2e] sm:$0x1] %vm1743_vm2, %v2535_v13  ;;  %2554 = vst.msk [vmem:[#allocation5 + $0x36] sm:$0x1] %vm1743_vm2, %v2537_v30 }
0x15c0   :  { %2555 = vst.msk [vmem:[#allocation5 + $0x3e] sm:$0x1] %vm1743_vm2, %v2539_v63 }
0x15e8   :  { %v1665_v18 = vpop.permute.xlu0 %1664 }
0x15e9   :  { %1667 = vst.msk [vmem:[#allocation4] sm:$0xff] %vm79_vm1, %v1665_v18 }
0x15ec   :  { %v1653_v8 = vpop.permute.xlu0 %1652 }
0x15ed   :  { %1656 = vst.msk [vmem:[#allocation3 + $0x38] sm:$0xff] %vm79_vm1, %v1653_v8 }
0x15f0   :  { %v1752_v17 = vld [vmem:[#allocation4] sm:$0xff]  ;;  %v1681_v24 = vpop.permute.xlu0 %1680  ;;  %v1676_v62 = vpop.permute.xlu1 %1675 }
0x15f1   :  { %v1754_v0 = vcombine.high %v1752_v17, %v1752_v17  ;;  %v1761_v49 = vrot.slane %v1752_v17, %v4048_v2  ;;  %1683 = vst.msk [vmem:[#allocation10] sm:$0xff] %vm79_vm1, %v1681_v24  ;;  %1678 = vst.msk [vmem:[#allocation9] sm:$0xff] %vm79_vm1, %v1676_v62 }
0x15f2   :  { %3231 = shalt.err (!%p3228_p4)
}
0x15f3   :  { %2800 = dma.vmem_to_hbm [thread:$0]  %s2798_s1, 128, %s4317_s9, [#allocation11]   ;;  %v1768_v4 = vrot.slane %v1754_v0, %v4048_v2  ;;  %v1769_v41 = vcombine.high %v1761_v49, %v1761_v49  ;;  %v1777_v20 = vrot.slane %v1761_v49, %v4048_v2 }
0x15f4   :  { %v2623_v15 = vld [vmem:[#allocation3 + $0x38] sm:$0xff]  ;;  %s3313_s26 = smov [#allocation7]   ;;  %s3314_s9 = smov [#allocation9]  }
0x15f5   :  { %v1770_v27 = vcombine.high %v1768_v4, %v1768_v4  ;;  %v1784_v7 = vrot.slane %v1768_v4, %v4048_v2  ;;  %v1791_v60 = vrot.slane %v1769_v41, %v4048_v2  ;;  %v1799_v28 = vcombine.high %v1777_v20, %v1777_v20  ;;  %1811 = vst.msk [vmem:[#allocation7] sm:$0x1] %vm1743_vm2, %v1777_v20  ;;  %s2774_s27 = sshll.u32 %s3313_s26, 4  ;;  %s2787_s28 = sshll.u32 %s3314_s9, 4  ;;  %s2775_s27 = int_to_ptr.vmem [resolvable:$true] %s2774_s27  ;;  %s2788_s28 = int_to_ptr.vmem [resolvable:$true] %s2787_s28 }
0x15f6   :  { %v2625_v43 = vcombine.high %v2623_v15, %v2623_v15  ;;  %v2632_v46 = vrot.slane %v2623_v15, %v4048_v2  ;;  %s3315_s29 = smov [#allocation5]   ;;  %s3240_s10 = scalar_lea.vmem %s2775_s27, 1024 }
0x15f7   :  { %v1798_v51 = vrot.slane %v1770_v27, %v4048_v2  ;;  %v1800_v42 = vcombine.high %v1784_v7, %v1784_v7  ;;  %v1801_v47 = vcombine.high %v1791_v60, %v1791_v60  ;;  %1812 = vst.msk [vmem:[#allocation7 + $0x8] sm:$0x1] %vm1743_vm2, %v1791_v60  ;;  %1813 = vst.msk [vmem:[#allocation7 + $0x10] sm:$0x1] %vm1743_vm2, %v1799_v28  ;;  %s2762_s30 = sshll.u32 %s3315_s29, 4  ;;  %p3241_p5 = scmp.ne.s32.totalorder %s2775_s27, %s3240_s10  ;;  %s2763_s30 = int_to_ptr.vmem [resolvable:$true] %s2762_s30 }
0x15f8   :  { %1815 = vst.msk [vmem:[#allocation7 + $0x20] sm:$0x1] %vm1743_vm2, %v1784_v7  ;;  %v2639_v31 = vrot.slane %v2625_v43, %v4048_v2  ;;  %v2640_v16 = vcombine.high %v2632_v46, %v2632_v46  ;;  %v2648_v9 = vrot.slane %v2632_v46, %v4048_v2  ;;  %p3245_p6 = scmp.lt.s32.totalorder %s2775_s27, %s2775_s27  ;;  %p3246_p7 = scmp.lt.s32.totalorder %s3240_s10, %s3240_s10 }
0x15f9   :  { %v1802_v54 = vcombine.high %v1798_v51, %v1798_v51  ;;  %1814 = vst.msk [vmem:[#allocation7 + $0x18] sm:$0x1] %vm1743_vm2, %v1801_v47  ;;  %1816 = vst.msk [vmem:[#allocation7 + $0x28] sm:$0x1] %vm1743_vm2, %v1798_v51 }
0x15fa   :  { %1817 = vst.msk [vmem:[#allocation7 + $0x30] sm:$0x1] %vm1743_vm2, %v1800_v42  ;;  %v2641_v44 = vcombine.high %v2639_v31, %v2639_v31  ;;  %v2655_v59 = vrot.slane %v2639_v31, %v4048_v2  ;;  %v2662_v19 = vrot.slane %v2640_v16, %v4048_v2  ;;  %v2670_v3 = vcombine.high %v2648_v9, %v2648_v9  ;;  %p3247_p8 = por %p3246_p7, %p3245_p6 }
0x15fb   :  { %2682 = vst.msk [vmem:[#allocation5 + $0x7] sm:$0x1] %vm1743_vm2, %v2648_v9  ;;  %1818 = vst.msk [vmem:[#allocation7 + $0x38] sm:$0x1] %vm1743_vm2, %v1802_v54 }
0x15fc   :  { %v2669_v50 = vrot.slane %v2641_v44, %v4048_v2  ;;  %v2671_v5 = vcombine.high %v2655_v59, %v2655_v59  ;;  %v2672_v39 = vcombine.high %v2662_v19, %v2662_v19  ;;  %2683 = vst.msk [vmem:[#allocation5 + $0xf] sm:$0x1] %vm1743_vm2, %v2662_v19  ;;  %2684 = vst.msk [vmem:[#allocation5 + $0x17] sm:$0x1] %vm1743_vm2, %v2670_v3  ;;  %p3248_p9 = pnand %p3247_p8, %p3241_p5 }
0x15fd   :  { %2686 = vst.msk [vmem:[#allocation5 + $0x27] sm:$0x1] %vm1743_vm2, %v2655_v59 }
0x15fe   :  { %3251 = shalt.err (!%p3248_p9)
}
0x15ff   :  { %s3316_s11 = smov 128   ;;  %s3317_s12 = smov 8  }
0x1600   :  { %2780 = dma.vmem_to_hbm [thread:$0]  %s2775_s27, 1024, %s4315_s7, [#allocation8], %s3316_s11, %s3316_s11, %s3317_s12  }
0x1601   :  { %s3260_s15 = scalar_lea.vmem %s2788_s28, 128  ;;  %p3265_p11 = scmp.lt.s32.totalorder %s2788_s28, %s2788_s28 }
0x1602   :  { %p3261_p10 = scmp.ne.s32.totalorder %s2788_s28, %s3260_s15  ;;  %p3266_p12 = scmp.lt.s32.totalorder %s3260_s15, %s3260_s15 }
0x1604   :  { %p3267_p13 = por %p3266_p12, %p3265_p11 }
0x1606   :  { %p3268_p0 = pnand %p3267_p13, %p3261_p10 }
0x1608   :  { %3271 = shalt.err (!%p3268_p0)
}
0x1609   :  { %2790 = dma.vmem_to_hbm [thread:$0]  %s2788_s28, 128, %s4316_s8, [#allocation8]   ;;  %v2673_v2 = vcombine.high %v2669_v50, %v2669_v50  ;;  %2685 = vst.msk [vmem:[#allocation5 + $0x1f] sm:$0x1] %vm1743_vm2, %v2672_v39  ;;  %2687 = vst.msk [vmem:[#allocation5 + $0x2f] sm:$0x1] %vm1743_vm2, %v2669_v50 }
0x160a   :  { %2688 = vst.msk [vmem:[#allocation5 + $0x37] sm:$0x1] %vm1743_vm2, %v2671_v5  ;;  %s3280_s7 = scalar_lea.vmem %s2763_s30, 1024  ;;  %p3285_p2 = scmp.lt.s32.totalorder %s2763_s30, %s2763_s30 }
0x160b   :  { %2689 = vst.msk [vmem:[#allocation5 + $0x3f] sm:$0x1] %vm1743_vm2, %v2673_v2  ;;  %p3281_p1 = scmp.ne.s32.totalorder %s2763_s30, %s3280_s7  ;;  %p3286_p3 = scmp.lt.s32.totalorder %s3280_s7, %s3280_s7 }
0x160d   :  { %p3287_p4 = por %p3286_p3, %p3285_p2 }
0x160f   :  { %p3288_p5 = pnand %p3287_p4, %p3281_p1 }
0x1611   :  { %3291 = shalt.err (!%p3288_p5)
}
0x1612   :  { %2768 = dma.vmem_to_hbm [thread:$0]  %s2763_s30, 1024, %s4314_s6, [#allocation6], %s3316_s11, %s3316_s11, %s3317_s12  }
0x1613   :  { %3300 = dma.done.wait [#allocation6], 1024  }
0x1614   :  { %3301 = vsyncadd [#allocation6], 4294966272 }
0x1615   :  { %3302 = dma.done.wait [#allocation8], 1152  }
0x1616   :  { %3303 = vsyncadd [#allocation8], 4294966144 }
0x1617   :  { %3304 = dma.done.wait [#allocation11], 128  }
0x1618   :  { %3305 = vsyncadd [#allocation11], 4294967168 }
0x1619   :  { %2813 = vsyncpa [#allocation6], 1 }
0x161a   :  { %2814 = vsyncpa [#allocation8], 1 }
0x161b   :  { %2815 = vsyncpa [#allocation11], 1 }

</bundles_post_ra>
